<compile_context>
chip_gen: v7x
topology: tpu7x:2x2x1
jax: 0.10.0
libtpu: 0.0.40
codegen_flags: <defaults>
</compile_context>

<pallas_src>
import numpy as np
import jax
import jax.numpy as jnp
from jax.experimental import pallas as pl
from jax.experimental.pallas import tpu as pltpu


# ----------------------------------------------------------------------------
# Fused conv_block kernel (one grid step per batch element)
#   y1     = relu(bn1(conv3x3(x)))          (kept in VMEM scratch, padded)
#   y2     = relu(bn2(conv3x3(y1)))
#   out    = y2 gathered to compact (C, H*W)
#   pooled = maxpool2x2(y2), emitted pre-padded for the next block (optional)
# ----------------------------------------------------------------------------
def _make_block_kernel(H, W, Cin, C, pool):
    Wp = W + 2                     # padded row width
    Lp = (H + 3) * Wp              # flat padded length (1 top + 2 bottom rows)
    M = H * Wp                     # flat conv-output length (junk cols included)

    def kernel(*refs):
        if pool:
            (x_ref, w1_ref, s1_ref, t1_ref, w2_ref, s2_ref, t2_ref,
             r_ref, g_ref, out_ref, pool_ref, y1p_ref) = refs
        else:
            (x_ref, w1_ref, s1_ref, t1_ref, w2_ref, s2_ref, t2_ref,
             r_ref, out_ref, y1p_ref) = refs

        def conv_bn_relu(load, w_ref, s_ref, t_ref, cin):
            acc = None
            for dy in range(3):
                for dx in range(3):
                    tap = dy * 3 + dx
                    sl = load(dy * Wp + dx)                  # (cin, M)
                    if cin == 1:
                        part = w_ref[tap] * sl               # (C,1)*(1,M) on VPU
                    else:
                        part = jnp.dot(w_ref[tap], sl,
                                       preferred_element_type=jnp.float32)
                    acc = part if acc is None else acc + part
            y = acc * s_ref[...] + t_ref[...]                # folded bias + eval BN
            return jnp.maximum(y, 0.0)                       # ReLU

        # ---- conv1: write into padded scratch for conv2 ----------------------
        y1 = conv_bn_relu(lambda off: x_ref[0, :, off:off + M],
                          w1_ref, s1_ref, t1_ref, Cin)
        col = jax.lax.broadcasted_iota(jnp.int32, (1, M), 1) % Wp
        y1 = jnp.where(col < W, y1, 0.0)          # zero the 2 junk cols per row
        # Zero only the small halo strips; the interior is fully overwritten.
        y1p_ref[:, :Wp + 1] = jnp.zeros((C, Wp + 1), jnp.float32)
        y1p_ref[:, Wp + 1 + M:] = jnp.zeros((C, Lp - Wp - 1 - M), jnp.float32)
        y1p_ref[:, Wp + 1:Wp + 1 + M] = y1        # image at (+1 row, +1 col)

        # ---- conv2 -----------------------------------------------------------
        y2 = conv_bn_relu(lambda off: y1p_ref[:, off:off + M],
                          w2_ref, s2_ref, t2_ref, C)

        # ---- compact lane-dense skip output: (C, M) @ (M, H*W) ---------------
        out_ref[0] = jnp.dot(y2, r_ref[...], preferred_element_type=jnp.float32)

        # ---- fused 2x2 max-pool, emitted pre-padded for the next block -------
        if pool:
            p = jnp.dot(y2, g_ref[0], preferred_element_type=jnp.float32)
            for a in range(1, 4):
                p = jnp.maximum(
                    p, jnp.dot(y2, g_ref[a], preferred_element_type=jnp.float32))
            pool_ref[0] = p

    return kernel


def _selection_matrices(H, W, pool):
    """R: (M, H*W) compaction matrix.  G: (4, M, Lp2) 2x2-pool gather matrices."""
    Wp = W + 2
    M = H * Wp
    R = np.zeros((M, H * W), np.float32)
    for r in range(H):
        for x in range(W):
            R[r * Wp + x, r * W + x] = 1.0
    if not pool:
        return jnp.asarray(R), None
    Ho, Wo = H // 2, W // 2
    Wop = Wo + 2
    Lp2 = (Ho + 3) * Wop
    G = np.zeros((4, M, Lp2), np.float32)
    for a in range(2):
        for b in range(2):
            for i in range(Ho):
                for j in range(Wo):
                    G[a * 2 + b,
                      (2 * i + a) * Wp + (2 * j + b),
                      (i + 1) * Wop + (j + 1)] = 1.0
    return jnp.asarray(R), jnp.asarray(G)


def _fold_bn(layer):
    # eval-mode BatchNorm folded to scale/shift; conv bias folded into shift.
    scale = layer["gamma"] / jnp.sqrt(layer["var"] + 1e-5)
    shift = layer["beta"] - layer["mean"] * scale + layer["b"] * scale
    return scale, shift


def conv_block_forward(x_t, H, W, layers, pool):
    """x_t: (N, Cin, (H+3)*(W+2)) zero-padded, spatially-flattened NCHW."""
    N, Cin, Lp = x_t.shape
    C = layers[0]["w"].shape[-1]
    Wp = W + 2
    M = H * Wp
    HW = H * W
    assert Lp == (H + 3) * Wp

    # per-tap (Cout, Cin) weights:  HWIO -> (9, Cout, Cin)
    w1 = jnp.transpose(layers[0]["w"], (0, 1, 3, 2)).reshape(9, C, Cin)
    w2 = jnp.transpose(layers[1]["w"], (0, 1, 3, 2)).reshape(9, C, C)
    s1, t1 = _fold_bn(layers[0])
    s2, t2 = _fold_bn(layers[1])
    s1, t1, s2, t2 = (v.reshape(C, 1) for v in (s1, t1, s2, t2))

    R, G = _selection_matrices(H, W, pool)

    in_arrays = [x_t, w1, s1, t1, w2, s2, t2, R]
    in_specs = [
        pl.BlockSpec((1, Cin, Lp), lambda n: (n, 0, 0)),
        pl.BlockSpec((9, C, Cin), lambda n: (0, 0, 0)),
        pl.BlockSpec((C, 1), lambda n: (0, 0)),
        pl.BlockSpec((C, 1), lambda n: (0, 0)),
        pl.BlockSpec((9, C, C), lambda n: (0, 0, 0)),
        pl.BlockSpec((C, 1), lambda n: (0, 0)),
        pl.BlockSpec((C, 1), lambda n: (0, 0)),
        pl.BlockSpec((M, HW), lambda n: (0, 0)),
    ]
    out_shape = [jax.ShapeDtypeStruct((N, C, HW), jnp.float32)]
    out_specs = [pl.BlockSpec((1, C, HW), lambda n: (n, 0, 0))]
    if pool:
        Ho, Wo = H // 2, W // 2
        Lp2 = (Ho + 3) * (Wo + 2)
        in_arrays.append(G)
        in_specs.append(pl.BlockSpec((4, M, Lp2), lambda n: (0, 0, 0)))
        out_shape.append(jax.ShapeDtypeStruct((N, C, Lp2), jnp.float32))
        out_specs.append(pl.BlockSpec((1, C, Lp2), lambda n: (n, 0, 0)))

    res = pl.pallas_call(
        _make_block_kernel(H, W, Cin, C, pool),
        out_shape=tuple(out_shape) if pool else out_shape[0],
        grid=(N,),
        in_specs=in_specs,
        out_specs=tuple(out_specs) if pool else out_specs[0],
        scratch_shapes=[pltpu.VMEM((C, Lp), jnp.float32)],
        compiler_params=pltpu.CompilerParams(
            dimension_semantics=("parallel",)),
    )(*in_arrays)

    if pool:
        return res[0], res[1]
    return res, None


# ----------------------------------------------------------------------------
# UNet_encoder forward (NCHW in / NCHW out)
# ----------------------------------------------------------------------------
def unet_encoder_forward(x_nchw, blocks):
    N, Cin, H, W = x_nchw.shape
    xpad = jnp.pad(x_nchw, ((0, 0), (0, 0), (1, 2), (1, 1)))
    x_t = xpad.reshape(N, Cin, (H + 3) * (W + 2))

    out1, p1 = conv_block_forward(x_t, H, W, blocks[0], pool=True)
    H2, W2 = H // 2, W // 2
    out2, p2 = conv_block_forward(p1, H2, W2, blocks[1], pool=True)
    H3, W3 = H2 // 2, W2 // 2
    out3, _ = conv_block_forward(p2, H3, W3, blocks[2], pool=False)

    # compact outputs are already channel-major: reshapes are free (no slice/transpose)
    return (out1.reshape(N, out1.shape[1], H, W),
            out2.reshape(N, out2.shape[1], H2, W2),
            out3.reshape(N, out3.shape[1], H3, W3))


# ----------------------------------------------------------------------------
# Deterministic synthetic parameters
# ----------------------------------------------------------------------------
def init_conv_block_params(key, cin, cout):
    layers = []
    for ci, co in [(cin, cout), (cout, cout)]:
        key, *ks = jax.random.split(key, 7)
        layers.append(dict(
            w=0.1 * jax.random.normal(ks[0], (3, 3, ci, co), jnp.float32),
            b=0.05 * jax.random.normal(ks[1], (co,), jnp.float32),
            gamma=1.0 + 0.1 * jax.random.normal(ks[2], (co,), jnp.float32),
            beta=0.1 * jax.random.normal(ks[3], (co,), jnp.float32),
            mean=0.05 * jax.random.normal(ks[4], (co,), jnp.float32),
            var=0.5 + jax.random.uniform(ks[5], (co,), jnp.float32),
        ))
    return layers, key


# ----------------------------------------------------------------------------
# Pure-JAX reference (correctness check of the Pallas kernels)
# ----------------------------------------------------------------------------
def _ref_conv_bn_relu(x_nchw, layer):
    y = jax.lax.conv_general_dilated(
        x_nchw, layer["w"], (1, 1), ((1, 1), (1, 1)),
        dimension_numbers=("NCHW", "HWIO", "NCHW"))
    y = y + layer["b"][None, :, None, None]
    inv = layer["gamma"] / jnp.sqrt(layer["var"] + 1e-5)
    y = (y - layer["mean"][None, :, None, None]) * inv[None, :, None, None] \
        + layer["beta"][None, :, None, None]
    return jnp.maximum(y, 0.0)


def _ref_block(x, layers):
    return _ref_conv_bn_relu(_ref_conv_bn_relu(x, layers[0]), layers[1])


def _ref_maxpool(x):
    return jax.lax.reduce_window(x, -jnp.inf, jax.lax.max,
                                 (1, 1, 2, 2), (1, 1, 2, 2), "VALID")


def _ref_forward(x, blocks):
    o1 = _ref_block(x, blocks[0])
    o2 = _ref_block(_ref_maxpool(o1), blocks[1])
    o3 = _ref_block(_ref_maxpool(o2), blocks[2])
    return o1, o2, o3


if __name__ == "__main__":
    key = jax.random.PRNGKey(0)

    # UNet_encoder(dct=False, channel=8): in_ch=1, filters=[8, 16, 32]
    channel = 8
    filters = [channel, channel * 2, channel * 4]
    in_ch = 1
    N, H, W = 2, 16, 16

    key, xk = jax.random.split(key)
    x = jax.random.normal(xk, (N, in_ch, H, W), jnp.float32)

    blocks = []
    for ci, co in [(in_ch, filters[0]), (filters[0], filters[1]),
                   (filters[1], filters[2])]:
        layers, key = init_conv_block_params(key, ci, co)
        blocks.append(layers)

    fwd = jax.jit(unet_encoder_forward)
    out1, out2, out3 = jax.block_until_ready(fwd(x, blocks))

    assert out1.shape == (N, filters[0], H, W)
    assert out2.shape == (N, filters[1], H // 2, W // 2)
    assert out3.shape == (N, filters[2], H // 4, W // 4)

    r1, r2, r3 = _ref_forward(x, blocks)
    for got, ref in [(out1, r1), (out2, r2), (out3, r3)]:
        if not jnp.allclose(got, ref, rtol=1e-3, atol=1e-3):
            err = jnp.max(jnp.abs(got - ref))
            raise AssertionError(
                f"Pallas output mismatch vs JAX reference (max abs err {err})")

    print("KERNEL_OK")
</pallas_src>

<mosaic_0001>
module attributes {stable_mosaic.version = 11 : i64} {
  func.func @kernel(%arg0: i32, %arg1: memref<1x1x342xf32, #tpu.memory_space<vmem>>, %arg2: memref<9x8x1xf32, #tpu.memory_space<vmem>>, %arg3: memref<8x1xf32, #tpu.memory_space<vmem>>, %arg4: memref<8x1xf32, #tpu.memory_space<vmem>>, %arg5: memref<9x8x8xf32, #tpu.memory_space<vmem>>, %arg6: memref<8x1xf32, #tpu.memory_space<vmem>>, %arg7: memref<8x1xf32, #tpu.memory_space<vmem>>, %arg8: memref<288x256xf32, #tpu.memory_space<vmem>>, %arg9: memref<4x288x110xf32, #tpu.memory_space<vmem>>, %arg10: memref<1x8x256xf32, #tpu.memory_space<vmem>>, %arg11: memref<1x8x110xf32, #tpu.memory_space<vmem>>, %arg12: memref<8x342xf32, #tpu.memory_space<vmem>>) attributes {dimension_semantics = [#tpu.dimension_semantics<parallel>], iteration_bounds = array<i64: 2>, scalar_prefetch = 0 : i64, scratch_operands = 1 : i64, tpu.core_type = #tpu.core_type<tc>, window_params = [{transform_indices = @transform_0, window_bounds = array<i64: 1, 1, 342>}, {pipeline_mode = #tpu.pipeline_mode<synchronous>, transform_indices = @transform_1, window_bounds = array<i64: 9, 8, 1>}, {pipeline_mode = #tpu.pipeline_mode<synchronous>, transform_indices = @transform_2, window_bounds = array<i64: 8, 1>}, {pipeline_mode = #tpu.pipeline_mode<synchronous>, transform_indices = @transform_3, window_bounds = array<i64: 8, 1>}, {pipeline_mode = #tpu.pipeline_mode<synchronous>, transform_indices = @transform_4, window_bounds = array<i64: 9, 8, 8>}, {pipeline_mode = #tpu.pipeline_mode<synchronous>, transform_indices = @transform_5, window_bounds = array<i64: 8, 1>}, {pipeline_mode = #tpu.pipeline_mode<synchronous>, transform_indices = @transform_6, window_bounds = array<i64: 8, 1>}, {pipeline_mode = #tpu.pipeline_mode<synchronous>, transform_indices = @transform_7, window_bounds = array<i64: 288, 256>}, {pipeline_mode = #tpu.pipeline_mode<synchronous>, transform_indices = @transform_8, window_bounds = array<i64: 4, 288, 110>}, {transform_indices = @transform_9, window_bounds = array<i64: 1, 8, 256>}, {transform_indices = @transform_10, window_bounds = array<i64: 1, 8, 110>}]} {
    %c0 = arith.constant 0 : index
    %c0_0 = arith.constant 0 : index
    %c0_1 = arith.constant 0 : index
    %0 = vector.load %arg1[%c0, %c0_0, %c0_1] : memref<1x1x342xf32, #tpu.memory_space<vmem>>, vector<1x1x288xf32>
    %1 = vector.shape_cast %0 : vector<1x1x288xf32> to vector<1x288xf32>
    %c0_2 = arith.constant 0 : index
    %c0_3 = arith.constant 0 : index
    %c0_4 = arith.constant 0 : index
    %2 = vector.load %arg2[%c0_2, %c0_3, %c0_4] : memref<9x8x1xf32, #tpu.memory_space<vmem>>, vector<1x8x1xf32>
    %3 = vector.shape_cast %2 : vector<1x8x1xf32> to vector<8x1xf32>
    %4 = vector.broadcast %3 : vector<8x1xf32> to vector<8x288xf32>
    %5 = vector.broadcast %1 : vector<1x288xf32> to vector<8x288xf32>
    %6 = arith.mulf %4, %5 : vector<8x288xf32>
    %c0_5 = arith.constant 0 : index
    %c0_6 = arith.constant 0 : index
    %c1 = arith.constant 1 : index
    %7 = vector.load %arg1[%c0_5, %c0_6, %c1] : memref<1x1x342xf32, #tpu.memory_space<vmem>>, vector<1x1x288xf32>
    %8 = vector.shape_cast %7 : vector<1x1x288xf32> to vector<1x288xf32>
    %c1_7 = arith.constant 1 : index
    %c0_8 = arith.constant 0 : index
    %c0_9 = arith.constant 0 : index
    %9 = vector.load %arg2[%c1_7, %c0_8, %c0_9] : memref<9x8x1xf32, #tpu.memory_space<vmem>>, vector<1x8x1xf32>
    %10 = vector.shape_cast %9 : vector<1x8x1xf32> to vector<8x1xf32>
    %11 = vector.broadcast %10 : vector<8x1xf32> to vector<8x288xf32>
    %12 = vector.broadcast %8 : vector<1x288xf32> to vector<8x288xf32>
    %13 = arith.mulf %11, %12 : vector<8x288xf32>
    %14 = arith.addf %6, %13 : vector<8x288xf32>
    %c0_10 = arith.constant 0 : index
    %c0_11 = arith.constant 0 : index
    %c2 = arith.constant 2 : index
    %15 = vector.load %arg1[%c0_10, %c0_11, %c2] : memref<1x1x342xf32, #tpu.memory_space<vmem>>, vector<1x1x288xf32>
    %16 = vector.shape_cast %15 : vector<1x1x288xf32> to vector<1x288xf32>
    %c2_12 = arith.constant 2 : index
    %c0_13 = arith.constant 0 : index
    %c0_14 = arith.constant 0 : index
    %17 = vector.load %arg2[%c2_12, %c0_13, %c0_14] : memref<9x8x1xf32, #tpu.memory_space<vmem>>, vector<1x8x1xf32>
    %18 = vector.shape_cast %17 : vector<1x8x1xf32> to vector<8x1xf32>
    %19 = vector.broadcast %18 : vector<8x1xf32> to vector<8x288xf32>
    %20 = vector.broadcast %16 : vector<1x288xf32> to vector<8x288xf32>
    %21 = arith.mulf %19, %20 : vector<8x288xf32>
    %22 = arith.addf %14, %21 : vector<8x288xf32>
    %c0_15 = arith.constant 0 : index
    %c0_16 = arith.constant 0 : index
    %c18 = arith.constant 18 : index
    %23 = vector.load %arg1[%c0_15, %c0_16, %c18] : memref<1x1x342xf32, #tpu.memory_space<vmem>>, vector<1x1x288xf32>
    %24 = vector.shape_cast %23 : vector<1x1x288xf32> to vector<1x288xf32>
    %c3 = arith.constant 3 : index
    %c0_17 = arith.constant 0 : index
    %c0_18 = arith.constant 0 : index
    %25 = vector.load %arg2[%c3, %c0_17, %c0_18] : memref<9x8x1xf32, #tpu.memory_space<vmem>>, vector<1x8x1xf32>
    %26 = vector.shape_cast %25 : vector<1x8x1xf32> to vector<8x1xf32>
    %27 = vector.broadcast %26 : vector<8x1xf32> to vector<8x288xf32>
    %28 = vector.broadcast %24 : vector<1x288xf32> to vector<8x288xf32>
    %29 = arith.mulf %27, %28 : vector<8x288xf32>
    %30 = arith.addf %22, %29 : vector<8x288xf32>
    %c0_19 = arith.constant 0 : index
    %c0_20 = arith.constant 0 : index
    %c19 = arith.constant 19 : index
    %31 = vector.load %arg1[%c0_19, %c0_20, %c19] : memref<1x1x342xf32, #tpu.memory_space<vmem>>, vector<1x1x288xf32>
    %32 = vector.shape_cast %31 : vector<1x1x288xf32> to vector<1x288xf32>
    %c4 = arith.constant 4 : index
    %c0_21 = arith.constant 0 : index
    %c0_22 = arith.constant 0 : index
    %33 = vector.load %arg2[%c4, %c0_21, %c0_22] : memref<9x8x1xf32, #tpu.memory_space<vmem>>, vector<1x8x1xf32>
    %34 = vector.shape_cast %33 : vector<1x8x1xf32> to vector<8x1xf32>
    %35 = vector.broadcast %34 : vector<8x1xf32> to vector<8x288xf32>
    %36 = vector.broadcast %32 : vector<1x288xf32> to vector<8x288xf32>
    %37 = arith.mulf %35, %36 : vector<8x288xf32>
    %38 = arith.addf %30, %37 : vector<8x288xf32>
    %c0_23 = arith.constant 0 : index
    %c0_24 = arith.constant 0 : index
    %c20 = arith.constant 20 : index
    %39 = vector.load %arg1[%c0_23, %c0_24, %c20] : memref<1x1x342xf32, #tpu.memory_space<vmem>>, vector<1x1x288xf32>
    %40 = vector.shape_cast %39 : vector<1x1x288xf32> to vector<1x288xf32>
    %c5 = arith.constant 5 : index
    %c0_25 = arith.constant 0 : index
    %c0_26 = arith.constant 0 : index
    %41 = vector.load %arg2[%c5, %c0_25, %c0_26] : memref<9x8x1xf32, #tpu.memory_space<vmem>>, vector<1x8x1xf32>
    %42 = vector.shape_cast %41 : vector<1x8x1xf32> to vector<8x1xf32>
    %43 = vector.broadcast %42 : vector<8x1xf32> to vector<8x288xf32>
    %44 = vector.broadcast %40 : vector<1x288xf32> to vector<8x288xf32>
    %45 = arith.mulf %43, %44 : vector<8x288xf32>
    %46 = arith.addf %38, %45 : vector<8x288xf32>
    %c0_27 = arith.constant 0 : index
    %c0_28 = arith.constant 0 : index
    %c36 = arith.constant 36 : index
    %47 = vector.load %arg1[%c0_27, %c0_28, %c36] : memref<1x1x342xf32, #tpu.memory_space<vmem>>, vector<1x1x288xf32>
    %48 = vector.shape_cast %47 : vector<1x1x288xf32> to vector<1x288xf32>
    %c6 = arith.constant 6 : index
    %c0_29 = arith.constant 0 : index
    %c0_30 = arith.constant 0 : index
    %49 = vector.load %arg2[%c6, %c0_29, %c0_30] : memref<9x8x1xf32, #tpu.memory_space<vmem>>, vector<1x8x1xf32>
    %50 = vector.shape_cast %49 : vector<1x8x1xf32> to vector<8x1xf32>
    %51 = vector.broadcast %50 : vector<8x1xf32> to vector<8x288xf32>
    %52 = vector.broadcast %48 : vector<1x288xf32> to vector<8x288xf32>
    %53 = arith.mulf %51, %52 : vector<8x288xf32>
    %54 = arith.addf %46, %53 : vector<8x288xf32>
    %c0_31 = arith.constant 0 : index
    %c0_32 = arith.constant 0 : index
    %c37 = arith.constant 37 : index
    %55 = vector.load %arg1[%c0_31, %c0_32, %c37] : memref<1x1x342xf32, #tpu.memory_space<vmem>>, vector<1x1x288xf32>
    %56 = vector.shape_cast %55 : vector<1x1x288xf32> to vector<1x288xf32>
    %c7 = arith.constant 7 : index
    %c0_33 = arith.constant 0 : index
    %c0_34 = arith.constant 0 : index
    %57 = vector.load %arg2[%c7, %c0_33, %c0_34] : memref<9x8x1xf32, #tpu.memory_space<vmem>>, vector<1x8x1xf32>
    %58 = vector.shape_cast %57 : vector<1x8x1xf32> to vector<8x1xf32>
    %59 = vector.broadcast %58 : vector<8x1xf32> to vector<8x288xf32>
    %60 = vector.broadcast %56 : vector<1x288xf32> to vector<8x288xf32>
    %61 = arith.mulf %59, %60 : vector<8x288xf32>
    %62 = arith.addf %54, %61 : vector<8x288xf32>
    %c0_35 = arith.constant 0 : index
    %c0_36 = arith.constant 0 : index
    %c38 = arith.constant 38 : index
    %63 = vector.load %arg1[%c0_35, %c0_36, %c38] : memref<1x1x342xf32, #tpu.memory_space<vmem>>, vector<1x1x288xf32>
    %64 = vector.shape_cast %63 : vector<1x1x288xf32> to vector<1x288xf32>
    %c8 = arith.constant 8 : index
    %c0_37 = arith.constant 0 : index
    %c0_38 = arith.constant 0 : index
    %65 = vector.load %arg2[%c8, %c0_37, %c0_38] : memref<9x8x1xf32, #tpu.memory_space<vmem>>, vector<1x8x1xf32>
    %66 = vector.shape_cast %65 : vector<1x8x1xf32> to vector<8x1xf32>
    %67 = vector.broadcast %66 : vector<8x1xf32> to vector<8x288xf32>
    %68 = vector.broadcast %64 : vector<1x288xf32> to vector<8x288xf32>
    %69 = arith.mulf %67, %68 : vector<8x288xf32>
    %70 = arith.addf %62, %69 : vector<8x288xf32>
    %c0_39 = arith.constant 0 : index
    %c0_40 = arith.constant 0 : index
    %71 = vector.load %arg3[%c0_39, %c0_40] : memref<8x1xf32, #tpu.memory_space<vmem>>, vector<8x1xf32>
    %72 = vector.broadcast %71 : vector<8x1xf32> to vector<8x288xf32>
    %73 = arith.mulf %70, %72 : vector<8x288xf32>
    %c0_41 = arith.constant 0 : index
    %c0_42 = arith.constant 0 : index
    %74 = vector.load %arg4[%c0_41, %c0_42] : memref<8x1xf32, #tpu.memory_space<vmem>>, vector<8x1xf32>
    %75 = vector.broadcast %74 : vector<8x1xf32> to vector<8x288xf32>
    %76 = arith.addf %73, %75 : vector<8x288xf32>
    %cst = arith.constant 0.000000e+00 : f32
    %77 = vector.broadcast %cst : f32 to vector<8x288xf32>
    %78 = arith.maximumf %76, %77 : vector<8x288xf32>
    %79 = tpu.iota {dimensions = array<i32: 1>} : vector<1x288xi32>
    %c18_i32 = arith.constant 18 : i32
    %c0_i32 = arith.constant 0 : i32
    %80 = arith.cmpi eq, %c18_i32, %c0_i32 : i32
    %c1_i32 = arith.constant 1 : i32
    %81 = arith.select %80, %c1_i32, %c18_i32 : i32
    %82 = vector.broadcast %81 : i32 to vector<1x288xi32>
    %83 = arith.remsi %79, %82 : vector<1x288xi32>
    %c0_i32_43 = arith.constant 0 : i32
    %84 = vector.broadcast %c0_i32_43 : i32 to vector<1x288xi32>
    %85 = arith.cmpi ne, %83, %84 : vector<1x288xi32>
    %c0_i32_44 = arith.constant 0 : i32
    %86 = vector.broadcast %c0_i32_44 : i32 to vector<1x288xi32>
    %87 = arith.cmpi slt, %83, %86 : vector<1x288xi32>
    %c0_i32_45 = arith.constant 0 : i32
    %88 = arith.cmpi slt, %81, %c0_i32_45 : i32
    %89 = vector.broadcast %88 : i1 to vector<1x288xi1>
    %90 = vector.broadcast %89 : vector<1x288xi1> to vector<1x288xi1>
    %91 = arith.xori %87, %90 : vector<1x288xi1>
    %92 = arith.andi %91, %85 : vector<1x288xi1>
    %93 = vector.broadcast %81 : i32 to vector<1x288xi32>
    %94 = arith.addi %83, %93 : vector<1x288xi32>
    %95 = arith.select %92, %94, %83 : vector<1x288xi1>, vector<1x288xi32>
    %c16_i32 = arith.constant 16 : i32
    %96 = vector.broadcast %c16_i32 : i32 to vector<1x288xi32>
    %97 = arith.cmpi slt, %95, %96 : vector<1x288xi32>
    %cst_46 = arith.constant 0.000000e+00 : f32
    %98 = vector.shape_cast %97 : vector<1x288xi1> to vector<1x288xi1>
    %99 = vector.broadcast %98 : vector<1x288xi1> to vector<8x288xi1>
    %100 = vector.broadcast %cst_46 : f32 to vector<8x288xf32>
    %101 = arith.select %99, %78, %100 : vector<8x288xi1>, vector<8x288xf32>
    %cst_47 = arith.constant 0.000000e+00 : f32
    %102 = vector.broadcast %cst_47 : f32 to vector<8x19xf32>
    %c0_48 = arith.constant 0 : index
    %c0_49 = arith.constant 0 : index
    %103 = vector.load %arg12[%c0_48, %c0_49] : memref<8x342xf32, #tpu.memory_space<vmem>>, vector<8x19xf32>
    tpu.vector_store %arg12[%c0_48, %c0_49], %102 {strides = array<i32>} : memref<8x342xf32, #tpu.memory_space<vmem>>, vector<8x19xf32>,
    %cst_50 = arith.constant 0.000000e+00 : f32
    %104 = vector.broadcast %cst_50 : f32 to vector<8x35xf32>
    %c0_51 = arith.constant 0 : index
    %c307 = arith.constant 307 : index
    %105 = vector.load %arg12[%c0_51, %c307] : memref<8x342xf32, #tpu.memory_space<vmem>>, vector<8x35xf32>
    tpu.vector_store %arg12[%c0_51, %c307], %104 {strides = array<i32>} : memref<8x342xf32, #tpu.memory_space<vmem>>, vector<8x35xf32>,
    %c0_52 = arith.constant 0 : index
    %c19_53 = arith.constant 19 : index
    %106 = vector.load %arg12[%c0_52, %c19_53] : memref<8x342xf32, #tpu.memory_space<vmem>>, vector<8x288xf32>
    tpu.vector_store %arg12[%c0_52, %c19_53], %101 {strides = array<i32>} : memref<8x342xf32, #tpu.memory_space<vmem>>, vector<8x288xf32>,
    %c0_54 = arith.constant 0 : index
    %c0_55 = arith.constant 0 : index
    %107 = vector.load %arg12[%c0_54, %c0_55] : memref<8x342xf32, #tpu.memory_space<vmem>>, vector<8x288xf32>
    %c0_56 = arith.constant 0 : index
    %c0_57 = arith.constant 0 : index
    %c0_58 = arith.constant 0 : index
    %108 = vector.load %arg5[%c0_56, %c0_57, %c0_58] : memref<9x8x8xf32, #tpu.memory_space<vmem>>, vector<1x8x8xf32>
    %109 = vector.shape_cast %108 : vector<1x8x8xf32> to vector<8x8xf32>
    %cst_59 = arith.constant dense<0.000000e+00> : vector<8x288xf32>
    %110 = tpu.matmul %109, %107, %cst_59 {dimension_numbers = #tpu.dot_dimension_numbers<[1], [0], [0], [1], [0, 0, 1, 1], [], []>} : vector<8x8xf32>, vector<8x288xf32>, vector<8x288xf32> -> vector<8x288xf32>
    %c0_60 = arith.constant 0 : index
    %c1_61 = arith.constant 1 : index
    %111 = vector.load %arg12[%c0_60, %c1_61] : memref<8x342xf32, #tpu.memory_space<vmem>>, vector<8x288xf32>
    %c1_62 = arith.constant 1 : index
    %c0_63 = arith.constant 0 : index
    %c0_64 = arith.constant 0 : index
    %112 = vector.load %arg5[%c1_62, %c0_63, %c0_64] : memref<9x8x8xf32, #tpu.memory_space<vmem>>, vector<1x8x8xf32>
    %113 = vector.shape_cast %112 : vector<1x8x8xf32> to vector<8x8xf32>
    %cst_65 = arith.constant dense<0.000000e+00> : vector<8x288xf32>
    %114 = tpu.matmul %113, %111, %cst_65 {dimension_numbers = #tpu.dot_dimension_numbers<[1], [0], [0], [1], [0, 0, 1, 1], [], []>} : vector<8x8xf32>, vector<8x288xf32>, vector<8x288xf32> -> vector<8x288xf32>
    %115 = arith.addf %110, %114 : vector<8x288xf32>
    %c0_66 = arith.constant 0 : index
    %c2_67 = arith.constant 2 : index
    %116 = vector.load %arg12[%c0_66, %c2_67] : memref<8x342xf32, #tpu.memory_space<vmem>>, vector<8x288xf32>
    %c2_68 = arith.constant 2 : index
    %c0_69 = arith.constant 0 : index
    %c0_70 = arith.constant 0 : index
    %117 = vector.load %arg5[%c2_68, %c0_69, %c0_70] : memref<9x8x8xf32, #tpu.memory_space<vmem>>, vector<1x8x8xf32>
    %118 = vector.shape_cast %117 : vector<1x8x8xf32> to vector<8x8xf32>
    %cst_71 = arith.constant dense<0.000000e+00> : vector<8x288xf32>
    %119 = tpu.matmul %118, %116, %cst_71 {dimension_numbers = #tpu.dot_dimension_numbers<[1], [0], [0], [1], [0, 0, 1, 1], [], []>} : vector<8x8xf32>, vector<8x288xf32>, vector<8x288xf32> -> vector<8x288xf32>
    %120 = arith.addf %115, %119 : vector<8x288xf32>
    %c0_72 = arith.constant 0 : index
    %c18_73 = arith.constant 18 : index
    %121 = vector.load %arg12[%c0_72, %c18_73] : memref<8x342xf32, #tpu.memory_space<vmem>>, vector<8x288xf32>
    %c3_74 = arith.constant 3 : index
    %c0_75 = arith.constant 0 : index
    %c0_76 = arith.constant 0 : index
    %122 = vector.load %arg5[%c3_74, %c0_75, %c0_76] : memref<9x8x8xf32, #tpu.memory_space<vmem>>, vector<1x8x8xf32>
    %123 = vector.shape_cast %122 : vector<1x8x8xf32> to vector<8x8xf32>
    %cst_77 = arith.constant dense<0.000000e+00> : vector<8x288xf32>
    %124 = tpu.matmul %123, %121, %cst_77 {dimension_numbers = #tpu.dot_dimension_numbers<[1], [0], [0], [1], [0, 0, 1, 1], [], []>} : vector<8x8xf32>, vector<8x288xf32>, vector<8x288xf32> -> vector<8x288xf32>
    %125 = arith.addf %120, %124 : vector<8x288xf32>
    %c0_78 = arith.constant 0 : index
    %c19_79 = arith.constant 19 : index
    %126 = vector.load %arg12[%c0_78, %c19_79] : memref<8x342xf32, #tpu.memory_space<vmem>>, vector<8x288xf32>
    %c4_80 = arith.constant 4 : index
    %c0_81 = arith.constant 0 : index
    %c0_82 = arith.constant 0 : index
    %127 = vector.load %arg5[%c4_80, %c0_81, %c0_82] : memref<9x8x8xf32, #tpu.memory_space<vmem>>, vector<1x8x8xf32>
    %128 = vector.shape_cast %127 : vector<1x8x8xf32> to vector<8x8xf32>
    %cst_83 = arith.constant dense<0.000000e+00> : vector<8x288xf32>
    %129 = tpu.matmul %128, %126, %cst_83 {dimension_numbers = #tpu.dot_dimension_numbers<[1], [0], [0], [1], [0, 0, 1, 1], [], []>} : vector<8x8xf32>, vector<8x288xf32>, vector<8x288xf32> -> vector<8x288xf32>
    %130 = arith.addf %125, %129 : vector<8x288xf32>
    %c0_84 = arith.constant 0 : index
    %c20_85 = arith.constant 20 : index
    %131 = vector.load %arg12[%c0_84, %c20_85] : memref<8x342xf32, #tpu.memory_space<vmem>>, vector<8x288xf32>
    %c5_86 = arith.constant 5 : index
    %c0_87 = arith.constant 0 : index
    %c0_88 = arith.constant 0 : index
    %132 = vector.load %arg5[%c5_86, %c0_87, %c0_88] : memref<9x8x8xf32, #tpu.memory_space<vmem>>, vector<1x8x8xf32>
    %133 = vector.shape_cast %132 : vector<1x8x8xf32> to vector<8x8xf32>
    %cst_89 = arith.constant dense<0.000000e+00> : vector<8x288xf32>
    %134 = tpu.matmul %133, %131, %cst_89 {dimension_numbers = #tpu.dot_dimension_numbers<[1], [0], [0], [1], [0, 0, 1, 1], [], []>} : vector<8x8xf32>, vector<8x288xf32>, vector<8x288xf32> -> vector<8x288xf32>
    %135 = arith.addf %130, %134 : vector<8x288xf32>
    %c0_90 = arith.constant 0 : index
    %c36_91 = arith.constant 36 : index
    %136 = vector.load %arg12[%c0_90, %c36_91] : memref<8x342xf32, #tpu.memory_space<vmem>>, vector<8x288xf32>
    %c6_92 = arith.constant 6 : index
    %c0_93 = arith.constant 0 : index
    %c0_94 = arith.constant 0 : index
    %137 = vector.load %arg5[%c6_92, %c0_93, %c0_94] : memref<9x8x8xf32, #tpu.memory_space<vmem>>, vector<1x8x8xf32>
    %138 = vector.shape_cast %137 : vector<1x8x8xf32> to vector<8x8xf32>
    %cst_95 = arith.constant dense<0.000000e+00> : vector<8x288xf32>
    %139 = tpu.matmul %138, %136, %cst_95 {dimension_numbers = #tpu.dot_dimension_numbers<[1], [0], [0], [1], [0, 0, 1, 1], [], []>} : vector<8x8xf32>, vector<8x288xf32>, vector<8x288xf32> -> vector<8x288xf32>
    %140 = arith.addf %135, %139 : vector<8x288xf32>
    %c0_96 = arith.constant 0 : index
    %c37_97 = arith.constant 37 : index
    %141 = vector.load %arg12[%c0_96, %c37_97] : memref<8x342xf32, #tpu.memory_space<vmem>>, vector<8x288xf32>
    %c7_98 = arith.constant 7 : index
    %c0_99 = arith.constant 0 : index
    %c0_100 = arith.constant 0 : index
    %142 = vector.load %arg5[%c7_98, %c0_99, %c0_100] : memref<9x8x8xf32, #tpu.memory_space<vmem>>, vector<1x8x8xf32>
    %143 = vector.shape_cast %142 : vector<1x8x8xf32> to vector<8x8xf32>
    %cst_101 = arith.constant dense<0.000000e+00> : vector<8x288xf32>
    %144 = tpu.matmul %143, %141, %cst_101 {dimension_numbers = #tpu.dot_dimension_numbers<[1], [0], [0], [1], [0, 0, 1, 1], [], []>} : vector<8x8xf32>, vector<8x288xf32>, vector<8x288xf32> -> vector<8x288xf32>
    %145 = arith.addf %140, %144 : vector<8x288xf32>
    %c0_102 = arith.constant 0 : index
    %c38_103 = arith.constant 38 : index
    %146 = vector.load %arg12[%c0_102, %c38_103] : memref<8x342xf32, #tpu.memory_space<vmem>>, vector<8x288xf32>
    %c8_104 = arith.constant 8 : index
    %c0_105 = arith.constant 0 : index
    %c0_106 = arith.constant 0 : index
    %147 = vector.load %arg5[%c8_104, %c0_105, %c0_106] : memref<9x8x8xf32, #tpu.memory_space<vmem>>, vector<1x8x8xf32>
    %148 = vector.shape_cast %147 : vector<1x8x8xf32> to vector<8x8xf32>
    %cst_107 = arith.constant dense<0.000000e+00> : vector<8x288xf32>
    %149 = tpu.matmul %148, %146, %cst_107 {dimension_numbers = #tpu.dot_dimension_numbers<[1], [0], [0], [1], [0, 0, 1, 1], [], []>} : vector<8x8xf32>, vector<8x288xf32>, vector<8x288xf32> -> vector<8x288xf32>
    %150 = arith.addf %145, %149 : vector<8x288xf32>
    %c0_108 = arith.constant 0 : index
    %c0_109 = arith.constant 0 : index
    %151 = vector.load %arg6[%c0_108, %c0_109] : memref<8x1xf32, #tpu.memory_space<vmem>>, vector<8x1xf32>
    %152 = vector.broadcast %151 : vector<8x1xf32> to vector<8x288xf32>
    %153 = arith.mulf %150, %152 : vector<8x288xf32>
    %c0_110 = arith.constant 0 : index
    %c0_111 = arith.constant 0 : index
    %154 = vector.load %arg7[%c0_110, %c0_111] : memref<8x1xf32, #tpu.memory_space<vmem>>, vector<8x1xf32>
    %155 = vector.broadcast %154 : vector<8x1xf32> to vector<8x288xf32>
    %156 = arith.addf %153, %155 : vector<8x288xf32>
    %cst_112 = arith.constant 0.000000e+00 : f32
    %157 = vector.broadcast %cst_112 : f32 to vector<8x288xf32>
    %158 = arith.maximumf %156, %157 : vector<8x288xf32>
    %c0_113 = arith.constant 0 : index
    %c0_114 = arith.constant 0 : index
    %159 = vector.load %arg8[%c0_113, %c0_114] : memref<288x256xf32, #tpu.memory_space<vmem>>, vector<288x256xf32>
    %cst_115 = arith.constant dense<0.000000e+00> : vector<8x256xf32>
    %160 = tpu.matmul %158, %159, %cst_115 {dimension_numbers = #tpu.dot_dimension_numbers<[1], [0], [0], [1], [0, 0, 1, 1], [], []>} : vector<8x288xf32>, vector<288x256xf32>, vector<8x256xf32> -> vector<8x256xf32>
    %c0_116 = arith.constant 0 : index
    %c0_117 = arith.constant 0 : index
    %c0_118 = arith.constant 0 : index
    %161 = vector.load %arg10[%c0_116, %c0_117, %c0_118] : memref<1x8x256xf32, #tpu.memory_space<vmem>>, vector<1x8x256xf32>
    %162 = vector.shape_cast %161 : vector<1x8x256xf32> to vector<8x256xf32>
    %163 = vector.shape_cast %160 : vector<8x256xf32> to vector<1x8x256xf32>
    tpu.vector_store %arg10[%c0_116, %c0_117, %c0_118], %163 {strides = array<i32>} : memref<1x8x256xf32, #tpu.memory_space<vmem>>, vector<1x8x256xf32>,
    %c0_119 = arith.constant 0 : index
    %c0_120 = arith.constant 0 : index
    %c0_121 = arith.constant 0 : index
    %164 = vector.load %arg9[%c0_119, %c0_120, %c0_121] : memref<4x288x110xf32, #tpu.memory_space<vmem>>, vector<1x288x110xf32>
    %165 = vector.shape_cast %164 : vector<1x288x110xf32> to vector<288x110xf32>
    %cst_122 = arith.constant dense<0.000000e+00> : vector<8x110xf32>
    %166 = tpu.matmul %158, %165, %cst_122 {dimension_numbers = #tpu.dot_dimension_numbers<[1], [0], [0], [1], [0, 0, 1, 1], [], []>} : vector<8x288xf32>, vector<288x110xf32>, vector<8x110xf32> -> vector<8x110xf32>
    %c1_123 = arith.constant 1 : index
    %c0_124 = arith.constant 0 : index
    %c0_125 = arith.constant 0 : index
    %167 = vector.load %arg9[%c1_123, %c0_124, %c0_125] : memref<4x288x110xf32, #tpu.memory_space<vmem>>, vector<1x288x110xf32>
    %168 = vector.shape_cast %167 : vector<1x288x110xf32> to vector<288x110xf32>
    %cst_126 = arith.constant dense<0.000000e+00> : vector<8x110xf32>
    %169 = tpu.matmul %158, %168, %cst_126 {dimension_numbers = #tpu.dot_dimension_numbers<[1], [0], [0], [1], [0, 0, 1, 1], [], []>} : vector<8x288xf32>, vector<288x110xf32>, vector<8x110xf32> -> vector<8x110xf32>
    %170 = arith.maximumf %166, %169 : vector<8x110xf32>
    %c2_127 = arith.constant 2 : index
    %c0_128 = arith.constant 0 : index
    %c0_129 = arith.constant 0 : index
    %171 = vector.load %arg9[%c2_127, %c0_128, %c0_129] : memref<4x288x110xf32, #tpu.memory_space<vmem>>, vector<1x288x110xf32>
    %172 = vector.shape_cast %171 : vector<1x288x110xf32> to vector<288x110xf32>
    %cst_130 = arith.constant dense<0.000000e+00> : vector<8x110xf32>
    %173 = tpu.matmul %158, %172, %cst_130 {dimension_numbers = #tpu.dot_dimension_numbers<[1], [0], [0], [1], [0, 0, 1, 1], [], []>} : vector<8x288xf32>, vector<288x110xf32>, vector<8x110xf32> -> vector<8x110xf32>
    %174 = arith.maximumf %170, %173 : vector<8x110xf32>
    %c3_131 = arith.constant 3 : index
    %c0_132 = arith.constant 0 : index
    %c0_133 = arith.constant 0 : index
    %175 = vector.load %arg9[%c3_131, %c0_132, %c0_133] : memref<4x288x110xf32, #tpu.memory_space<vmem>>, vector<1x288x110xf32>
    %176 = vector.shape_cast %175 : vector<1x288x110xf32> to vector<288x110xf32>
    %cst_134 = arith.constant dense<0.000000e+00> : vector<8x110xf32>
    %177 = tpu.matmul %158, %176, %cst_134 {dimension_numbers = #tpu.dot_dimension_numbers<[1], [0], [0], [1], [0, 0, 1, 1], [], []>} : vector<8x288xf32>, vector<288x110xf32>, vector<8x110xf32> -> vector<8x110xf32>
    %178 = arith.maximumf %174, %177 : vector<8x110xf32>
    %c0_135 = arith.constant 0 : index
    %c0_136 = arith.constant 0 : index
    %c0_137 = arith.constant 0 : index
    %179 = vector.load %arg11[%c0_135, %c0_136, %c0_137] : memref<1x8x110xf32, #tpu.memory_space<vmem>>, vector<1x8x110xf32>
    %180 = vector.shape_cast %179 : vector<1x8x110xf32> to vector<8x110xf32>
    %181 = vector.shape_cast %178 : vector<8x110xf32> to vector<1x8x110xf32>
    tpu.vector_store %arg11[%c0_135, %c0_136, %c0_137], %181 {strides = array<i32>} : memref<1x8x110xf32, #tpu.memory_space<vmem>>, vector<1x8x110xf32>,
    return
  }
  func.func @transform_0(%arg0: i32) -> (i32, i32, i32) {
    %c0_i32 = arith.constant 0 : i32
    %c0_i32_0 = arith.constant 0 : i32
    %c0_i32_1 = arith.constant 0 : i32
    return %arg0, %c0_i32, %c0_i32_0 : i32, i32, i32
  }
  func.func @transform_1(%arg0: i32) -> (i32, i32, i32) {
    %c0_i32 = arith.constant 0 : i32
    %c0_i32_0 = arith.constant 0 : i32
    %c0_i32_1 = arith.constant 0 : i32
    %c0_i32_2 = arith.constant 0 : i32
    return %c0_i32, %c0_i32_0, %c0_i32_1 : i32, i32, i32
  }
  func.func @transform_2(%arg0: i32) -> (i32, i32) {
    %c0_i32 = arith.constant 0 : i32
    %c0_i32_0 = arith.constant 0 : i32
    %c0_i32_1 = arith.constant 0 : i32
    return %c0_i32, %c0_i32_0 : i32, i32
  }
  func.func @transform_3(%arg0: i32) -> (i32, i32) {
    %c0_i32 = arith.constant 0 : i32
    %c0_i32_0 = arith.constant 0 : i32
    %c0_i32_1 = arith.constant 0 : i32
    return %c0_i32, %c0_i32_0 : i32, i32
  }
  func.func @transform_4(%arg0: i32) -> (i32, i32, i32) {
    %c0_i32 = arith.constant 0 : i32
    %c0_i32_0 = arith.constant 0 : i32
    %c0_i32_1 = arith.constant 0 : i32
    %c0_i32_2 = arith.constant 0 : i32
    return %c0_i32, %c0_i32_0, %c0_i32_1 : i32, i32, i32
  }
  func.func @transform_5(%arg0: i32) -> (i32, i32) {
    %c0_i32 = arith.constant 0 : i32
    %c0_i32_0 = arith.constant 0 : i32
    %c0_i32_1 = arith.constant 0 : i32
    return %c0_i32, %c0_i32_0 : i32, i32
  }
  func.func @transform_6(%arg0: i32) -> (i32, i32) {
    %c0_i32 = arith.constant 0 : i32
    %c0_i32_0 = arith.constant 0 : i32
    %c0_i32_1 = arith.constant 0 : i32
    return %c0_i32, %c0_i32_0 : i32, i32
  }
  func.func @transform_7(%arg0: i32) -> (i32, i32) {
    %c0_i32 = arith.constant 0 : i32
    %c0_i32_0 = arith.constant 0 : i32
    %c0_i32_1 = arith.constant 0 : i32
    return %c0_i32, %c0_i32_0 : i32, i32
  }
  func.func @transform_8(%arg0: i32) -> (i32, i32, i32) {
    %c0_i32 = arith.constant 0 : i32
    %c0_i32_0 = arith.constant 0 : i32
    %c0_i32_1 = arith.constant 0 : i32
    %c0_i32_2 = arith.constant 0 : i32
    return %c0_i32, %c0_i32_0, %c0_i32_1 : i32, i32, i32
  }
  func.func @transform_9(%arg0: i32) -> (i32, i32, i32) {
    %c0_i32 = arith.constant 0 : i32
    %c0_i32_0 = arith.constant 0 : i32
    %c0_i32_1 = arith.constant 0 : i32
    return %arg0, %c0_i32, %c0_i32_0 : i32, i32, i32
  }
  func.func @transform_10(%arg0: i32) -> (i32, i32, i32) {
    %c0_i32 = arith.constant 0 : i32
    %c0_i32_0 = arith.constant 0 : i32
    %c0_i32_1 = arith.constant 0 : i32
    return %arg0, %c0_i32, %c0_i32_0 : i32, i32, i32
  }
}

module attributes {stable_mosaic.version = 11 : i64} {
  func.func @kernel(%arg0: i32, %arg1: memref<1x8x110xf32, #tpu.memory_space<vmem>>, %arg2: memref<9x16x8xf32, #tpu.memory_space<vmem>>, %arg3: memref<16x1xf32, #tpu.memory_space<vmem>>, %arg4: memref<16x1xf32, #tpu.memory_space<vmem>>, %arg5: memref<9x16x16xf32, #tpu.memory_space<vmem>>, %arg6: memref<16x1xf32, #tpu.memory_space<vmem>>, %arg7: memref<16x1xf32, #tpu.memory_space<vmem>>, %arg8: memref<80x64xf32, #tpu.memory_space<vmem>>, %arg9: memref<4x80x42xf32, #tpu.memory_space<vmem>>, %arg10: memref<1x16x64xf32, #tpu.memory_space<vmem>>, %arg11: memref<1x16x42xf32, #tpu.memory_space<vmem>>, %arg12: memref<16x110xf32, #tpu.memory_space<vmem>>) attributes {dimension_semantics = [#tpu.dimension_semantics<parallel>], iteration_bounds = array<i64: 2>, scalar_prefetch = 0 : i64, scratch_operands = 1 : i64, tpu.core_type = #tpu.core_type<tc>, window_params = [{transform_indices = @transform_0, window_bounds = array<i64: 1, 8, 110>}, {pipeline_mode = #tpu.pipeline_mode<synchronous>, transform_indices = @transform_1, window_bounds = array<i64: 9, 16, 8>}, {pipeline_mode = #tpu.pipeline_mode<synchronous>, transform_indices = @transform_2, window_bounds = array<i64: 16, 1>}, {pipeline_mode = #tpu.pipeline_mode<synchronous>, transform_indices = @transform_3, window_bounds = array<i64: 16, 1>}, {pipeline_mode = #tpu.pipeline_mode<synchronous>, transform_indices = @transform_4, window_bounds = array<i64: 9, 16, 16>}, {pipeline_mode = #tpu.pipeline_mode<synchronous>, transform_indices = @transform_5, window_bounds = array<i64: 16, 1>}, {pipeline_mode = #tpu.pipeline_mode<synchronous>, transform_indices = @transform_6, window_bounds = array<i64: 16, 1>}, {pipeline_mode = #tpu.pipeline_mode<synchronous>, transform_indices = @transform_7, window_bounds = array<i64: 80, 64>}, {pipeline_mode = #tpu.pipeline_mode<synchronous>, transform_indices = @transform_8, window_bounds = array<i64: 4, 80, 42>}, {transform_indices = @transform_9, window_bounds = array<i64: 1, 16, 64>}, {transform_indices = @transform_10, window_bounds = array<i64: 1, 16, 42>}]} {
    %c0 = arith.constant 0 : index
    %c0_0 = arith.constant 0 : index
    %c0_1 = arith.constant 0 : index
    %0 = vector.load %arg1[%c0, %c0_0, %c0_1] : memref<1x8x110xf32, #tpu.memory_space<vmem>>, vector<1x8x80xf32>
    %1 = vector.shape_cast %0 : vector<1x8x80xf32> to vector<8x80xf32>
    %c0_2 = arith.constant 0 : index
    %c0_3 = arith.constant 0 : index
    %c0_4 = arith.constant 0 : index
    %2 = vector.load %arg2[%c0_2, %c0_3, %c0_4] : memref<9x16x8xf32, #tpu.memory_space<vmem>>, vector<1x16x8xf32>
    %3 = vector.shape_cast %2 : vector<1x16x8xf32> to vector<16x8xf32>
    %cst = arith.constant dense<0.000000e+00> : vector<16x80xf32>
    %4 = tpu.matmul %3, %1, %cst {dimension_numbers = #tpu.dot_dimension_numbers<[1], [0], [0], [1], [0, 0, 1, 1], [], []>} : vector<16x8xf32>, vector<8x80xf32>, vector<16x80xf32> -> vector<16x80xf32>
    %c0_5 = arith.constant 0 : index
    %c0_6 = arith.constant 0 : index
    %c1 = arith.constant 1 : index
    %5 = vector.load %arg1[%c0_5, %c0_6, %c1] : memref<1x8x110xf32, #tpu.memory_space<vmem>>, vector<1x8x80xf32>
    %6 = vector.shape_cast %5 : vector<1x8x80xf32> to vector<8x80xf32>
    %c1_7 = arith.constant 1 : index
    %c0_8 = arith.constant 0 : index
    %c0_9 = arith.constant 0 : index
    %7 = vector.load %arg2[%c1_7, %c0_8, %c0_9] : memref<9x16x8xf32, #tpu.memory_space<vmem>>, vector<1x16x8xf32>
    %8 = vector.shape_cast %7 : vector<1x16x8xf32> to vector<16x8xf32>
    %cst_10 = arith.constant dense<0.000000e+00> : vector<16x80xf32>
    %9 = tpu.matmul %8, %6, %cst_10 {dimension_numbers = #tpu.dot_dimension_numbers<[1], [0], [0], [1], [0, 0, 1, 1], [], []>} : vector<16x8xf32>, vector<8x80xf32>, vector<16x80xf32> -> vector<16x80xf32>
    %10 = arith.addf %4, %9 : vector<16x80xf32>
    %c0_11 = arith.constant 0 : index
    %c0_12 = arith.constant 0 : index
    %c2 = arith.constant 2 : index
    %11 = vector.load %arg1[%c0_11, %c0_12, %c2] : memref<1x8x110xf32, #tpu.memory_space<vmem>>, vector<1x8x80xf32>
    %12 = vector.shape_cast %11 : vector<1x8x80xf32> to vector<8x80xf32>
    %c2_13 = arith.constant 2 : index
    %c0_14 = arith.constant 0 : index
    %c0_15 = arith.constant 0 : index
    %13 = vector.load %arg2[%c2_13, %c0_14, %c0_15] : memref<9x16x8xf32, #tpu.memory_space<vmem>>, vector<1x16x8xf32>
    %14 = vector.shape_cast %13 : vector<1x16x8xf32> to vector<16x8xf32>
    %cst_16 = arith.constant dense<0.000000e+00> : vector<16x80xf32>
    %15 = tpu.matmul %14, %12, %cst_16 {dimension_numbers = #tpu.dot_dimension_numbers<[1], [0], [0], [1], [0, 0, 1, 1], [], []>} : vector<16x8xf32>, vector<8x80xf32>, vector<16x80xf32> -> vector<16x80xf32>
    %16 = arith.addf %10, %15 : vector<16x80xf32>
    %c0_17 = arith.constant 0 : index
    %c0_18 = arith.constant 0 : index
    %c10 = arith.constant 10 : index
    %17 = vector.load %arg1[%c0_17, %c0_18, %c10] : memref<1x8x110xf32, #tpu.memory_space<vmem>>, vector<1x8x80xf32>
    %18 = vector.shape_cast %17 : vector<1x8x80xf32> to vector<8x80xf32>
    %c3 = arith.constant 3 : index
    %c0_19 = arith.constant 0 : index
    %c0_20 = arith.constant 0 : index
    %19 = vector.load %arg2[%c3, %c0_19, %c0_20] : memref<9x16x8xf32, #tpu.memory_space<vmem>>, vector<1x16x8xf32>
    %20 = vector.shape_cast %19 : vector<1x16x8xf32> to vector<16x8xf32>
    %cst_21 = arith.constant dense<0.000000e+00> : vector<16x80xf32>
    %21 = tpu.matmul %20, %18, %cst_21 {dimension_numbers = #tpu.dot_dimension_numbers<[1], [0], [0], [1], [0, 0, 1, 1], [], []>} : vector<16x8xf32>, vector<8x80xf32>, vector<16x80xf32> -> vector<16x80xf32>
    %22 = arith.addf %16, %21 : vector<16x80xf32>
    %c0_22 = arith.constant 0 : index
    %c0_23 = arith.constant 0 : index
    %c11 = arith.constant 11 : index
    %23 = vector.load %arg1[%c0_22, %c0_23, %c11] : memref<1x8x110xf32, #tpu.memory_space<vmem>>, vector<1x8x80xf32>
    %24 = vector.shape_cast %23 : vector<1x8x80xf32> to vector<8x80xf32>
    %c4 = arith.constant 4 : index
    %c0_24 = arith.constant 0 : index
    %c0_25 = arith.constant 0 : index
    %25 = vector.load %arg2[%c4, %c0_24, %c0_25] : memref<9x16x8xf32, #tpu.memory_space<vmem>>, vector<1x16x8xf32>
    %26 = vector.shape_cast %25 : vector<1x16x8xf32> to vector<16x8xf32>
    %cst_26 = arith.constant dense<0.000000e+00> : vector<16x80xf32>
    %27 = tpu.matmul %26, %24, %cst_26 {dimension_numbers = #tpu.dot_dimension_numbers<[1], [0], [0], [1], [0, 0, 1, 1], [], []>} : vector<16x8xf32>, vector<8x80xf32>, vector<16x80xf32> -> vector<16x80xf32>
    %28 = arith.addf %22, %27 : vector<16x80xf32>
    %c0_27 = arith.constant 0 : index
    %c0_28 = arith.constant 0 : index
    %c12 = arith.constant 12 : index
    %29 = vector.load %arg1[%c0_27, %c0_28, %c12] : memref<1x8x110xf32, #tpu.memory_space<vmem>>, vector<1x8x80xf32>
    %30 = vector.shape_cast %29 : vector<1x8x80xf32> to vector<8x80xf32>
    %c5 = arith.constant 5 : index
    %c0_29 = arith.constant 0 : index
    %c0_30 = arith.constant 0 : index
    %31 = vector.load %arg2[%c5, %c0_29, %c0_30] : memref<9x16x8xf32, #tpu.memory_space<vmem>>, vector<1x16x8xf32>
    %32 = vector.shape_cast %31 : vector<1x16x8xf32> to vector<16x8xf32>
    %cst_31 = arith.constant dense<0.000000e+00> : vector<16x80xf32>
    %33 = tpu.matmul %32, %30, %cst_31 {dimension_numbers = #tpu.dot_dimension_numbers<[1], [0], [0], [1], [0, 0, 1, 1], [], []>} : vector<16x8xf32>, vector<8x80xf32>, vector<16x80xf32> -> vector<16x80xf32>
    %34 = arith.addf %28, %33 : vector<16x80xf32>
    %c0_32 = arith.constant 0 : index
    %c0_33 = arith.constant 0 : index
    %c20 = arith.constant 20 : index
    %35 = vector.load %arg1[%c0_32, %c0_33, %c20] : memref<1x8x110xf32, #tpu.memory_space<vmem>>, vector<1x8x80xf32>
    %36 = vector.shape_cast %35 : vector<1x8x80xf32> to vector<8x80xf32>
    %c6 = arith.constant 6 : index
    %c0_34 = arith.constant 0 : index
    %c0_35 = arith.constant 0 : index
    %37 = vector.load %arg2[%c6, %c0_34, %c0_35] : memref<9x16x8xf32, #tpu.memory_space<vmem>>, vector<1x16x8xf32>
    %38 = vector.shape_cast %37 : vector<1x16x8xf32> to vector<16x8xf32>
    %cst_36 = arith.constant dense<0.000000e+00> : vector<16x80xf32>
    %39 = tpu.matmul %38, %36, %cst_36 {dimension_numbers = #tpu.dot_dimension_numbers<[1], [0], [0], [1], [0, 0, 1, 1], [], []>} : vector<16x8xf32>, vector<8x80xf32>, vector<16x80xf32> -> vector<16x80xf32>
    %40 = arith.addf %34, %39 : vector<16x80xf32>
    %c0_37 = arith.constant 0 : index
    %c0_38 = arith.constant 0 : index
    %c21 = arith.constant 21 : index
    %41 = vector.load %arg1[%c0_37, %c0_38, %c21] : memref<1x8x110xf32, #tpu.memory_space<vmem>>, vector<1x8x80xf32>
    %42 = vector.shape_cast %41 : vector<1x8x80xf32> to vector<8x80xf32>
    %c7 = arith.constant 7 : index
    %c0_39 = arith.constant 0 : index
    %c0_40 = arith.constant 0 : index
    %43 = vector.load %arg2[%c7, %c0_39, %c0_40] : memref<9x16x8xf32, #tpu.memory_space<vmem>>, vector<1x16x8xf32>
    %44 = vector.shape_cast %43 : vector<1x16x8xf32> to vector<16x8xf32>
    %cst_41 = arith.constant dense<0.000000e+00> : vector<16x80xf32>
    %45 = tpu.matmul %44, %42, %cst_41 {dimension_numbers = #tpu.dot_dimension_numbers<[1], [0], [0], [1], [0, 0, 1, 1], [], []>} : vector<16x8xf32>, vector<8x80xf32>, vector<16x80xf32> -> vector<16x80xf32>
    %46 = arith.addf %40, %45 : vector<16x80xf32>
    %c0_42 = arith.constant 0 : index
    %c0_43 = arith.constant 0 : index
    %c22 = arith.constant 22 : index
    %47 = vector.load %arg1[%c0_42, %c0_43, %c22] : memref<1x8x110xf32, #tpu.memory_space<vmem>>, vector<1x8x80xf32>
    %48 = vector.shape_cast %47 : vector<1x8x80xf32> to vector<8x80xf32>
    %c8 = arith.constant 8 : index
    %c0_44 = arith.constant 0 : index
    %c0_45 = arith.constant 0 : index
    %49 = vector.load %arg2[%c8, %c0_44, %c0_45] : memref<9x16x8xf32, #tpu.memory_space<vmem>>, vector<1x16x8xf32>
    %50 = vector.shape_cast %49 : vector<1x16x8xf32> to vector<16x8xf32>
    %cst_46 = arith.constant dense<0.000000e+00> : vector<16x80xf32>
    %51 = tpu.matmul %50, %48, %cst_46 {dimension_numbers = #tpu.dot_dimension_numbers<[1], [0], [0], [1], [0, 0, 1, 1], [], []>} : vector<16x8xf32>, vector<8x80xf32>, vector<16x80xf32> -> vector<16x80xf32>
    %52 = arith.addf %46, %51 : vector<16x80xf32>
    %c0_47 = arith.constant 0 : index
    %c0_48 = arith.constant 0 : index
    %53 = vector.load %arg3[%c0_47, %c0_48] : memref<16x1xf32, #tpu.memory_space<vmem>>, vector<16x1xf32>
    %54 = vector.broadcast %53 : vector<16x1xf32> to vector<16x80xf32>
    %55 = arith.mulf %52, %54 : vector<16x80xf32>
    %c0_49 = arith.constant 0 : index
    %c0_50 = arith.constant 0 : index
    %56 = vector.load %arg4[%c0_49, %c0_50] : memref<16x1xf32, #tpu.memory_space<vmem>>, vector<16x1xf32>
    %57 = vector.broadcast %56 : vector<16x1xf32> to vector<16x80xf32>
    %58 = arith.addf %55, %57 : vector<16x80xf32>
    %cst_51 = arith.constant 0.000000e+00 : f32
    %59 = vector.broadcast %cst_51 : f32 to vector<16x80xf32>
    %60 = arith.maximumf %58, %59 : vector<16x80xf32>
    %61 = tpu.iota {dimensions = array<i32: 1>} : vector<1x80xi32>
    %c10_i32 = arith.constant 10 : i32
    %c0_i32 = arith.constant 0 : i32
    %62 = arith.cmpi eq, %c10_i32, %c0_i32 : i32
    %c1_i32 = arith.constant 1 : i32
    %63 = arith.select %62, %c1_i32, %c10_i32 : i32
    %64 = vector.broadcast %63 : i32 to vector<1x80xi32>
    %65 = arith.remsi %61, %64 : vector<1x80xi32>
    %c0_i32_52 = arith.constant 0 : i32
    %66 = vector.broadcast %c0_i32_52 : i32 to vector<1x80xi32>
    %67 = arith.cmpi ne, %65, %66 : vector<1x80xi32>
    %c0_i32_53 = arith.constant 0 : i32
    %68 = vector.broadcast %c0_i32_53 : i32 to vector<1x80xi32>
    %69 = arith.cmpi slt, %65, %68 : vector<1x80xi32>
    %c0_i32_54 = arith.constant 0 : i32
    %70 = arith.cmpi slt, %63, %c0_i32_54 : i32
    %71 = vector.broadcast %70 : i1 to vector<1x80xi1>
    %72 = vector.broadcast %71 : vector<1x80xi1> to vector<1x80xi1>
    %73 = arith.xori %69, %72 : vector<1x80xi1>
    %74 = arith.andi %73, %67 : vector<1x80xi1>
    %75 = vector.broadcast %63 : i32 to vector<1x80xi32>
    %76 = arith.addi %65, %75 : vector<1x80xi32>
    %77 = arith.select %74, %76, %65 : vector<1x80xi1>, vector<1x80xi32>
    %c8_i32 = arith.constant 8 : i32
    %78 = vector.broadcast %c8_i32 : i32 to vector<1x80xi32>
    %79 = arith.cmpi slt, %77, %78 : vector<1x80xi32>
    %cst_55 = arith.constant 0.000000e+00 : f32
    %80 = vector.shape_cast %79 : vector<1x80xi1> to vector<1x80xi1>
    %81 = vector.broadcast %80 : vector<1x80xi1> to vector<16x80xi1>
    %82 = vector.broadcast %cst_55 : f32 to vector<16x80xf32>
    %83 = arith.select %81, %60, %82 : vector<16x80xi1>, vector<16x80xf32>
    %cst_56 = arith.constant 0.000000e+00 : f32
    %84 = vector.broadcast %cst_56 : f32 to vector<16x11xf32>
    %c0_57 = arith.constant 0 : index
    %c0_58 = arith.constant 0 : index
    %85 = vector.load %arg12[%c0_57, %c0_58] : memref<16x110xf32, #tpu.memory_space<vmem>>, vector<16x11xf32>
    tpu.vector_store %arg12[%c0_57, %c0_58], %84 {strides = array<i32>} : memref<16x110xf32, #tpu.memory_space<vmem>>, vector<16x11xf32>,
    %cst_59 = arith.constant 0.000000e+00 : f32
    %86 = vector.broadcast %cst_59 : f32 to vector<16x19xf32>
    %c0_60 = arith.constant 0 : index
    %c91 = arith.constant 91 : index
    %87 = vector.load %arg12[%c0_60, %c91] : memref<16x110xf32, #tpu.memory_space<vmem>>, vector<16x19xf32>
    tpu.vector_store %arg12[%c0_60, %c91], %86 {strides = array<i32>} : memref<16x110xf32, #tpu.memory_space<vmem>>, vector<16x19xf32>,
    %c0_61 = arith.constant 0 : index
    %c11_62 = arith.constant 11 : index
    %88 = vector.load %arg12[%c0_61, %c11_62] : memref<16x110xf32, #tpu.memory_space<vmem>>, vector<16x80xf32>
    tpu.vector_store %arg12[%c0_61, %c11_62], %83 {strides = array<i32>} : memref<16x110xf32, #tpu.memory_space<vmem>>, vector<16x80xf32>,
    %c0_63 = arith.constant 0 : index
    %c0_64 = arith.constant 0 : index
    %89 = vector.load %arg12[%c0_63, %c0_64] : memref<16x110xf32, #tpu.memory_space<vmem>>, vector<16x80xf32>
    %c0_65 = arith.constant 0 : index
    %c0_66 = arith.constant 0 : index
    %c0_67 = arith.constant 0 : index
    %90 = vector.load %arg5[%c0_65, %c0_66, %c0_67] : memref<9x16x16xf32, #tpu.memory_space<vmem>>, vector<1x16x16xf32>
    %91 = vector.shape_cast %90 : vector<1x16x16xf32> to vector<16x16xf32>
    %cst_68 = arith.constant dense<0.000000e+00> : vector<16x80xf32>
    %92 = tpu.matmul %91, %89, %cst_68 {dimension_numbers = #tpu.dot_dimension_numbers<[1], [0], [0], [1], [0, 0, 1, 1], [], []>} : vector<16x16xf32>, vector<16x80xf32>, vector<16x80xf32> -> vector<16x80xf32>
    %c0_69 = arith.constant 0 : index
    %c1_70 = arith.constant 1 : index
    %93 = vector.load %arg12[%c0_69, %c1_70] : memref<16x110xf32, #tpu.memory_space<vmem>>, vector<16x80xf32>
    %c1_71 = arith.constant 1 : index
    %c0_72 = arith.constant 0 : index
    %c0_73 = arith.constant 0 : index
    %94 = vector.load %arg5[%c1_71, %c0_72, %c0_73] : memref<9x16x16xf32, #tpu.memory_space<vmem>>, vector<1x16x16xf32>
    %95 = vector.shape_cast %94 : vector<1x16x16xf32> to vector<16x16xf32>
    %cst_74 = arith.constant dense<0.000000e+00> : vector<16x80xf32>
    %96 = tpu.matmul %95, %93, %cst_74 {dimension_numbers = #tpu.dot_dimension_numbers<[1], [0], [0], [1], [0, 0, 1, 1], [], []>} : vector<16x16xf32>, vector<16x80xf32>, vector<16x80xf32> -> vector<16x80xf32>
    %97 = arith.addf %92, %96 : vector<16x80xf32>
    %c0_75 = arith.constant 0 : index
    %c2_76 = arith.constant 2 : index
    %98 = vector.load %arg12[%c0_75, %c2_76] : memref<16x110xf32, #tpu.memory_space<vmem>>, vector<16x80xf32>
    %c2_77 = arith.constant 2 : index
    %c0_78 = arith.constant 0 : index
    %c0_79 = arith.constant 0 : index
    %99 = vector.load %arg5[%c2_77, %c0_78, %c0_79] : memref<9x16x16xf32, #tpu.memory_space<vmem>>, vector<1x16x16xf32>
    %100 = vector.shape_cast %99 : vector<1x16x16xf32> to vector<16x16xf32>
    %cst_80 = arith.constant dense<0.000000e+00> : vector<16x80xf32>
    %101 = tpu.matmul %100, %98, %cst_80 {dimension_numbers = #tpu.dot_dimension_numbers<[1], [0], [0], [1], [0, 0, 1, 1], [], []>} : vector<16x16xf32>, vector<16x80xf32>, vector<16x80xf32> -> vector<16x80xf32>
    %102 = arith.addf %97, %101 : vector<16x80xf32>
    %c0_81 = arith.constant 0 : index
    %c10_82 = arith.constant 10 : index
    %103 = vector.load %arg12[%c0_81, %c10_82] : memref<16x110xf32, #tpu.memory_space<vmem>>, vector<16x80xf32>
    %c3_83 = arith.constant 3 : index
    %c0_84 = arith.constant 0 : index
    %c0_85 = arith.constant 0 : index
    %104 = vector.load %arg5[%c3_83, %c0_84, %c0_85] : memref<9x16x16xf32, #tpu.memory_space<vmem>>, vector<1x16x16xf32>
    %105 = vector.shape_cast %104 : vector<1x16x16xf32> to vector<16x16xf32>
    %cst_86 = arith.constant dense<0.000000e+00> : vector<16x80xf32>
    %106 = tpu.matmul %105, %103, %cst_86 {dimension_numbers = #tpu.dot_dimension_numbers<[1], [0], [0], [1], [0, 0, 1, 1], [], []>} : vector<16x16xf32>, vector<16x80xf32>, vector<16x80xf32> -> vector<16x80xf32>
    %107 = arith.addf %102, %106 : vector<16x80xf32>
    %c0_87 = arith.constant 0 : index
    %c11_88 = arith.constant 11 : index
    %108 = vector.load %arg12[%c0_87, %c11_88] : memref<16x110xf32, #tpu.memory_space<vmem>>, vector<16x80xf32>
    %c4_89 = arith.constant 4 : index
    %c0_90 = arith.constant 0 : index
    %c0_91 = arith.constant 0 : index
    %109 = vector.load %arg5[%c4_89, %c0_90, %c0_91] : memref<9x16x16xf32, #tpu.memory_space<vmem>>, vector<1x16x16xf32>
    %110 = vector.shape_cast %109 : vector<1x16x16xf32> to vector<16x16xf32>
    %cst_92 = arith.constant dense<0.000000e+00> : vector<16x80xf32>
    %111 = tpu.matmul %110, %108, %cst_92 {dimension_numbers = #tpu.dot_dimension_numbers<[1], [0], [0], [1], [0, 0, 1, 1], [], []>} : vector<16x16xf32>, vector<16x80xf32>, vector<16x80xf32> -> vector<16x80xf32>
    %112 = arith.addf %107, %111 : vector<16x80xf32>
    %c0_93 = arith.constant 0 : index
    %c12_94 = arith.constant 12 : index
    %113 = vector.load %arg12[%c0_93, %c12_94] : memref<16x110xf32, #tpu.memory_space<vmem>>, vector<16x80xf32>
    %c5_95 = arith.constant 5 : index
    %c0_96 = arith.constant 0 : index
    %c0_97 = arith.constant 0 : index
    %114 = vector.load %arg5[%c5_95, %c0_96, %c0_97] : memref<9x16x16xf32, #tpu.memory_space<vmem>>, vector<1x16x16xf32>
    %115 = vector.shape_cast %114 : vector<1x16x16xf32> to vector<16x16xf32>
    %cst_98 = arith.constant dense<0.000000e+00> : vector<16x80xf32>
    %116 = tpu.matmul %115, %113, %cst_98 {dimension_numbers = #tpu.dot_dimension_numbers<[1], [0], [0], [1], [0, 0, 1, 1], [], []>} : vector<16x16xf32>, vector<16x80xf32>, vector<16x80xf32> -> vector<16x80xf32>
    %117 = arith.addf %112, %116 : vector<16x80xf32>
    %c0_99 = arith.constant 0 : index
    %c20_100 = arith.constant 20 : index
    %118 = vector.load %arg12[%c0_99, %c20_100] : memref<16x110xf32, #tpu.memory_space<vmem>>, vector<16x80xf32>
    %c6_101 = arith.constant 6 : index
    %c0_102 = arith.constant 0 : index
    %c0_103 = arith.constant 0 : index
    %119 = vector.load %arg5[%c6_101, %c0_102, %c0_103] : memref<9x16x16xf32, #tpu.memory_space<vmem>>, vector<1x16x16xf32>
    %120 = vector.shape_cast %119 : vector<1x16x16xf32> to vector<16x16xf32>
    %cst_104 = arith.constant dense<0.000000e+00> : vector<16x80xf32>
    %121 = tpu.matmul %120, %118, %cst_104 {dimension_numbers = #tpu.dot_dimension_numbers<[1], [0], [0], [1], [0, 0, 1, 1], [], []>} : vector<16x16xf32>, vector<16x80xf32>, vector<16x80xf32> -> vector<16x80xf32>
    %122 = arith.addf %117, %121 : vector<16x80xf32>
    %c0_105 = arith.constant 0 : index
    %c21_106 = arith.constant 21 : index
    %123 = vector.load %arg12[%c0_105, %c21_106] : memref<16x110xf32, #tpu.memory_space<vmem>>, vector<16x80xf32>
    %c7_107 = arith.constant 7 : index
    %c0_108 = arith.constant 0 : index
    %c0_109 = arith.constant 0 : index
    %124 = vector.load %arg5[%c7_107, %c0_108, %c0_109] : memref<9x16x16xf32, #tpu.memory_space<vmem>>, vector<1x16x16xf32>
    %125 = vector.shape_cast %124 : vector<1x16x16xf32> to vector<16x16xf32>
    %cst_110 = arith.constant dense<0.000000e+00> : vector<16x80xf32>
    %126 = tpu.matmul %125, %123, %cst_110 {dimension_numbers = #tpu.dot_dimension_numbers<[1], [0], [0], [1], [0, 0, 1, 1], [], []>} : vector<16x16xf32>, vector<16x80xf32>, vector<16x80xf32> -> vector<16x80xf32>
    %127 = arith.addf %122, %126 : vector<16x80xf32>
    %c0_111 = arith.constant 0 : index
    %c22_112 = arith.constant 22 : index
    %128 = vector.load %arg12[%c0_111, %c22_112] : memref<16x110xf32, #tpu.memory_space<vmem>>, vector<16x80xf32>
    %c8_113 = arith.constant 8 : index
    %c0_114 = arith.constant 0 : index
    %c0_115 = arith.constant 0 : index
    %129 = vector.load %arg5[%c8_113, %c0_114, %c0_115] : memref<9x16x16xf32, #tpu.memory_space<vmem>>, vector<1x16x16xf32>
    %130 = vector.shape_cast %129 : vector<1x16x16xf32> to vector<16x16xf32>
    %cst_116 = arith.constant dense<0.000000e+00> : vector<16x80xf32>
    %131 = tpu.matmul %130, %128, %cst_116 {dimension_numbers = #tpu.dot_dimension_numbers<[1], [0], [0], [1], [0, 0, 1, 1], [], []>} : vector<16x16xf32>, vector<16x80xf32>, vector<16x80xf32> -> vector<16x80xf32>
    %132 = arith.addf %127, %131 : vector<16x80xf32>
    %c0_117 = arith.constant 0 : index
    %c0_118 = arith.constant 0 : index
    %133 = vector.load %arg6[%c0_117, %c0_118] : memref<16x1xf32, #tpu.memory_space<vmem>>, vector<16x1xf32>
    %134 = vector.broadcast %133 : vector<16x1xf32> to vector<16x80xf32>
    %135 = arith.mulf %132, %134 : vector<16x80xf32>
    %c0_119 = arith.constant 0 : index
    %c0_120 = arith.constant 0 : index
    %136 = vector.load %arg7[%c0_119, %c0_120] : memref<16x1xf32, #tpu.memory_space<vmem>>, vector<16x1xf32>
    %137 = vector.broadcast %136 : vector<16x1xf32> to vector<16x80xf32>
    %138 = arith.addf %135, %137 : vector<16x80xf32>
    %cst_121 = arith.constant 0.000000e+00 : f32
    %139 = vector.broadcast %cst_121 : f32 to vector<16x80xf32>
    %140 = arith.maximumf %138, %139 : vector<16x80xf32>
    %c0_122 = arith.constant 0 : index
    %c0_123 = arith.constant 0 : index
    %141 = vector.load %arg8[%c0_122, %c0_123] : memref<80x64xf32, #tpu.memory_space<vmem>>, vector<80x64xf32>
    %cst_124 = arith.constant dense<0.000000e+00> : vector<16x64xf32>
    %142 = tpu.matmul %140, %141, %cst_124 {dimension_numbers = #tpu.dot_dimension_numbers<[1], [0], [0], [1], [0, 0, 1, 1], [], []>} : vector<16x80xf32>, vector<80x64xf32>, vector<16x64xf32> -> vector<16x64xf32>
    %c0_125 = arith.constant 0 : index
    %c0_126 = arith.constant 0 : index
    %c0_127 = arith.constant 0 : index
    %143 = vector.load %arg10[%c0_125, %c0_126, %c0_127] : memref<1x16x64xf32, #tpu.memory_space<vmem>>, vector<1x16x64xf32>
    %144 = vector.shape_cast %143 : vector<1x16x64xf32> to vector<16x64xf32>
    %145 = vector.shape_cast %142 : vector<16x64xf32> to vector<1x16x64xf32>
    tpu.vector_store %arg10[%c0_125, %c0_126, %c0_127], %145 {strides = array<i32>} : memref<1x16x64xf32, #tpu.memory_space<vmem>>, vector<1x16x64xf32>,
    %c0_128 = arith.constant 0 : index
    %c0_129 = arith.constant 0 : index
    %c0_130 = arith.constant 0 : index
    %146 = vector.load %arg9[%c0_128, %c0_129, %c0_130] : memref<4x80x42xf32, #tpu.memory_space<vmem>>, vector<1x80x42xf32>
    %147 = vector.shape_cast %146 : vector<1x80x42xf32> to vector<80x42xf32>
    %cst_131 = arith.constant dense<0.000000e+00> : vector<16x42xf32>
    %148 = tpu.matmul %140, %147, %cst_131 {dimension_numbers = #tpu.dot_dimension_numbers<[1], [0], [0], [1], [0, 0, 1, 1], [], []>} : vector<16x80xf32>, vector<80x42xf32>, vector<16x42xf32> -> vector<16x42xf32>
    %c1_132 = arith.constant 1 : index
    %c0_133 = arith.constant 0 : index
    %c0_134 = arith.constant 0 : index
    %149 = vector.load %arg9[%c1_132, %c0_133, %c0_134] : memref<4x80x42xf32, #tpu.memory_space<vmem>>, vector<1x80x42xf32>
    %150 = vector.shape_cast %149 : vector<1x80x42xf32> to vector<80x42xf32>
    %cst_135 = arith.constant dense<0.000000e+00> : vector<16x42xf32>
    %151 = tpu.matmul %140, %150, %cst_135 {dimension_numbers = #tpu.dot_dimension_numbers<[1], [0], [0], [1], [0, 0, 1, 1], [], []>} : vector<16x80xf32>, vector<80x42xf32>, vector<16x42xf32> -> vector<16x42xf32>
    %152 = arith.maximumf %148, %151 : vector<16x42xf32>
    %c2_136 = arith.constant 2 : index
    %c0_137 = arith.constant 0 : index
    %c0_138 = arith.constant 0 : index
    %153 = vector.load %arg9[%c2_136, %c0_137, %c0_138] : memref<4x80x42xf32, #tpu.memory_space<vmem>>, vector<1x80x42xf32>
    %154 = vector.shape_cast %153 : vector<1x80x42xf32> to vector<80x42xf32>
    %cst_139 = arith.constant dense<0.000000e+00> : vector<16x42xf32>
    %155 = tpu.matmul %140, %154, %cst_139 {dimension_numbers = #tpu.dot_dimension_numbers<[1], [0], [0], [1], [0, 0, 1, 1], [], []>} : vector<16x80xf32>, vector<80x42xf32>, vector<16x42xf32> -> vector<16x42xf32>
    %156 = arith.maximumf %152, %155 : vector<16x42xf32>
    %c3_140 = arith.constant 3 : index
    %c0_141 = arith.constant 0 : index
    %c0_142 = arith.constant 0 : index
    %157 = vector.load %arg9[%c3_140, %c0_141, %c0_142] : memref<4x80x42xf32, #tpu.memory_space<vmem>>, vector<1x80x42xf32>
    %158 = vector.shape_cast %157 : vector<1x80x42xf32> to vector<80x42xf32>
    %cst_143 = arith.constant dense<0.000000e+00> : vector<16x42xf32>
    %159 = tpu.matmul %140, %158, %cst_143 {dimension_numbers = #tpu.dot_dimension_numbers<[1], [0], [0], [1], [0, 0, 1, 1], [], []>} : vector<16x80xf32>, vector<80x42xf32>, vector<16x42xf32> -> vector<16x42xf32>
    %160 = arith.maximumf %156, %159 : vector<16x42xf32>
    %c0_144 = arith.constant 0 : index
    %c0_145 = arith.constant 0 : index
    %c0_146 = arith.constant 0 : index
    %161 = vector.load %arg11[%c0_144, %c0_145, %c0_146] : memref<1x16x42xf32, #tpu.memory_space<vmem>>, vector<1x16x42xf32>
    %162 = vector.shape_cast %161 : vector<1x16x42xf32> to vector<16x42xf32>
    %163 = vector.shape_cast %160 : vector<16x42xf32> to vector<1x16x42xf32>
    tpu.vector_store %arg11[%c0_144, %c0_145, %c0_146], %163 {strides = array<i32>} : memref<1x16x42xf32, #tpu.memory_space<vmem>>, vector<1x16x42xf32>,
    return
  }
  func.func @transform_0(%arg0: i32) -> (i32, i32, i32) {
    %c0_i32 = arith.constant 0 : i32
    %c0_i32_0 = arith.constant 0 : i32
    %c0_i32_1 = arith.constant 0 : i32
    return %arg0, %c0_i32, %c0_i32_0 : i32, i32, i32
  }
  func.func @transform_1(%arg0: i32) -> (i32, i32, i32) {
    %c0_i32 = arith.constant 0 : i32
    %c0_i32_0 = arith.constant 0 : i32
    %c0_i32_1 = arith.constant 0 : i32
    %c0_i32_2 = arith.constant 0 : i32
    return %c0_i32, %c0_i32_0, %c0_i32_1 : i32, i32, i32
  }
  func.func @transform_2(%arg0: i32) -> (i32, i32) {
    %c0_i32 = arith.constant 0 : i32
    %c0_i32_0 = arith.constant 0 : i32
    %c0_i32_1 = arith.constant 0 : i32
    return %c0_i32, %c0_i32_0 : i32, i32
  }
  func.func @transform_3(%arg0: i32) -> (i32, i32) {
    %c0_i32 = arith.constant 0 : i32
    %c0_i32_0 = arith.constant 0 : i32
    %c0_i32_1 = arith.constant 0 : i32
    return %c0_i32, %c0_i32_0 : i32, i32
  }
  func.func @transform_4(%arg0: i32) -> (i32, i32, i32) {
    %c0_i32 = arith.constant 0 : i32
    %c0_i32_0 = arith.constant 0 : i32
    %c0_i32_1 = arith.constant 0 : i32
    %c0_i32_2 = arith.constant 0 : i32
    return %c0_i32, %c0_i32_0, %c0_i32_1 : i32, i32, i32
  }
  func.func @transform_5(%arg0: i32) -> (i32, i32) {
    %c0_i32 = arith.constant 0 : i32
    %c0_i32_0 = arith.constant 0 : i32
    %c0_i32_1 = arith.constant 0 : i32
    return %c0_i32, %c0_i32_0 : i32, i32
  }
  func.func @transform_6(%arg0: i32) -> (i32, i32) {
    %c0_i32 = arith.constant 0 : i32
    %c0_i32_0 = arith.constant 0 : i32
    %c0_i32_1 = arith.constant 0 : i32
    return %c0_i32, %c0_i32_0 : i32, i32
  }
  func.func @transform_7(%arg0: i32) -> (i32, i32) {
    %c0_i32 = arith.constant 0 : i32
    %c0_i32_0 = arith.constant 0 : i32
    %c0_i32_1 = arith.constant 0 : i32
    return %c0_i32, %c0_i32_0 : i32, i32
  }
  func.func @transform_8(%arg0: i32) -> (i32, i32, i32) {
    %c0_i32 = arith.constant 0 : i32
    %c0_i32_0 = arith.constant 0 : i32
    %c0_i32_1 = arith.constant 0 : i32
    %c0_i32_2 = arith.constant 0 : i32
    return %c0_i32, %c0_i32_0, %c0_i32_1 : i32, i32, i32
  }
  func.func @transform_9(%arg0: i32) -> (i32, i32, i32) {
    %c0_i32 = arith.constant 0 : i32
    %c0_i32_0 = arith.constant 0 : i32
    %c0_i32_1 = arith.constant 0 : i32
    return %arg0, %c0_i32, %c0_i32_0 : i32, i32, i32
  }
  func.func @transform_10(%arg0: i32) -> (i32, i32, i32) {
    %c0_i32 = arith.constant 0 : i32
    %c0_i32_0 = arith.constant 0 : i32
    %c0_i32_1 = arith.constant 0 : i32
    return %arg0, %c0_i32, %c0_i32_0 : i32, i32, i32
  }
}

module attributes {stable_mosaic.version = 11 : i64} {
  func.func @kernel(%arg0: i32, %arg1: memref<1x16x42xf32, #tpu.memory_space<vmem>>, %arg2: memref<9x32x16xf32, #tpu.memory_space<vmem>>, %arg3: memref<32x1xf32, #tpu.memory_space<vmem>>, %arg4: memref<32x1xf32, #tpu.memory_space<vmem>>, %arg5: memref<9x32x32xf32, #tpu.memory_space<vmem>>, %arg6: memref<32x1xf32, #tpu.memory_space<vmem>>, %arg7: memref<32x1xf32, #tpu.memory_space<vmem>>, %arg8: memref<24x16xf32, #tpu.memory_space<vmem>>, %arg9: memref<1x32x16xf32, #tpu.memory_space<vmem>>, %arg10: memref<32x42xf32, #tpu.memory_space<vmem>>) attributes {dimension_semantics = [#tpu.dimension_semantics<parallel>], iteration_bounds = array<i64: 2>, scalar_prefetch = 0 : i64, scratch_operands = 1 : i64, tpu.core_type = #tpu.core_type<tc>, window_params = [{transform_indices = @transform_0, window_bounds = array<i64: 1, 16, 42>}, {pipeline_mode = #tpu.pipeline_mode<synchronous>, transform_indices = @transform_1, window_bounds = array<i64: 9, 32, 16>}, {pipeline_mode = #tpu.pipeline_mode<synchronous>, transform_indices = @transform_2, window_bounds = array<i64: 32, 1>}, {pipeline_mode = #tpu.pipeline_mode<synchronous>, transform_indices = @transform_3, window_bounds = array<i64: 32, 1>}, {pipeline_mode = #tpu.pipeline_mode<synchronous>, transform_indices = @transform_4, window_bounds = array<i64: 9, 32, 32>}, {pipeline_mode = #tpu.pipeline_mode<synchronous>, transform_indices = @transform_5, window_bounds = array<i64: 32, 1>}, {pipeline_mode = #tpu.pipeline_mode<synchronous>, transform_indices = @transform_6, window_bounds = array<i64: 32, 1>}, {pipeline_mode = #tpu.pipeline_mode<synchronous>, transform_indices = @transform_7, window_bounds = array<i64: 24, 16>}, {transform_indices = @transform_8, window_bounds = array<i64: 1, 32, 16>}]} {
    %c0 = arith.constant 0 : index
    %c0_0 = arith.constant 0 : index
    %c0_1 = arith.constant 0 : index
    %0 = vector.load %arg1[%c0, %c0_0, %c0_1] : memref<1x16x42xf32, #tpu.memory_space<vmem>>, vector<1x16x24xf32>
    %1 = vector.shape_cast %0 : vector<1x16x24xf32> to vector<16x24xf32>
    %c0_2 = arith.constant 0 : index
    %c0_3 = arith.constant 0 : index
    %c0_4 = arith.constant 0 : index
    %2 = vector.load %arg2[%c0_2, %c0_3, %c0_4] : memref<9x32x16xf32, #tpu.memory_space<vmem>>, vector<1x32x16xf32>
    %3 = vector.shape_cast %2 : vector<1x32x16xf32> to vector<32x16xf32>
    %cst = arith.constant dense<0.000000e+00> : vector<32x24xf32>
    %4 = tpu.matmul %3, %1, %cst {dimension_numbers = #tpu.dot_dimension_numbers<[1], [0], [0], [1], [0, 0, 1, 1], [], []>} : vector<32x16xf32>, vector<16x24xf32>, vector<32x24xf32> -> vector<32x24xf32>
    %c0_5 = arith.constant 0 : index
    %c0_6 = arith.constant 0 : index
    %c1 = arith.constant 1 : index
    %5 = vector.load %arg1[%c0_5, %c0_6, %c1] : memref<1x16x42xf32, #tpu.memory_space<vmem>>, vector<1x16x24xf32>
    %6 = vector.shape_cast %5 : vector<1x16x24xf32> to vector<16x24xf32>
    %c1_7 = arith.constant 1 : index
    %c0_8 = arith.constant 0 : index
    %c0_9 = arith.constant 0 : index
    %7 = vector.load %arg2[%c1_7, %c0_8, %c0_9] : memref<9x32x16xf32, #tpu.memory_space<vmem>>, vector<1x32x16xf32>
    %8 = vector.shape_cast %7 : vector<1x32x16xf32> to vector<32x16xf32>
    %cst_10 = arith.constant dense<0.000000e+00> : vector<32x24xf32>
    %9 = tpu.matmul %8, %6, %cst_10 {dimension_numbers = #tpu.dot_dimension_numbers<[1], [0], [0], [1], [0, 0, 1, 1], [], []>} : vector<32x16xf32>, vector<16x24xf32>, vector<32x24xf32> -> vector<32x24xf32>
    %10 = arith.addf %4, %9 : vector<32x24xf32>
    %c0_11 = arith.constant 0 : index
    %c0_12 = arith.constant 0 : index
    %c2 = arith.constant 2 : index
    %11 = vector.load %arg1[%c0_11, %c0_12, %c2] : memref<1x16x42xf32, #tpu.memory_space<vmem>>, vector<1x16x24xf32>
    %12 = vector.shape_cast %11 : vector<1x16x24xf32> to vector<16x24xf32>
    %c2_13 = arith.constant 2 : index
    %c0_14 = arith.constant 0 : index
    %c0_15 = arith.constant 0 : index
    %13 = vector.load %arg2[%c2_13, %c0_14, %c0_15] : memref<9x32x16xf32, #tpu.memory_space<vmem>>, vector<1x32x16xf32>
    %14 = vector.shape_cast %13 : vector<1x32x16xf32> to vector<32x16xf32>
    %cst_16 = arith.constant dense<0.000000e+00> : vector<32x24xf32>
    %15 = tpu.matmul %14, %12, %cst_16 {dimension_numbers = #tpu.dot_dimension_numbers<[1], [0], [0], [1], [0, 0, 1, 1], [], []>} : vector<32x16xf32>, vector<16x24xf32>, vector<32x24xf32> -> vector<32x24xf32>
    %16 = arith.addf %10, %15 : vector<32x24xf32>
    %c0_17 = arith.constant 0 : index
    %c0_18 = arith.constant 0 : index
    %c6 = arith.constant 6 : index
    %17 = vector.load %arg1[%c0_17, %c0_18, %c6] : memref<1x16x42xf32, #tpu.memory_space<vmem>>, vector<1x16x24xf32>
    %18 = vector.shape_cast %17 : vector<1x16x24xf32> to vector<16x24xf32>
    %c3 = arith.constant 3 : index
    %c0_19 = arith.constant 0 : index
    %c0_20 = arith.constant 0 : index
    %19 = vector.load %arg2[%c3, %c0_19, %c0_20] : memref<9x32x16xf32, #tpu.memory_space<vmem>>, vector<1x32x16xf32>
    %20 = vector.shape_cast %19 : vector<1x32x16xf32> to vector<32x16xf32>
    %cst_21 = arith.constant dense<0.000000e+00> : vector<32x24xf32>
    %21 = tpu.matmul %20, %18, %cst_21 {dimension_numbers = #tpu.dot_dimension_numbers<[1], [0], [0], [1], [0, 0, 1, 1], [], []>} : vector<32x16xf32>, vector<16x24xf32>, vector<32x24xf32> -> vector<32x24xf32>
    %22 = arith.addf %16, %21 : vector<32x24xf32>
    %c0_22 = arith.constant 0 : index
    %c0_23 = arith.constant 0 : index
    %c7 = arith.constant 7 : index
    %23 = vector.load %arg1[%c0_22, %c0_23, %c7] : memref<1x16x42xf32, #tpu.memory_space<vmem>>, vector<1x16x24xf32>
    %24 = vector.shape_cast %23 : vector<1x16x24xf32> to vector<16x24xf32>
    %c4 = arith.constant 4 : index
    %c0_24 = arith.constant 0 : index
    %c0_25 = arith.constant 0 : index
    %25 = vector.load %arg2[%c4, %c0_24, %c0_25] : memref<9x32x16xf32, #tpu.memory_space<vmem>>, vector<1x32x16xf32>
    %26 = vector.shape_cast %25 : vector<1x32x16xf32> to vector<32x16xf32>
    %cst_26 = arith.constant dense<0.000000e+00> : vector<32x24xf32>
    %27 = tpu.matmul %26, %24, %cst_26 {dimension_numbers = #tpu.dot_dimension_numbers<[1], [0], [0], [1], [0, 0, 1, 1], [], []>} : vector<32x16xf32>, vector<16x24xf32>, vector<32x24xf32> -> vector<32x24xf32>
    %28 = arith.addf %22, %27 : vector<32x24xf32>
    %c0_27 = arith.constant 0 : index
    %c0_28 = arith.constant 0 : index
    %c8 = arith.constant 8 : index
    %29 = vector.load %arg1[%c0_27, %c0_28, %c8] : memref<1x16x42xf32, #tpu.memory_space<vmem>>, vector<1x16x24xf32>
    %30 = vector.shape_cast %29 : vector<1x16x24xf32> to vector<16x24xf32>
    %c5 = arith.constant 5 : index
    %c0_29 = arith.constant 0 : index
    %c0_30 = arith.constant 0 : index
    %31 = vector.load %arg2[%c5, %c0_29, %c0_30] : memref<9x32x16xf32, #tpu.memory_space<vmem>>, vector<1x32x16xf32>
    %32 = vector.shape_cast %31 : vector<1x32x16xf32> to vector<32x16xf32>
    %cst_31 = arith.constant dense<0.000000e+00> : vector<32x24xf32>
    %33 = tpu.matmul %32, %30, %cst_31 {dimension_numbers = #tpu.dot_dimension_numbers<[1], [0], [0], [1], [0, 0, 1, 1], [], []>} : vector<32x16xf32>, vector<16x24xf32>, vector<32x24xf32> -> vector<32x24xf32>
    %34 = arith.addf %28, %33 : vector<32x24xf32>
    %c0_32 = arith.constant 0 : index
    %c0_33 = arith.constant 0 : index
    %c12 = arith.constant 12 : index
    %35 = vector.load %arg1[%c0_32, %c0_33, %c12] : memref<1x16x42xf32, #tpu.memory_space<vmem>>, vector<1x16x24xf32>
    %36 = vector.shape_cast %35 : vector<1x16x24xf32> to vector<16x24xf32>
    %c6_34 = arith.constant 6 : index
    %c0_35 = arith.constant 0 : index
    %c0_36 = arith.constant 0 : index
    %37 = vector.load %arg2[%c6_34, %c0_35, %c0_36] : memref<9x32x16xf32, #tpu.memory_space<vmem>>, vector<1x32x16xf32>
    %38 = vector.shape_cast %37 : vector<1x32x16xf32> to vector<32x16xf32>
    %cst_37 = arith.constant dense<0.000000e+00> : vector<32x24xf32>
    %39 = tpu.matmul %38, %36, %cst_37 {dimension_numbers = #tpu.dot_dimension_numbers<[1], [0], [0], [1], [0, 0, 1, 1], [], []>} : vector<32x16xf32>, vector<16x24xf32>, vector<32x24xf32> -> vector<32x24xf32>
    %40 = arith.addf %34, %39 : vector<32x24xf32>
    %c0_38 = arith.constant 0 : index
    %c0_39 = arith.constant 0 : index
    %c13 = arith.constant 13 : index
    %41 = vector.load %arg1[%c0_38, %c0_39, %c13] : memref<1x16x42xf32, #tpu.memory_space<vmem>>, vector<1x16x24xf32>
    %42 = vector.shape_cast %41 : vector<1x16x24xf32> to vector<16x24xf32>
    %c7_40 = arith.constant 7 : index
    %c0_41 = arith.constant 0 : index
    %c0_42 = arith.constant 0 : index
    %43 = vector.load %arg2[%c7_40, %c0_41, %c0_42] : memref<9x32x16xf32, #tpu.memory_space<vmem>>, vector<1x32x16xf32>
    %44 = vector.shape_cast %43 : vector<1x32x16xf32> to vector<32x16xf32>
    %cst_43 = arith.constant dense<0.000000e+00> : vector<32x24xf32>
    %45 = tpu.matmul %44, %42, %cst_43 {dimension_numbers = #tpu.dot_dimension_numbers<[1], [0], [0], [1], [0, 0, 1, 1], [], []>} : vector<32x16xf32>, vector<16x24xf32>, vector<32x24xf32> -> vector<32x24xf32>
    %46 = arith.addf %40, %45 : vector<32x24xf32>
    %c0_44 = arith.constant 0 : index
    %c0_45 = arith.constant 0 : index
    %c14 = arith.constant 14 : index
    %47 = vector.load %arg1[%c0_44, %c0_45, %c14] : memref<1x16x42xf32, #tpu.memory_space<vmem>>, vector<1x16x24xf32>
    %48 = vector.shape_cast %47 : vector<1x16x24xf32> to vector<16x24xf32>
    %c8_46 = arith.constant 8 : index
    %c0_47 = arith.constant 0 : index
    %c0_48 = arith.constant 0 : index
    %49 = vector.load %arg2[%c8_46, %c0_47, %c0_48] : memref<9x32x16xf32, #tpu.memory_space<vmem>>, vector<1x32x16xf32>
    %50 = vector.shape_cast %49 : vector<1x32x16xf32> to vector<32x16xf32>
    %cst_49 = arith.constant dense<0.000000e+00> : vector<32x24xf32>
    %51 = tpu.matmul %50, %48, %cst_49 {dimension_numbers = #tpu.dot_dimension_numbers<[1], [0], [0], [1], [0, 0, 1, 1], [], []>} : vector<32x16xf32>, vector<16x24xf32>, vector<32x24xf32> -> vector<32x24xf32>
    %52 = arith.addf %46, %51 : vector<32x24xf32>
    %c0_50 = arith.constant 0 : index
    %c0_51 = arith.constant 0 : index
    %53 = vector.load %arg3[%c0_50, %c0_51] : memref<32x1xf32, #tpu.memory_space<vmem>>, vector<32x1xf32>
    %54 = vector.broadcast %53 : vector<32x1xf32> to vector<32x24xf32>
    %55 = arith.mulf %52, %54 : vector<32x24xf32>
    %c0_52 = arith.constant 0 : index
    %c0_53 = arith.constant 0 : index
    %56 = vector.load %arg4[%c0_52, %c0_53] : memref<32x1xf32, #tpu.memory_space<vmem>>, vector<32x1xf32>
    %57 = vector.broadcast %56 : vector<32x1xf32> to vector<32x24xf32>
    %58 = arith.addf %55, %57 : vector<32x24xf32>
    %cst_54 = arith.constant 0.000000e+00 : f32
    %59 = vector.broadcast %cst_54 : f32 to vector<32x24xf32>
    %60 = arith.maximumf %58, %59 : vector<32x24xf32>
    %61 = tpu.iota {dimensions = array<i32: 1>} : vector<1x24xi32>
    %c6_i32 = arith.constant 6 : i32
    %c0_i32 = arith.constant 0 : i32
    %62 = arith.cmpi eq, %c6_i32, %c0_i32 : i32
    %c1_i32 = arith.constant 1 : i32
    %63 = arith.select %62, %c1_i32, %c6_i32 : i32
    %64 = vector.broadcast %63 : i32 to vector<1x24xi32>
    %65 = arith.remsi %61, %64 : vector<1x24xi32>
    %c0_i32_55 = arith.constant 0 : i32
    %66 = vector.broadcast %c0_i32_55 : i32 to vector<1x24xi32>
    %67 = arith.cmpi ne, %65, %66 : vector<1x24xi32>
    %c0_i32_56 = arith.constant 0 : i32
    %68 = vector.broadcast %c0_i32_56 : i32 to vector<1x24xi32>
    %69 = arith.cmpi slt, %65, %68 : vector<1x24xi32>
    %c0_i32_57 = arith.constant 0 : i32
    %70 = arith.cmpi slt, %63, %c0_i32_57 : i32
    %71 = vector.broadcast %70 : i1 to vector<1x24xi1>
    %72 = vector.broadcast %71 : vector<1x24xi1> to vector<1x24xi1>
    %73 = arith.xori %69, %72 : vector<1x24xi1>
    %74 = arith.andi %73, %67 : vector<1x24xi1>
    %75 = vector.broadcast %63 : i32 to vector<1x24xi32>
    %76 = arith.addi %65, %75 : vector<1x24xi32>
    %77 = arith.select %74, %76, %65 : vector<1x24xi1>, vector<1x24xi32>
    %c4_i32 = arith.constant 4 : i32
    %78 = vector.broadcast %c4_i32 : i32 to vector<1x24xi32>
    %79 = arith.cmpi slt, %77, %78 : vector<1x24xi32>
    %cst_58 = arith.constant 0.000000e+00 : f32
    %80 = vector.shape_cast %79 : vector<1x24xi1> to vector<1x24xi1>
    %81 = vector.broadcast %80 : vector<1x24xi1> to vector<32x24xi1>
    %82 = vector.broadcast %cst_58 : f32 to vector<32x24xf32>
    %83 = arith.select %81, %60, %82 : vector<32x24xi1>, vector<32x24xf32>
    %cst_59 = arith.constant 0.000000e+00 : f32
    %84 = vector.broadcast %cst_59 : f32 to vector<32x7xf32>
    %c0_60 = arith.constant 0 : index
    %c0_61 = arith.constant 0 : index
    %85 = vector.load %arg10[%c0_60, %c0_61] : memref<32x42xf32, #tpu.memory_space<vmem>>, vector<32x7xf32>
    tpu.vector_store %arg10[%c0_60, %c0_61], %84 {strides = array<i32>} : memref<32x42xf32, #tpu.memory_space<vmem>>, vector<32x7xf32>,
    %cst_62 = arith.constant 0.000000e+00 : f32
    %86 = vector.broadcast %cst_62 : f32 to vector<32x11xf32>
    %c0_63 = arith.constant 0 : index
    %c31 = arith.constant 31 : index
    %87 = vector.load %arg10[%c0_63, %c31] : memref<32x42xf32, #tpu.memory_space<vmem>>, vector<32x11xf32>
    tpu.vector_store %arg10[%c0_63, %c31], %86 {strides = array<i32>} : memref<32x42xf32, #tpu.memory_space<vmem>>, vector<32x11xf32>,
    %c0_64 = arith.constant 0 : index
    %c7_65 = arith.constant 7 : index
    %88 = vector.load %arg10[%c0_64, %c7_65] : memref<32x42xf32, #tpu.memory_space<vmem>>, vector<32x24xf32>
    tpu.vector_store %arg10[%c0_64, %c7_65], %83 {strides = array<i32>} : memref<32x42xf32, #tpu.memory_space<vmem>>, vector<32x24xf32>,
    %c0_66 = arith.constant 0 : index
    %c0_67 = arith.constant 0 : index
    %89 = vector.load %arg10[%c0_66, %c0_67] : memref<32x42xf32, #tpu.memory_space<vmem>>, vector<32x24xf32>
    %c0_68 = arith.constant 0 : index
    %c0_69 = arith.constant 0 : index
    %c0_70 = arith.constant 0 : index
    %90 = vector.load %arg5[%c0_68, %c0_69, %c0_70] : memref<9x32x32xf32, #tpu.memory_space<vmem>>, vector<1x32x32xf32>
    %91 = vector.shape_cast %90 : vector<1x32x32xf32> to vector<32x32xf32>
    %cst_71 = arith.constant dense<0.000000e+00> : vector<32x24xf32>
    %92 = tpu.matmul %91, %89, %cst_71 {dimension_numbers = #tpu.dot_dimension_numbers<[1], [0], [0], [1], [0, 0, 1, 1], [], []>} : vector<32x32xf32>, vector<32x24xf32>, vector<32x24xf32> -> vector<32x24xf32>
    %c0_72 = arith.constant 0 : index
    %c1_73 = arith.constant 1 : index
    %93 = vector.load %arg10[%c0_72, %c1_73] : memref<32x42xf32, #tpu.memory_space<vmem>>, vector<32x24xf32>
    %c1_74 = arith.constant 1 : index
    %c0_75 = arith.constant 0 : index
    %c0_76 = arith.constant 0 : index
    %94 = vector.load %arg5[%c1_74, %c0_75, %c0_76] : memref<9x32x32xf32, #tpu.memory_space<vmem>>, vector<1x32x32xf32>
    %95 = vector.shape_cast %94 : vector<1x32x32xf32> to vector<32x32xf32>
    %cst_77 = arith.constant dense<0.000000e+00> : vector<32x24xf32>
    %96 = tpu.matmul %95, %93, %cst_77 {dimension_numbers = #tpu.dot_dimension_numbers<[1], [0], [0], [1], [0, 0, 1, 1], [], []>} : vector<32x32xf32>, vector<32x24xf32>, vector<32x24xf32> -> vector<32x24xf32>
    %97 = arith.addf %92, %96 : vector<32x24xf32>
    %c0_78 = arith.constant 0 : index
    %c2_79 = arith.constant 2 : index
    %98 = vector.load %arg10[%c0_78, %c2_79] : memref<32x42xf32, #tpu.memory_space<vmem>>, vector<32x24xf32>
    %c2_80 = arith.constant 2 : index
    %c0_81 = arith.constant 0 : index
    %c0_82 = arith.constant 0 : index
    %99 = vector.load %arg5[%c2_80, %c0_81, %c0_82] : memref<9x32x32xf32, #tpu.memory_space<vmem>>, vector<1x32x32xf32>
    %100 = vector.shape_cast %99 : vector<1x32x32xf32> to vector<32x32xf32>
    %cst_83 = arith.constant dense<0.000000e+00> : vector<32x24xf32>
    %101 = tpu.matmul %100, %98, %cst_83 {dimension_numbers = #tpu.dot_dimension_numbers<[1], [0], [0], [1], [0, 0, 1, 1], [], []>} : vector<32x32xf32>, vector<32x24xf32>, vector<32x24xf32> -> vector<32x24xf32>
    %102 = arith.addf %97, %101 : vector<32x24xf32>
    %c0_84 = arith.constant 0 : index
    %c6_85 = arith.constant 6 : index
    %103 = vector.load %arg10[%c0_84, %c6_85] : memref<32x42xf32, #tpu.memory_space<vmem>>, vector<32x24xf32>
    %c3_86 = arith.constant 3 : index
    %c0_87 = arith.constant 0 : index
    %c0_88 = arith.constant 0 : index
    %104 = vector.load %arg5[%c3_86, %c0_87, %c0_88] : memref<9x32x32xf32, #tpu.memory_space<vmem>>, vector<1x32x32xf32>
    %105 = vector.shape_cast %104 : vector<1x32x32xf32> to vector<32x32xf32>
    %cst_89 = arith.constant dense<0.000000e+00> : vector<32x24xf32>
    %106 = tpu.matmul %105, %103, %cst_89 {dimension_numbers = #tpu.dot_dimension_numbers<[1], [0], [0], [1], [0, 0, 1, 1], [], []>} : vector<32x32xf32>, vector<32x24xf32>, vector<32x24xf32> -> vector<32x24xf32>
    %107 = arith.addf %102, %106 : vector<32x24xf32>
    %c0_90 = arith.constant 0 : index
    %c7_91 = arith.constant 7 : index
    %108 = vector.load %arg10[%c0_90, %c7_91] : memref<32x42xf32, #tpu.memory_space<vmem>>, vector<32x24xf32>
    %c4_92 = arith.constant 4 : index
    %c0_93 = arith.constant 0 : index
    %c0_94 = arith.constant 0 : index
    %109 = vector.load %arg5[%c4_92, %c0_93, %c0_94] : memref<9x32x32xf32, #tpu.memory_space<vmem>>, vector<1x32x32xf32>
    %110 = vector.shape_cast %109 : vector<1x32x32xf32> to vector<32x32xf32>
    %cst_95 = arith.constant dense<0.000000e+00> : vector<32x24xf32>
    %111 = tpu.matmul %110, %108, %cst_95 {dimension_numbers = #tpu.dot_dimension_numbers<[1], [0], [0], [1], [0, 0, 1, 1], [], []>} : vector<32x32xf32>, vector<32x24xf32>, vector<32x24xf32> -> vector<32x24xf32>
    %112 = arith.addf %107, %111 : vector<32x24xf32>
    %c0_96 = arith.constant 0 : index
    %c8_97 = arith.constant 8 : index
    %113 = vector.load %arg10[%c0_96, %c8_97] : memref<32x42xf32, #tpu.memory_space<vmem>>, vector<32x24xf32>
    %c5_98 = arith.constant 5 : index
    %c0_99 = arith.constant 0 : index
    %c0_100 = arith.constant 0 : index
    %114 = vector.load %arg5[%c5_98, %c0_99, %c0_100] : memref<9x32x32xf32, #tpu.memory_space<vmem>>, vector<1x32x32xf32>
    %115 = vector.shape_cast %114 : vector<1x32x32xf32> to vector<32x32xf32>
    %cst_101 = arith.constant dense<0.000000e+00> : vector<32x24xf32>
    %116 = tpu.matmul %115, %113, %cst_101 {dimension_numbers = #tpu.dot_dimension_numbers<[1], [0], [0], [1], [0, 0, 1, 1], [], []>} : vector<32x32xf32>, vector<32x24xf32>, vector<32x24xf32> -> vector<32x24xf32>
    %117 = arith.addf %112, %116 : vector<32x24xf32>
    %c0_102 = arith.constant 0 : index
    %c12_103 = arith.constant 12 : index
    %118 = vector.load %arg10[%c0_102, %c12_103] : memref<32x42xf32, #tpu.memory_space<vmem>>, vector<32x24xf32>
    %c6_104 = arith.constant 6 : index
    %c0_105 = arith.constant 0 : index
    %c0_106 = arith.constant 0 : index
    %119 = vector.load %arg5[%c6_104, %c0_105, %c0_106] : memref<9x32x32xf32, #tpu.memory_space<vmem>>, vector<1x32x32xf32>
    %120 = vector.shape_cast %119 : vector<1x32x32xf32> to vector<32x32xf32>
    %cst_107 = arith.constant dense<0.000000e+00> : vector<32x24xf32>
    %121 = tpu.matmul %120, %118, %cst_107 {dimension_numbers = #tpu.dot_dimension_numbers<[1], [0], [0], [1], [0, 0, 1, 1], [], []>} : vector<32x32xf32>, vector<32x24xf32>, vector<32x24xf32> -> vector<32x24xf32>
    %122 = arith.addf %117, %121 : vector<32x24xf32>
    %c0_108 = arith.constant 0 : index
    %c13_109 = arith.constant 13 : index
    %123 = vector.load %arg10[%c0_108, %c13_109] : memref<32x42xf32, #tpu.memory_space<vmem>>, vector<32x24xf32>
    %c7_110 = arith.constant 7 : index
    %c0_111 = arith.constant 0 : index
    %c0_112 = arith.constant 0 : index
    %124 = vector.load %arg5[%c7_110, %c0_111, %c0_112] : memref<9x32x32xf32, #tpu.memory_space<vmem>>, vector<1x32x32xf32>
    %125 = vector.shape_cast %124 : vector<1x32x32xf32> to vector<32x32xf32>
    %cst_113 = arith.constant dense<0.000000e+00> : vector<32x24xf32>
    %126 = tpu.matmul %125, %123, %cst_113 {dimension_numbers = #tpu.dot_dimension_numbers<[1], [0], [0], [1], [0, 0, 1, 1], [], []>} : vector<32x32xf32>, vector<32x24xf32>, vector<32x24xf32> -> vector<32x24xf32>
    %127 = arith.addf %122, %126 : vector<32x24xf32>
    %c0_114 = arith.constant 0 : index
    %c14_115 = arith.constant 14 : index
    %128 = vector.load %arg10[%c0_114, %c14_115] : memref<32x42xf32, #tpu.memory_space<vmem>>, vector<32x24xf32>
    %c8_116 = arith.constant 8 : index
    %c0_117 = arith.constant 0 : index
    %c0_118 = arith.constant 0 : index
    %129 = vector.load %arg5[%c8_116, %c0_117, %c0_118] : memref<9x32x32xf32, #tpu.memory_space<vmem>>, vector<1x32x32xf32>
    %130 = vector.shape_cast %129 : vector<1x32x32xf32> to vector<32x32xf32>
    %cst_119 = arith.constant dense<0.000000e+00> : vector<32x24xf32>
    %131 = tpu.matmul %130, %128, %cst_119 {dimension_numbers = #tpu.dot_dimension_numbers<[1], [0], [0], [1], [0, 0, 1, 1], [], []>} : vector<32x32xf32>, vector<32x24xf32>, vector<32x24xf32> -> vector<32x24xf32>
    %132 = arith.addf %127, %131 : vector<32x24xf32>
    %c0_120 = arith.constant 0 : index
    %c0_121 = arith.constant 0 : index
    %133 = vector.load %arg6[%c0_120, %c0_121] : memref<32x1xf32, #tpu.memory_space<vmem>>, vector<32x1xf32>
    %134 = vector.broadcast %133 : vector<32x1xf32> to vector<32x24xf32>
    %135 = arith.mulf %132, %134 : vector<32x24xf32>
    %c0_122 = arith.constant 0 : index
    %c0_123 = arith.constant 0 : index
    %136 = vector.load %arg7[%c0_122, %c0_123] : memref<32x1xf32, #tpu.memory_space<vmem>>, vector<32x1xf32>
    %137 = vector.broadcast %136 : vector<32x1xf32> to vector<32x24xf32>
    %138 = arith.addf %135, %137 : vector<32x24xf32>
    %cst_124 = arith.constant 0.000000e+00 : f32
    %139 = vector.broadcast %cst_124 : f32 to vector<32x24xf32>
    %140 = arith.maximumf %138, %139 : vector<32x24xf32>
    %c0_125 = arith.constant 0 : index
    %c0_126 = arith.constant 0 : index
    %141 = vector.load %arg8[%c0_125, %c0_126] : memref<24x16xf32, #tpu.memory_space<vmem>>, vector<24x16xf32>
    %cst_127 = arith.constant dense<0.000000e+00> : vector<32x16xf32>
    %142 = tpu.matmul %140, %141, %cst_127 {dimension_numbers = #tpu.dot_dimension_numbers<[1], [0], [0], [1], [0, 0, 1, 1], [], []>} : vector<32x24xf32>, vector<24x16xf32>, vector<32x16xf32> -> vector<32x16xf32>
    %c0_128 = arith.constant 0 : index
    %c0_129 = arith.constant 0 : index
    %c0_130 = arith.constant 0 : index
    %143 = vector.load %arg9[%c0_128, %c0_129, %c0_130] : memref<1x32x16xf32, #tpu.memory_space<vmem>>, vector<1x32x16xf32>
    %144 = vector.shape_cast %143 : vector<1x32x16xf32> to vector<32x16xf32>
    %145 = vector.shape_cast %142 : vector<32x16xf32> to vector<1x32x16xf32>
    tpu.vector_store %arg9[%c0_128, %c0_129, %c0_130], %145 {strides = array<i32>} : memref<1x32x16xf32, #tpu.memory_space<vmem>>, vector<1x32x16xf32>,
    return
  }
  func.func @transform_0(%arg0: i32) -> (i32, i32, i32) {
    %c0_i32 = arith.constant 0 : i32
    %c0_i32_0 = arith.constant 0 : i32
    %c0_i32_1 = arith.constant 0 : i32
    return %arg0, %c0_i32, %c0_i32_0 : i32, i32, i32
  }
  func.func @transform_1(%arg0: i32) -> (i32, i32, i32) {
    %c0_i32 = arith.constant 0 : i32
    %c0_i32_0 = arith.constant 0 : i32
    %c0_i32_1 = arith.constant 0 : i32
    %c0_i32_2 = arith.constant 0 : i32
    return %c0_i32, %c0_i32_0, %c0_i32_1 : i32, i32, i32
  }
  func.func @transform_2(%arg0: i32) -> (i32, i32) {
    %c0_i32 = arith.constant 0 : i32
    %c0_i32_0 = arith.constant 0 : i32
    %c0_i32_1 = arith.constant 0 : i32
    return %c0_i32, %c0_i32_0 : i32, i32
  }
  func.func @transform_3(%arg0: i32) -> (i32, i32) {
    %c0_i32 = arith.constant 0 : i32
    %c0_i32_0 = arith.constant 0 : i32
    %c0_i32_1 = arith.constant 0 : i32
    return %c0_i32, %c0_i32_0 : i32, i32
  }
  func.func @transform_4(%arg0: i32) -> (i32, i32, i32) {
    %c0_i32 = arith.constant 0 : i32
    %c0_i32_0 = arith.constant 0 : i32
    %c0_i32_1 = arith.constant 0 : i32
    %c0_i32_2 = arith.constant 0 : i32
    return %c0_i32, %c0_i32_0, %c0_i32_1 : i32, i32, i32
  }
  func.func @transform_5(%arg0: i32) -> (i32, i32) {
    %c0_i32 = arith.constant 0 : i32
    %c0_i32_0 = arith.constant 0 : i32
    %c0_i32_1 = arith.constant 0 : i32
    return %c0_i32, %c0_i32_0 : i32, i32
  }
  func.func @transform_6(%arg0: i32) -> (i32, i32) {
    %c0_i32 = arith.constant 0 : i32
    %c0_i32_0 = arith.constant 0 : i32
    %c0_i32_1 = arith.constant 0 : i32
    return %c0_i32, %c0_i32_0 : i32, i32
  }
  func.func @transform_7(%arg0: i32) -> (i32, i32) {
    %c0_i32 = arith.constant 0 : i32
    %c0_i32_0 = arith.constant 0 : i32
    %c0_i32_1 = arith.constant 0 : i32
    return %c0_i32, %c0_i32_0 : i32, i32
  }
  func.func @transform_8(%arg0: i32) -> (i32, i32, i32) {
    %c0_i32 = arith.constant 0 : i32
    %c0_i32_0 = arith.constant 0 : i32
    %c0_i32_1 = arith.constant 0 : i32
    return %arg0, %c0_i32, %c0_i32_0 : i32, i32, i32
  }
}

</mosaic_0001>

<bundles_post_ra>
// kernel: unet_encoder_forward.4
= control target key start
LH: loop header
LB: loop body
LE: loop exit
PB: predicated region body
PF: predicated region fallthrough
CT: control target
= control target key end

     0   :  { %s3396_s13 = smov 0   ;;  %s3775_s0 = inlined_call_operand.vmem [shape: f32[2,8,110], index: 0, kind: input, shape index: {}]   ;;  %s3776_s1 = inlined_call_operand.vmem [shape: f32[9,16,8], index: 1, kind: input, shape index: {}]   ;;  %s3777_s2 = inlined_call_operand.vmem [shape: f32[16,1], index: 2, kind: input, shape index: {}]   ;;  %s3778_s3 = inlined_call_operand.vmem [shape: f32[16,1], index: 3, kind: input, shape index: {}]   ;;  %s3779_s4 = inlined_call_operand.vmem [shape: f32[9,16,16], index: 4, kind: input, shape index: {}]   ;;  %s3780_s5 = inlined_call_operand.vmem [shape: f32[16,1], index: 5, kind: input, shape index: {}]   ;;  %s3781_s6 = inlined_call_operand.vmem [shape: f32[16,1], index: 6, kind: input, shape index: {}]   ;;  %s3782_s7 = inlined_call_operand.vmem [shape: f32[80,64], index: 7, kind: input, shape index: {}]   ;;  %s3783_s8 = inlined_call_operand.vmem [shape: f32[4,80,42], index: 8, kind: input, shape index: {}]   ;;  %s3784_s9 = inlined_call_operand.vmem [shape: f32[2,16,64], index: 9, kind: output, shape index: {0}]   ;;  %s3785_s10 = inlined_call_operand.vmem [shape: f32[2,16,42], index: 10, kind: output, shape index: {1}]  }
   0x1 LB: > { %s2623_s14 = sadd.s32 4294967295, %s3328_s13   ;;  %p2627_p0 = scmp.ge.s32.totalorder %s3328_s13, 1  ;;  %s3328_s13 = sphi %s3396_s13, %s21_s13  }
   0x2   : > { %p314_p1 = scmp.lt.s32.totalorder %s3328_s13, 3 }
   0x4   : > { %p315_p2 = pnand %p2627_p0, %p314_p1 }
   0x5   : > { %p356_p3 = scmp.lt.s32.totalorder (!%p315_p2), %s2623_s14, 1  ;;  %vm380_vm0 = vcmask (!%p315_p2), 64512   ;;  %v2639_v0 = vld [vmem:[%s3776_s1 + $0x20] sm:$0xff] (!%p315_p2)  ;;  %s3330_s21 = smov (!%p315_p2), 126   ;;  %v2633_v2 = vld [vmem:[%s3776_s1 + $0x10] sm:$0xff] (!%p315_p2)  ;;  %v1167_v3 = vld [vmem:[%s3777_s2 + $0x8] sm:$0xff] (!%p315_p2)  ;;  %v1196_v35 = vlaneseq (!%p315_p2) }
   0x6   : > { %318 = sbr.rel (%p315_p2) target bundleno = 1192 (0x4a8), region = 56  ;;  %2880 = vmatprep.mubr.msk.f32.mxu0 (!%p315_p2), %vm380_vm0, %v2639_v0  ;;  %s3331_s22 = smov (!%p315_p2), 117   ;;  %2870 = vmatprep.mubr.msk.f32.mxu1 (!%p315_p2), %vm380_vm0, %v2633_v2  ;;  %v1166_v4 = vld [vmem:[%s3777_s2] sm:$0xff] (!%p315_p2)  ;;  %v3338_v5 = vmov (!%p315_p2), 0   ;;  %v1181_v7 = vld [vmem:[%s3778_s3 + $0x8] sm:$0xff] (!%p315_p2)  ;;  %v2643_v11 = vld [vmem:[%s3776_s1 + $0x30] sm:$0xff] (!%p315_p2) }
   0x7   : > { %s3332_s23 = smov (!%p315_p2), 118   ;;  %s3333_s24 = smov (!%p315_p2), 116   ;;  %3281 = vset.pattern.permute.xlu1 (!%p315_p2), %v3338_v5  ;;  %3280 = vset.pattern.permute.xlu0 (!%p315_p2), %v3338_v5  ;;  %v1180_v6 = vld [vmem:[%s3778_s3] sm:$0xff] (!%p315_p2)  ;;  %v2640_v9 = vld [vmem:[%s3776_s1 + $0x28] sm:$0xff] (!%p315_p2)  ;;  %v2644_v14 = vld [vmem:[%s3776_s1 + $0x38] sm:$0xff] (!%p315_p2)  ;;  %vm1219_vm1 = vcmask (!%p315_p2), 89088  }
   0x8   : > { %s3334_s25 = smov (!%p315_p2), 108   ;;  %s3335_s26 = smov (!%p315_p2), 127   ;;  %v2634_v16 = vld [vmem:[%s3776_s1 + $0x18] sm:$0xff] (!%p315_p2)  ;;  %v2647_v17 = vld [vmem:[%s3776_s1 + $0x40] sm:$0xff] (!%p315_p2)  ;;  %v2648_v19 = vld [vmem:[%s3776_s1 + $0x48] sm:$0xff] (!%p315_p2)  ;;  %vm1222_vm2 = vcmask (!%p315_p2), 900824  }
   0x9   : > { %s3336_s27 = smov (!%p315_p2), 107   ;;  %s3337_s28 = smov (!%p315_p2), 106   ;;  %v371_v18 = vld [vmem:[%s3776_s1] sm:$0xff] (!%p315_p2)  ;;  %v372_v20 = vld [vmem:[%s3776_s1 + $0x8] sm:$0xff] (!%p315_p2)  ;;  %v2651_v21 = vld [vmem:[%s3776_s1 + $0x50] sm:$0xff] (!%p315_p2)  ;;  %v3339_v32 = vmov (!%p315_p2), 0.0  }
   0xa   : > { %v2652_v23 = vld [vmem:[%s3776_s1 + $0x58] sm:$0xff] (!%p315_p2)  ;;  %v2655_v24 = vld [vmem:[%s3776_s1 + $0x60] sm:$0xff] (!%p315_p2)  ;;  %v2656_v26 = vld [vmem:[%s3776_s1 + $0x68] sm:$0xff] (!%p315_p2)  ;;  %1221 = vst.msk [vmem:[#allocation2 + $0x8] sm:$0xff] (!%p315_p2), %vm1219_vm1, %v3339_v32  ;;  %v1197_v36 = vand.u32 (!%p315_p2), 127, %v1196_v35  ;;  %s3340_s11 = smov (!%p315_p2), 11  }
   0xb   : > { %v2659_v27 = vld [vmem:[%s3776_s1 + $0x70] sm:$0xff] (!%p315_p2)  ;;  %v2660_v29 = vld [vmem:[%s3776_s1 + $0x78] sm:$0xff] (!%p315_p2)  ;;  %v2663_v30 = vld [vmem:[%s3776_s1 + $0x80] sm:$0xff] (!%p315_p2)  ;;  %1220 = vst.msk [vmem:[#allocation2] sm:$0xff] (!%p315_p2), %vm1219_vm1, %v3339_v32  ;;  %vm1233_vm7 = vcmask (!%p315_p2), 744536   ;;  %vm1251_vm8 = vcmask (!%p315_p2), 130048  }
   0xc   : > { %v2664_v31 = vld [vmem:[%s3776_s1 + $0x88] sm:$0xff] (!%p315_p2)  ;;  %1224 = vst.msk [vmem:[#allocation2 + $0x8] sm:$0xff] (!%p315_p2), %vm1222_vm2, %v3339_v32  ;;  %1223 = vst.msk [vmem:[#allocation2] sm:$0xff] (!%p315_p2), %vm1222_vm2, %v3339_v32  ;;  %v3502_v37 = vmul.u32.u64.low (!%p315_p2), 3435973837, %v1197_v36  ;;  %v3503_v38 = vmul.u32.u64.high 3435973837, %v1197_v36, %v3502_v37  ;;  %v2667_v62 = vld [vmem:[%s3779_s4 + $0x10] sm:$0xff] (!%p315_p2) }
   0xd   : > { %s3787_s14 = smov (!%p356_p3, %s2623_s14), 1  ;;  %v2073_v5 = vld [vmem:[%s3781_s6 + $0x8] sm:$0xff]  ;;  %vm2098_vm9 = vcmask 654336   ;;  %vm2180_vm10 = vcmask 523264   ;;  %vm2532_vm11 = vcmask 343040  }
   0xe   : > { %s2628_s17 = sshll.u32 %s3787_s14, 3  ;;  %v1204_v39 = vshrl.u32 %v3503_v38, 3  ;;  %v2674_v35 = vld [vmem:[%s3779_s4 + $0x28] sm:$0xff]  ;;  %s2743_s12 = sshll.u32 %s3787_s14, 4 }
   0xf   : > { %s359_s20 = scalar_lea.vmem %s3775_s0, %s2628_s17  ;;  %s364_s17 = scalar_lea.vmem %s3784_s9, %s2743_s12 }
  0x10   : > { %v370_v1 = vld [vmem:[%s359_s20] sm:$0xff]  ;;  %v1205_v40 = vmul.u32 10, %v1204_v39  ;;  %s369_s18 = scalar_lea.vmem %s3785_s10, %s2743_s12 }
  0x11   : > { %546 = vrot.lane.b32.xlu0 %v370_v1, %s3330_s21  ;;  %724 = vrot.lane.b32.xlu1 %v370_v1, %s3331_s22 }
  0x12   : > { %v1206_v41 = vsub.s32 %v1197_v36, %v1205_v40  ;;  %v2677_v36 = vld [vmem:[%s3779_s4 + $0x30] sm:$0xff] }
  0x14   : > { %vm1209_vm3 = vcmp.ne.s32.totalorder %v1206_v41, 0  ;;  %vm1210_vm4 = vcmp.lt.s32.totalorder %v1206_v41, 0  ;;  %v1212_v44 = vadd.s32 10, %v1206_v41 }
  0x15   : > { %635 = vrot.lane.b32.xlu0 %v370_v1, %s3332_s23  ;;  %813 = vrot.lane.b32.xlu1 %v370_v1, %s3333_s24  ;;  %vm1211_vm5 = vmand %vm1210_vm4, %vm1209_vm3 }
  0x16   : > { %v1213_v50 = vsel %vm1211_vm5, %v1212_v44, %v1206_v41  ;;  %v2678_v41 = vld [vmem:[%s3779_s4 + $0x38] sm:$0xff] }
  0x17   : > { %vm1214_vm6 = vcmp.lt.s32.totalorder %v1213_v50, 8 }
  0x19   : > { %902 = vrot.lane.b32.xlu0 %v370_v1, %s3334_s25  ;;  %377 = vrot.lane.b32.xlu1 %v370_v1, %s3335_s26 }
  0x1d   : > { %991 = vrot.lane.b32.xlu0 %v370_v1, %s3336_s27  ;;  %1080 = vrot.lane.b32.xlu1 %v370_v1, %s3337_s28 }
  0x21   : > { %1175 = vperm.xlu1 %3281, %v1167_v3   ;;  %1170 = vperm.xlu0 %3280, %v1166_v4   ;;  %v2059_v3 = vld [vmem:[%s3780_s5 + $0x8] sm:$0xff]  ;;  %v2058_v4 = vld [vmem:[%s3780_s5] sm:$0xff] }
  0x25   : > { %1184 = vperm.xlu1 %3281, %v1180_v6   ;;  %1189 = vperm.xlu0 %3280, %v1181_v7   ;;  %v2072_v6 = vld [vmem:[%s3781_s6] sm:$0xff] }
  0x26   : > { %v2088_v7 = vld [vmem:[%s3782_s7] sm:$0xff] }
  0x83   : > { %v547_v8 = vpop.permute.xlu0 %546  ;;  %v725_v10 = vpop.permute.xlu1 %724 }
  0x84   : > { %2878 = vmatprep.subr.mxu0 %v547_v8 }
  0x85   : > { %2879 = vmatpush3.msra.mxu0 %v547_v8  ;;  %v2089_v8 = vld [vmem:[%s3782_s7 + $0x8] sm:$0xff] }
  0x86   : > { %2881 = vmatmul.mubr.msk.f32.vlgmr.msra.gmra.mrb[0].mxu0 %vm380_vm0, %v2640_v9  ;;  %v3127_v9 = vpack.c.bf16 %v2089_v8, %v2088_v7  ;;  %v2187_v7 = vld [vmem:[%s3783_s8 + $0x20] sm:$0xff]  ;;  %v2188_v8 = vld [vmem:[%s3783_s8 + $0x28] sm:$0xff] }
  0x87   : > { %v636_v12 = vpop.permute.xlu0 %635  ;;  %2885 = vmatprep.mubr.msk.f32.mxu0 %vm380_vm0, %v2643_v11  ;;  %v814_v13 = vpop.permute.xlu1 %813  ;;  %v2091_v11 = vld [vmem:[%s3782_s7 + $0x18] sm:$0xff] }
  0x88   : > { %2883 = vmatprep.subr.mxu0 %v636_v12 }
  0x89   : > { %2884 = vmatpush3.msra.mxu0 %v636_v12 }
  0x8a   : > { %2888 = vmatprep.subr.mxu0 %v725_v10 }
  0x8b   : > { %v378_v15 = vpop.permute.xlu1 %377  ;;  %v903_v22 = vpop.permute.xlu0 %902 }
  0x8c   : > { %2868 = vmatprep.subr.mxu1 %v378_v15 }
  0x8d   : > { %2869 = vmatpush3.msra.mxu1 %v378_v15 }
  0x8e   : > { %2886 = vmatmul.mubr.msk.f32.vlgmr.msra.gmra.mrb[0].mxu0 %vm380_vm0, %v2644_v14  ;;  %2871 = vmatmul.mubr.msk.f32.vlgmr.msra.gmra.mrb[0].mxu1 %vm380_vm0, %v2634_v16  ;;  %v2093_v14 = vld [vmem:[%s3782_s7 + $0x28] sm:$0xff] }
  0x8f   : > { %2889 = vmatpush3.msra.mxu0 %v725_v10  ;;  %2890 = vmatprep.mubr.msk.f32.mxu0 %vm380_vm0, %v2647_v17  ;;  %v992_v25 = vpop.permute.xlu0 %991  ;;  %v1081_v28 = vpop.permute.xlu1 %1080  ;;  %v2090_v10 = vld [vmem:[%s3782_s7 + $0x10] sm:$0xff] }
  0x90   : > { %2893 = vmatprep.subr.mxu0 %v814_v13  ;;  %2873 = vmatprep.subr.mxu1 %v370_v1  ;;  %v3131_v12 = vpack.c.bf16 %v2091_v11, %v2090_v10  ;;  %v2094_v10 = vld [vmem:[%s3782_s7 + $0x30] sm:$0xff]  ;;  %v2095_v11 = vld [vmem:[%s3782_s7 + $0x38] sm:$0xff] }
  0x91   : > { %2874 = vmatpush3.msra.mxu1 %v370_v1  ;;  %2875 = vmatprep.mubr.msk.f32.mxu1 %vm380_vm0, %v371_v18 }
  0x96   : > { %2891 = vmatmul.mubr.msk.f32.vlgmr.msra.gmra.mrb[0].mxu0 %vm380_vm0, %v2648_v19  ;;  %2876 = vmatmul.mubr.msk.f32.vlgmr.msra.gmra.mrb[0].mxu1 %vm380_vm0, %v372_v20 }
  0x97   : > { %2894 = vmatpush3.msra.mxu0 %v814_v13  ;;  %2895 = vmatprep.mubr.msk.f32.mxu0 %vm380_vm0, %v2651_v21  ;;  %v2092_v13 = vld [vmem:[%s3782_s7 + $0x20] sm:$0xff] }
  0x98   : > { %2898 = vmatprep.subr.mxu0 %v903_v22  ;;  %2917 = vmatprep.mubr.msk.f32.mxu1 %vm1251_vm8, %v2667_v62  ;;  %v3135_v15 = vpack.c.bf16 %v2093_v14, %v2092_v13  ;;  %v2183_v62 = vld [vmem:[%s3783_s8] sm:$0xff]  ;;  %v3139_v13 = vpack.c.bf16 %v2095_v11, %v2094_v10  ;;  %v2190_v14 = vld [vmem:[%s3783_s8 + $0x38] sm:$0xff]  ;;  %v2736_v10 = vld [vmem:[%s3783_s8 + $0x128] sm:$0xff] }
  0x9e   : > { %2896 = vmatmul.mubr.msk.f32.vlgmr.msra.gmra.mrb[0].mxu0 %vm380_vm0, %v2652_v23  ;;  %v2668_v23 = vld [vmem:[%s3779_s4 + $0x18] sm:$0xff] }
  0x9f   : > { %2899 = vmatpush3.msra.mxu0 %v903_v22  ;;  %2900 = vmatprep.mubr.msk.f32.mxu0 %vm380_vm0, %v2655_v24  ;;  %v1238_v24 = vld [vmem:[%s3779_s4] sm:$0xff] }
  0xa0   : > { %2903 = vmatprep.subr.mxu0 %v992_v25  ;;  %v1171_v42 = vpop.permute.xlu0 %1170  ;;  %v1176_v43 = vpop.permute.xlu1 %1175 }
  0xa4   : > { %v1190_v52 = vpop.permute.xlu0 %1189  ;;  %v1185_v53 = vpop.permute.xlu1 %1184 }
  0xa6   : > { %2901 = vmatmul.mubr.msk.f32.vlgmr.msra.gmra.mrb[0].mxu0 %vm380_vm0, %v2656_v26 }
  0xa7   : > { %2904 = vmatpush3.msra.mxu0 %v992_v25  ;;  %2905 = vmatprep.mubr.msk.f32.mxu0 %vm380_vm0, %v2659_v27 }
  0xa8   : > { %2908 = vmatprep.subr.mxu0 %v1081_v28 }
  0xae   : > { %2906 = vmatmul.mubr.msk.f32.vlgmr.msra.gmra.mrb[0].mxu0 %vm380_vm0, %v2660_v29  ;;  %v1239_v29 = vld [vmem:[%s3779_s4 + $0x8] sm:$0xff] }
  0xaf   : > { %2909 = vmatpush3.msra.mxu0 %v1081_v28  ;;  %2910 = vmatprep.mubr.msk.f32.mxu0 %vm380_vm0, %v2663_v30  ;;  %v2673_v30 = vld [vmem:[%s3779_s4 + $0x20] sm:$0xff] }
  0xb0   : > { %3128 = vmatprep.subr.bf16.mxu0 %v3127_v9 }
  0xb6   : > { %2911 = vmatmul.mubr.msk.f32.vlgmr.msra.gmra.mrb[0].mxu0 %vm380_vm0, %v2664_v31 }
  0xb7   : > { %3130 = vmatpush3.bf16.msra.mxu0 %v3127_v9  ;;  %v3155_v9 = vpack.c.bf16 %v2188_v8, %v2187_v7  ;;  %v2734_v7 = vld [vmem:[%s3783_s8 + $0x118] sm:$0xff] }
  0xb8   : > { %3132 = vmatprep.subr.bf16.mxu0 %v3131_v12 }
  0xbb   : > { %3134 = vmatpush3.bf16.msra.mxu0 %v3131_v12  ;;  %v2189_v12 = vld [vmem:[%s3783_s8 + $0x30] sm:$0xff] }
  0xbc   : > { %3136 = vmatprep.subr.bf16.mxu0 %v3135_v15 }
  0xbf   : > { %3138 = vmatpush3.bf16.msra.mxu0 %v3135_v15  ;;  %v3159_v15 = vpack.c.bf16 %v2190_v14, %v2189_v12  ;;  %v2737_v12 = vld [vmem:[%s3783_s8 + $0x130] sm:$0xff] }
  0xc0   : > { %3140 = vmatprep.subr.bf16.mxu0 %v3139_v13 }
  0xc3   : > { %3142 = vmatpush3.bf16.msra.mxu0 %v3139_v13  ;;  %v2738_v13 = vld [vmem:[%s3783_s8 + $0x138] sm:$0xff] }
  0xc4   : > { %v3223_v14 = vpack.c.bf16 %v2738_v13, %v2737_v12 }
 0x169   : > { %v2877_v33 = vpop.f32.mrb[0].mxu1 }
 0x16a   : > { %v534_v34 = vpop.f32.mrb[1].mxu1 }
 0x189   : > { %v2912_v45 = vpop.f32.mrb[0].mxu0 }
 0x18a   : > { %v3227_v46 = vadd.f32 %v2912_v45, %v2877_v33  ;;  %v1155_v47 = vpop.f32.mrb[1].mxu0 }
 0x18b   : > { %v3228_v48 = vadd.f32 %v1155_v47, %v534_v34  ;;  %v2682_v47 = vld [vmem:[%s3779_s4 + $0x48] sm:$0xff] }
 0x18c   : > { %v1179_v49 = vmul.f32 %v3227_v46, %v1176_v43 }
 0x18d   : > { %v1178_v51 = vmul.f32 %v3228_v48, %v1171_v42  ;;  %v2681_v42 = vld [vmem:[%s3779_s4 + $0x40] sm:$0xff]  ;;  %v2685_v48 = vld [vmem:[%s3779_s4 + $0x50] sm:$0xff] }
 0x18e   : > { %v1193_v54 = vadd.f32 %v1190_v52, %v1179_v49 }
 0x18f   : > { %v1192_v55 = vadd.f32 %v1185_v53, %v1178_v51  ;;  %v2686_v53 = vld [vmem:[%s3779_s4 + $0x58] sm:$0xff] }
 0x190   : > { %v1195_v56 = vmax.f32 %v1193_v54, 0.0  ;;  %v2689_v54 = vld [vmem:[%s3779_s4 + $0x60] sm:$0xff] }
 0x191   : > { %v1194_v57 = vmax.f32 %v1192_v55, 0.0 }
 0x192   : > { %v1218_v58 = vsel %vm1214_vm6, %v1195_v56, 0.0 }
 0x193   : > { %1229 = vrot.lane.b32.xlu0 %v1218_v58, %s3340_s11  ;;  %v1217_v59 = vsel %vm1214_vm6, %v1194_v57, 0.0 }
 0x194   : > { %1227 = vrot.lane.b32.xlu1 %v1217_v59, %s3340_s11  ;;  %v2690_v59 = vld [vmem:[%s3779_s4 + $0x68] sm:$0xff] }
 0x205   : > { %v1230_v60 = vpop.permute.xlu0 %1229 }
 0x206   : > { %1235 = vst.msk [vmem:[#allocation2 + $0x8] sm:$0xff] %vm1233_vm7, %v1230_v60  ;;  %v1228_v61 = vpop.permute.xlu1 %1227  ;;  %v2693_v60 = vld [vmem:[%s3779_s4 + $0x70] sm:$0xff] }
 0x207   : > { %1234 = vst.msk [vmem:[#allocation2] sm:$0xff] %vm1233_vm7, %v1228_v61 }
 0x20d   : > { %v1237_v63 = vld [vmem:[#allocation2 + $0x8] sm:$0xff] }
 0x20e   : > { %v1236_v0 = vld [vmem:[#allocation2] sm:$0xff] }
 0x20f   : > { %v3287_v1 = vpack.i.bf16 %v1237_v63, %v1236_v0  ;;  %v3095_v2 = vpack.c.bf16 %v1237_v63, %v1236_v0  ;;  %v2184_v63 = vld [vmem:[%s3783_s8 + $0x8] sm:$0xff]  ;;  %v2694_v0 = vld [vmem:[%s3779_s4 + $0x78] sm:$0xff] }
 0x211   : > { %3288 = vrot.lane.b32.xlu0 %v3287_v1, %s3330_s21  ;;  %3283 = vrot.lane.b32.xlu1 %v3287_v1, %s3335_s26 }
 0x215   : > { %3298 = vrot.lane.b32.xlu0 %v3287_v1, %s3331_s22  ;;  %3293 = vrot.lane.b32.xlu1 %v3287_v1, %s3332_s23 }
 0x219   : > { %3308 = vrot.lane.b32.xlu0 %v3287_v1, %s3334_s25  ;;  %3303 = vrot.lane.b32.xlu1 %v3287_v1, %s3333_s24 }
 0x21d   : > { %3318 = vrot.lane.b32.xlu0 %v3287_v1, %s3337_s28  ;;  %3313 = vrot.lane.b32.xlu1 %v3287_v1, %s3336_s27  ;;  %v2697_v1 = vld [vmem:[%s3779_s4 + $0x80] sm:$0xff] }
 0x221   : > { %2067 = vperm.xlu0 %3280, %v2059_v3   ;;  %2062 = vperm.xlu1 %3281, %v2058_v4   ;;  %v2185_v3 = vld [vmem:[%s3783_s8 + $0x10] sm:$0xff]  ;;  %v2186_v4 = vld [vmem:[%s3783_s8 + $0x18] sm:$0xff] }
 0x225   : > { %2081 = vperm.xlu0 %3280, %v2073_v5   ;;  %2076 = vperm.xlu1 %3281, %v2072_v6   ;;  %v2698_v5 = vld [vmem:[%s3779_s4 + $0x88] sm:$0xff]  ;;  %v3151_v6 = vpack.c.bf16 %v2186_v4, %v2185_v3  ;;  %v2731_v3 = vld [vmem:[%s3783_s8 + $0x100] sm:$0xff] }
 0x226   : > { %v2732_v4 = vld [vmem:[%s3783_s8 + $0x108] sm:$0xff] }
 0x283   : > { %v3284_v16 = vpop.permute.xlu1 %3283  ;;  %v3289_v19 = vpop.permute.xlu0 %3288 }
 0x284   : > { %v3286_v17 = vunpack.i.h.bf16 %v3284_v16  ;;  %v3285_v18 = vunpack.i.l.bf16 %v3284_v16  ;;  %v3291_v21 = vunpack.i.h.bf16 %v3289_v19  ;;  %v3290_v22 = vunpack.i.l.bf16 %v3289_v19  ;;  %v2096_v16 = vld [vmem:[%s3782_s7 + $0x40] sm:$0xff] }
 0x286   : > { %v3091_v20 = vpack.c.bf16 %v3286_v17, %v3285_v18  ;;  %v3099_v25 = vpack.c.bf16 %v3291_v21, %v3290_v22  ;;  %v2097_v17 = vld [vmem:[%s3782_s7 + $0x48] sm:$0xff]  ;;  %v2191_v18 = vld [vmem:[%s3783_s8 + $0x40] sm:$0xff]  ;;  %v2705_v22 = vld [vmem:[%s3783_s8 + $0x50] sm:$0xff] }
 0x287   : > { %v3294_v26 = vpop.permute.xlu1 %3293  ;;  %v3299_v32 = vpop.permute.xlu0 %3298  ;;  %v3143_v19 = vpack.c.bf16 %v2097_v17, %v2096_v16 }
 0x288   : > { %3092 = vmatprep.subr.bf16.mxu1 %v3091_v20  ;;  %v3296_v27 = vunpack.i.h.bf16 %v3294_v26  ;;  %v3295_v28 = vunpack.i.l.bf16 %v3294_v26  ;;  %v3301_v33 = vunpack.i.h.bf16 %v3299_v32  ;;  %v3300_v34 = vunpack.i.l.bf16 %v3299_v32  ;;  %v2718_v26 = vld [vmem:[%s3783_s8 + $0xa8] sm:$0xff] }
 0x289   : > { %3094 = vmatpush3.bf16.msra.mxu1 %v3091_v20  ;;  %v2192_v20 = vld [vmem:[%s3783_s8 + $0x48] sm:$0xff]  ;;  %3144 = vmatprep.subr.bf16.mxu0 %v3143_v19 }
 0x28a   : > { %3096 = vmatprep.subr.bf16.mxu1 %v3095_v2  ;;  %v3103_v31 = vpack.c.bf16 %v3296_v27, %v3295_v28  ;;  %v3107_v37 = vpack.c.bf16 %v3301_v33, %v3300_v34  ;;  %v3163_v21 = vpack.c.bf16 %v2192_v20, %v2191_v18  ;;  %3146 = vmatpush3.bf16.msra.mxu0 %v3143_v19 }
 0x28b   : > { %v3304_v38 = vpop.permute.xlu1 %3303  ;;  %v3309_v44 = vpop.permute.xlu0 %3308 }
 0x28c   : > { %2918 = vmatmul.mubr.msk.f32.vlgmr.msra.gmra.mrb[2].mxu1 %vm1251_vm8, %v2668_v23  ;;  %v3306_v39 = vunpack.i.h.bf16 %v3304_v38  ;;  %v3305_v40 = vunpack.i.l.bf16 %v3304_v38  ;;  %v3311_v45 = vunpack.i.h.bf16 %v3309_v44  ;;  %v3310_v46 = vunpack.i.l.bf16 %v3309_v44  ;;  %v2706_v23 = vld [vmem:[%s3783_s8 + $0x58] sm:$0xff]  ;;  %v2707_v38 = vld [vmem:[%s3783_s8 + $0x60] sm:$0xff]  ;;  %v2709_v44 = vld [vmem:[%s3783_s8 + $0x70] sm:$0xff] }
 0x28d   : > { %3098 = vmatpush3.bf16.msra.mxu1 %v3095_v2  ;;  %2924 = vmatprep.mubr.msk.f32.mxu1 %vm1251_vm8, %v1238_v24  ;;  %v3147_v2 = vpack.c.bf16 %v2184_v63, %v2183_v62  ;;  %v2717_v24 = vld [vmem:[%s3783_s8 + $0xa0] sm:$0xff] }
 0x28e   : > { %3100 = vmatprep.subr.bf16.mxu1 %v3099_v25  ;;  %v3111_v43 = vpack.c.bf16 %v3306_v39, %v3305_v40  ;;  %v3115_v49 = vpack.c.bf16 %v3311_v45, %v3310_v46  ;;  %v3187_v27 = vpack.c.bf16 %v2718_v26, %v2717_v24  ;;  %v2708_v39 = vld [vmem:[%s3783_s8 + $0x68] sm:$0xff]  ;;  %v2719_v40 = vld [vmem:[%s3783_s8 + $0xb0] sm:$0xff] }
 0x28f   : > { %v3314_v50 = vpop.permute.xlu1 %3313  ;;  %v3319_v56 = vpop.permute.xlu0 %3318  ;;  %v3171_v45 = vpack.c.bf16 %v2708_v39, %v2707_v38 }
 0x290   : > { %v3316_v51 = vunpack.i.h.bf16 %v3314_v50  ;;  %v3315_v52 = vunpack.i.l.bf16 %v3314_v50  ;;  %v3321_v57 = vunpack.i.h.bf16 %v3319_v56  ;;  %v3320_v58 = vunpack.i.l.bf16 %v3319_v56 }
 0x292   : > { %v3119_v55 = vpack.c.bf16 %v3316_v51, %v3315_v52  ;;  %v3123_v61 = vpack.c.bf16 %v3321_v57, %v3320_v58  ;;  %v2711_v52 = vld [vmem:[%s3783_s8 + $0x80] sm:$0xff]  ;;  %v2713_v58 = vld [vmem:[%s3783_s8 + $0x90] sm:$0xff] }
 0x294   : > { %2925 = vmatmul.mubr.msk.f32.vlgmr.msra.gmra.mrb[2].mxu1 %vm1251_vm8, %v1239_v29 }
 0x295   : > { %3102 = vmatpush3.bf16.msra.mxu1 %v3099_v25  ;;  %2931 = vmatprep.mubr.msk.f32.mxu1 %vm1251_vm8, %v2673_v30  ;;  %v3167_v25 = vpack.c.bf16 %v2706_v23, %v2705_v22 }
 0x296   : > { %3104 = vmatprep.subr.bf16.mxu1 %v3103_v31 }
 0x297   : > { %3168 = vmatprep.subr.bf16.mxu0 %v3167_v25 }
 0x29c   : > { %2932 = vmatmul.mubr.msk.f32.vlgmr.msra.gmra.mrb[2].mxu1 %vm1251_vm8, %v2674_v35 }
 0x29d   : > { %3106 = vmatpush3.bf16.msra.mxu1 %v3103_v31  ;;  %2938 = vmatprep.mubr.msk.f32.mxu1 %vm1251_vm8, %v2677_v36 }
 0x29e   : > { %3108 = vmatprep.subr.bf16.mxu1 %v3107_v37 }
 0x2a0   : > { %v2068_v28 = vpop.permute.xlu0 %2067  ;;  %v2063_v29 = vpop.permute.xlu1 %2062 }
 0x2a4   : > { %2939 = vmatmul.mubr.msk.f32.vlgmr.msra.gmra.mrb[2].mxu1 %vm1251_vm8, %v2678_v41  ;;  %v2082_v33 = vpop.permute.xlu0 %2081  ;;  %v2077_v35 = vpop.permute.xlu1 %2076  ;;  %v2720_v41 = vld [vmem:[%s3783_s8 + $0xb8] sm:$0xff] }
 0x2a5   : > { %3110 = vmatpush3.bf16.msra.mxu1 %v3107_v37  ;;  %2945 = vmatprep.mubr.msk.f32.mxu1 %vm1251_vm8, %v2681_v42  ;;  %v3191_v46 = vpack.c.bf16 %v2720_v41, %v2719_v40 }
 0x2a6   : > { %3112 = vmatprep.subr.bf16.mxu1 %v3111_v43 }
 0x2ac   : > { %2946 = vmatmul.mubr.msk.f32.vlgmr.msra.gmra.mrb[2].mxu1 %vm1251_vm8, %v2682_v47  ;;  %v2710_v47 = vld [vmem:[%s3783_s8 + $0x78] sm:$0xff] }
 0x2ad   : > { %3114 = vmatpush3.bf16.msra.mxu1 %v3111_v43  ;;  %2952 = vmatprep.mubr.msk.f32.mxu1 %vm1251_vm8, %v2685_v48  ;;  %v2721_v48 = vld [vmem:[%s3783_s8 + $0xc0] sm:$0xff]  ;;  %v3175_v50 = vpack.c.bf16 %v2710_v47, %v2709_v44 }
 0x2ae   : > { %3116 = vmatprep.subr.bf16.mxu1 %v3115_v49 }
 0x2b4   : > { %2953 = vmatmul.mubr.msk.f32.vlgmr.msra.gmra.mrb[2].mxu1 %vm1251_vm8, %v2686_v53  ;;  %v2712_v53 = vld [vmem:[%s3783_s8 + $0x88] sm:$0xff] }
 0x2b5   : > { %3118 = vmatpush3.bf16.msra.mxu1 %v3115_v49  ;;  %2959 = vmatprep.mubr.msk.f32.mxu1 %vm1251_vm8, %v2689_v54  ;;  %v2722_v49 = vld [vmem:[%s3783_s8 + $0xc8] sm:$0xff]  ;;  %v2723_v54 = vld [vmem:[%s3783_s8 + $0xd0] sm:$0xff]  ;;  %v3179_v56 = vpack.c.bf16 %v2712_v53, %v2711_v52 }
 0x2b6   : > { %3120 = vmatprep.subr.bf16.mxu1 %v3119_v55  ;;  %v3195_v51 = vpack.c.bf16 %v2722_v49, %v2721_v48 }
 0x2bc   : > { %2960 = vmatmul.mubr.msk.f32.vlgmr.msra.gmra.mrb[2].mxu1 %vm1251_vm8, %v2690_v59  ;;  %v2714_v59 = vld [vmem:[%s3783_s8 + $0x98] sm:$0xff] }
 0x2bd   : > { %3122 = vmatpush3.bf16.msra.mxu1 %v3119_v55  ;;  %2966 = vmatprep.mubr.msk.f32.mxu1 %vm1251_vm8, %v2693_v60  ;;  %v2724_v55 = vld [vmem:[%s3783_s8 + $0xd8] sm:$0xff]  ;;  %v2725_v60 = vld [vmem:[%s3783_s8 + $0xe0] sm:$0xff]  ;;  %v3183_v62 = vpack.c.bf16 %v2714_v59, %v2713_v58 }
 0x2be   : > { %3124 = vmatprep.subr.bf16.mxu1 %v3123_v61  ;;  %v3199_v57 = vpack.c.bf16 %v2724_v55, %v2723_v54 }
 0x2c4   : > { %2967 = vmatmul.mubr.msk.f32.vlgmr.msra.gmra.mrb[2].mxu1 %vm1251_vm8, %v2694_v0  ;;  %v2729_v0 = vld [vmem:[%s3783_s8 + $0xf0] sm:$0xff] }
 0x2c5   : > { %3126 = vmatpush3.bf16.msra.mxu1 %v3123_v61  ;;  %2973 = vmatprep.mubr.msk.f32.mxu1 %vm1251_vm8, %v2697_v1  ;;  %v2726_v61 = vld [vmem:[%s3783_s8 + $0xe8] sm:$0xff]  ;;  %v2730_v1 = vld [vmem:[%s3783_s8 + $0xf8] sm:$0xff] }
 0x2c6   : > { %3148 = vmatprep.subr.bf16.mxu1 %v3147_v2  ;;  %v3203_v63 = vpack.c.bf16 %v2726_v61, %v2725_v60 }
 0x2cc   : > { %2974 = vmatmul.mubr.msk.f32.vlgmr.msra.gmra.mrb[2].mxu1 %vm1251_vm8, %v2698_v5  ;;  %v3211_v5 = vpack.c.bf16 %v2732_v4, %v2731_v3 }
 0x2cd   : > { %3150 = vmatpush3.bf16.msra.mxu1 %v3147_v2  ;;  %v3207_v2 = vpack.c.bf16 %v2730_v1, %v2729_v0 }
 0x2ce   : > { %3152 = vmatprep.subr.bf16.mxu1 %v3151_v6 }
 0x2d1   : > { %3154 = vmatpush3.bf16.msra.mxu1 %v3151_v6  ;;  %v2733_v6 = vld [vmem:[%s3783_s8 + $0x110] sm:$0xff] }
 0x2d2   : > { %3156 = vmatprep.subr.bf16.mxu1 %v3155_v9  ;;  %v3215_v8 = vpack.c.bf16 %v2734_v7, %v2733_v6 }
 0x2d5   : > { %3158 = vmatpush3.bf16.msra.mxu1 %v3155_v9  ;;  %v2735_v9 = vld [vmem:[%s3783_s8 + $0x120] sm:$0xff] }
 0x2d6   : > { %3160 = vmatprep.subr.bf16.mxu1 %v3159_v15  ;;  %v3219_v11 = vpack.c.bf16 %v2736_v10, %v2735_v9 }
 0x2d9   : > { %3162 = vmatpush3.bf16.msra.mxu1 %v3159_v15 }
 0x2da   : > { %3164 = vmatprep.subr.bf16.mxu1 %v3163_v21 }
 0x2dd   : > { %3166 = vmatpush3.bf16.msra.mxu1 %v3163_v21 }
 0x2de   : > { %3188 = vmatprep.subr.bf16.mxu1 %v3187_v27 }
 0x39f   : > { %v2975_v30 = vpop.f32.mrb[2].mxu1 }
 0x3a0   : > { %v2071_v31 = vmul.f32 %v2975_v30, %v2068_v28  ;;  %v2047_v32 = vpop.f32.mrb[3].mxu1 }
 0x3a1   : > { %v2070_v34 = vmul.f32 %v2063_v29, %v2047_v32 }
 0x3a2   : > { %v2085_v36 = vadd.f32 %v2082_v33, %v2071_v31 }
 0x3a3   : > { %v2084_v37 = vadd.f32 %v2077_v35, %v2070_v34 }
 0x3a4   : > { %v3682_v43 = vmax.f32 %v2085_v36, 0.0 }
 0x3a5   : > { %v2086_v42 = vmax.f32 %v2084_v37, 0.0 }
 0x3a7   : > { %2996 = vmatprep.mubr.msk.f32.mxu0 %vm2098_vm9, %v2086_v42  ;;  %3019 = vmatprep.mubr.msk.f32.mxu1 %vm2098_vm9, %v2086_v42 }
 0x3a8   : > { %2997 = vmatmul.mubr.msk.f32.vlgmr.msra.gmra.mrb[2].mxu0 %vm2098_vm9, %v3682_v43  ;;  %3020 = vmatmul.mubr.msk.f32.vlgmr.msra.gmra.mrb[4].mxu1 %vm2098_vm9, %v3682_v43 }
 0x3a9   : > { %3170 = vmatpush3.bf16.msra.mxu0 %v3167_v25  ;;  %3190 = vmatpush3.bf16.msra.mxu1 %v3187_v27 }
 0x3aa   : > { %3042 = vmatprep.mubr.msk.f32.mxu0 %vm2098_vm9, %v2086_v42  ;;  %3065 = vmatprep.mubr.msk.f32.mxu1 %vm2098_vm9, %v2086_v42 }
 0x3ab   : > { %3172 = vmatprep.subr.bf16.mxu0 %v3171_v45  ;;  %3192 = vmatprep.subr.bf16.mxu1 %v3191_v46 }
 0x3ad   : > { %3174 = vmatpush3.bf16.msra.mxu0 %v3171_v45  ;;  %3194 = vmatpush3.bf16.msra.mxu1 %v3191_v46 }
 0x3ae   : > { %3176 = vmatprep.subr.bf16.mxu0 %v3175_v50  ;;  %3196 = vmatprep.subr.bf16.mxu1 %v3195_v51 }
 0x3b1   : > { %3178 = vmatpush3.bf16.msra.mxu0 %v3175_v50  ;;  %3198 = vmatpush3.bf16.msra.mxu1 %v3195_v51 }
 0x3b2   : > { %3180 = vmatprep.subr.bf16.mxu0 %v3179_v56  ;;  %3200 = vmatprep.subr.bf16.mxu1 %v3199_v57 }
 0x3b5   : > { %3182 = vmatpush3.bf16.msra.mxu0 %v3179_v56  ;;  %3202 = vmatpush3.bf16.msra.mxu1 %v3199_v57 }
 0x3b6   : > { %3184 = vmatprep.subr.bf16.mxu0 %v3183_v62  ;;  %3204 = vmatprep.subr.bf16.mxu1 %v3203_v63 }
 0x3b9   : > { %3186 = vmatpush3.bf16.msra.mxu0 %v3183_v62  ;;  %3206 = vmatpush3.bf16.msra.mxu1 %v3203_v63 }
 0x3ba   : > { %3208 = vmatprep.subr.bf16.mxu0 %v3207_v2 }
 0x3bc   : > { %3043 = vmatmul.mubr.msk.f32.vlgmr.msra.gmra.mrb[4].mxu0 %vm2098_vm9, %v3682_v43  ;;  %3066 = vmatmul.mubr.msk.f32.vlgmr.msra.gmra.mrb[6].mxu1 %vm2098_vm9, %v3682_v43 }
 0x3bd   : > { %3210 = vmatpush3.bf16.msra.mxu0 %v3207_v2  ;;  %3088 = vmatprep.mubr.msk.f32.mxu0 %vm2098_vm9, %v2086_v42 }
 0x3be   : > { %3212 = vmatprep.subr.bf16.mxu0 %v3211_v5 }
 0x3c1   : > { %3214 = vmatpush3.bf16.msra.mxu0 %v3211_v5 }
 0x3c2   : > { %3216 = vmatprep.subr.bf16.mxu0 %v3215_v8 }
 0x3c5   : > { %3218 = vmatpush3.bf16.msra.mxu0 %v3215_v8 }
 0x3c6   : > { %3220 = vmatprep.subr.bf16.mxu0 %v3219_v11 }
 0x3c9   : > { %3222 = vmatpush3.bf16.msra.mxu0 %v3219_v11 }
 0x3ca   : > { %3224 = vmatprep.subr.bf16.mxu0 %v3223_v14 }
 0x3cd   : > { %3226 = vmatpush3.bf16.msra.mxu0 %v3223_v14 }
 0x3d0   : > { %3089 = vmatmul.mubr.msk.f32.vlgmr.msra.gmra.mrb[6].mxu0 %vm2098_vm9, %v3682_v43 }
 0x47b   : > { %v2998_v15 = vpop.f32.mrb[2].mxu0  ;;  %v3021_v16 = vpop.f32.mrb[4].mxu1 }
 0x47c   : > { %2182 = vst.msk [vmem:[%s364_s17 + $0x8] sm:$0xff] %vm2180_vm10, %v2998_v15  ;;  %v2171_v17 = vpop.f32.mrb[3].mxu0  ;;  %v2259_v18 = vpop.f32.mrb[5].mxu1 }
 0x47d   : > { %2181 = vst.msk [vmem:[%s364_s17] sm:$0xff] %vm2180_vm10, %v2171_v17 }
 0x48f   : > { %v3044_v19 = vpop.f32.mrb[4].mxu0  ;;  %v3067_v20 = vpop.f32.mrb[6].mxu1 }
 0x490   : > { %v2355_v21 = vmax.f32 %v3021_v16, %v3044_v19  ;;  %v2345_v22 = vpop.f32.mrb[5].mxu0  ;;  %v2433_v23 = vpop.f32.mrb[7].mxu1 }
 0x491   : > { %v2354_v24 = vmax.f32 %v2259_v18, %v2345_v22 }
 0x492   : > { %v2443_v25 = vmax.f32 %v2355_v21, %v3067_v20 }
 0x493   : > { %v2442_v26 = vmax.f32 %v2354_v24, %v2433_v23 }
 0x4a3   : > { %v3090_v27 = vpop.f32.mrb[6].mxu0 }
 0x4a4   : > { %v2531_v28 = vmax.f32 %v2443_v25, %v3090_v27  ;;  %v2521_v29 = vpop.f32.mrb[7].mxu0 }
 0x4a5   : > { %v2530_v30 = vmax.f32 %v2442_v26, %v2521_v29 }
 0x4a6   : > { %2534 = vst.msk [vmem:[%s369_s18 + $0x8] sm:$0xff] %vm2532_vm11, %v2531_v28 }
 0x4a7   : > { %2533 = vst.msk [vmem:[%s369_s18] sm:$0xff] %vm2532_vm11, %v2530_v30 }
 0x4a8 PF: > { %s21_s13 = sadd.s32 1, %s3328_s13  }
 0x4a9   : > { %p18_p4 = scmp.ge.s32.totalorder %s21_s13, 4  }
 0x4ab   :  { %20 = sbr.rel (!%p18_p4) target bundleno = 1 (0x1), region = 117 }

// kernel: unet_encoder_forward.5
= control target key start
LH: loop header
LB: loop body
LE: loop exit
PB: predicated region body
PF: predicated region fallthrough
CT: control target
= control target key end

     0   :  { %s3587_s27 = smov 0   ;;  %s3997_s0 = inlined_call_operand.vmem [shape: f32[2,16,42], index: 0, kind: input, shape index: {}]   ;;  %s3998_s1 = inlined_call_operand.vmem [shape: f32[9,32,16], index: 1, kind: input, shape index: {}]   ;;  %s3999_s2 = inlined_call_operand.vmem [shape: f32[32,1], index: 2, kind: input, shape index: {}]   ;;  %s4000_s3 = inlined_call_operand.vmem [shape: f32[32,1], index: 3, kind: input, shape index: {}]   ;;  %s4001_s4 = inlined_call_operand.vmem [shape: f32[9,32,32], index: 4, kind: input, shape index: {}]   ;;  %s4002_s5 = inlined_call_operand.vmem [shape: f32[32,1], index: 5, kind: input, shape index: {}]   ;;  %s4003_s6 = inlined_call_operand.vmem [shape: f32[32,1], index: 6, kind: input, shape index: {}]   ;;  %s4004_s7 = inlined_call_operand.vmem [shape: f32[24,16], index: 7, kind: input, shape index: {}]   ;;  %s4005_s8 = inlined_call_operand.vmem [shape: f32[2,32,16], index: 8, kind: output, shape index: {}]  }
   0x1 LB: > { %s2690_s28 = sadd.s32 4294967295, %s3529_s27   ;;  %p2694_p0 = scmp.ge.s32.totalorder %s3529_s27, 1  ;;  %s3529_s27 = sphi %s3587_s27, %s18_s27  }
   0x2   : > { %p262_p1 = scmp.lt.s32.totalorder %s3529_s27, 3 }
   0x4   : > { %p263_p2 = pnand %p2694_p0, %p262_p1 }
   0x5   : > { %p296_p3 = scmp.lt.s32.totalorder (!%p263_p2), %s2690_s28, 1  ;;  %v2699_v0 = vld [vmem:[%s3998_s1 + $0x20] sm:$0xff] (!%p263_p2)  ;;  %vm325_vm0 = vcmask (!%p263_p2), 130048   ;;  %s3531_s13 = smov (!%p263_p2), 127   ;;  %v1305_v5 = vld [vmem:[%s3999_s2 + $0x8] sm:$0xff] (!%p263_p2)  ;;  %v3539_v7 = vmov (!%p263_p2), 0  }
   0x6   : > { %266 = sbr.rel (%p263_p2) target bundleno = 1180 (0x49c), region = 52  ;;  %2980 = vmatprep.mubr.msk.f32.mxu0 (!%p263_p2), %vm325_vm0, %v2699_v0  ;;  %s3532_s14 = smov (!%p263_p2), 122   ;;  %v1304_v6 = vld [vmem:[%s3999_s2] sm:$0xff] (!%p263_p2)  ;;  %3442 = vset.pattern.permute.xlu1 (!%p263_p2), %v3539_v7  ;;  %v1333_v9 = vld [vmem:[%s4000_s3 + $0x8] sm:$0xff] (!%p263_p2)  ;;  %v1306_v10 = vld [vmem:[%s3999_s2 + $0x10] sm:$0xff] (!%p263_p2)  ;;  %vm1389_vm1 = vcmask (!%p263_p2), 56320  }
   0x7   : > { %s3533_s15 = smov (!%p263_p2), 126   ;;  %s3534_s16 = smov (!%p263_p2), 121   ;;  %3441 = vset.pattern.permute.xlu0 (!%p263_p2), %v3539_v7  ;;  %v1332_v8 = vld [vmem:[%s4000_s3] sm:$0xff] (!%p263_p2)  ;;  %v1307_v11 = vld [vmem:[%s3999_s2 + $0x18] sm:$0xff] (!%p263_p2)  ;;  %v1334_v12 = vld [vmem:[%s4000_s3 + $0x10] sm:$0xff] (!%p263_p2)  ;;  %vm1394_vm2 = vcmask (!%p263_p2), 343288  }
   0x8   : > { %s3535_s17 = smov (!%p263_p2), 120   ;;  %s3536_s18 = smov (!%p263_p2), 116   ;;  %v1335_v13 = vld [vmem:[%s4000_s3 + $0x18] sm:$0xff] (!%p263_p2)  ;;  %v2700_v21 = vld [vmem:[%s3998_s1 + $0x28] sm:$0xff] (!%p263_p2)  ;;  %v2701_v23 = vld [vmem:[%s3998_s1 + $0x30] sm:$0xff] (!%p263_p2)  ;;  %vm1415_vm7 = vcmask (!%p263_p2), 252984  }
   0x9   : > { %s3537_s19 = smov (!%p263_p2), 115   ;;  %s3538_s20 = smov (!%p263_p2), 114   ;;  %v2702_v25 = vld [vmem:[%s3998_s1 + $0x38] sm:$0xff] (!%p263_p2)  ;;  %v308_v26 = vld [vmem:[%s3998_s1] sm:$0xff] (!%p263_p2)  ;;  %v309_v29 = vld [vmem:[%s3998_s1 + $0x8] sm:$0xff] (!%p263_p2)  ;;  %vm1449_vm8 = vcmask (!%p263_p2), 261120  }
   0xa   : > { %v310_v31 = vld [vmem:[%s3998_s1 + $0x10] sm:$0xff] (!%p263_p2)  ;;  %v311_v33 = vld [vmem:[%s3998_s1 + $0x18] sm:$0xff] (!%p263_p2)  ;;  %v2711_v34 = vld [vmem:[%s3998_s1 + $0x40] sm:$0xff] (!%p263_p2)  ;;  %s3541_s23 = smov (!%p263_p2), 7   ;;  %vm2533_vm9 = vcmask (!%p263_p2), 195584  }
   0xb   : > { %v2712_v37 = vld [vmem:[%s3998_s1 + $0x48] sm:$0xff] (!%p263_p2)  ;;  %v2713_v39 = vld [vmem:[%s3998_s1 + $0x50] sm:$0xff] (!%p263_p2)  ;;  %v2714_v41 = vld [vmem:[%s3998_s1 + $0x58] sm:$0xff] (!%p263_p2) }
   0xc   : > { %v2719_v42 = vld [vmem:[%s3998_s1 + $0x60] sm:$0xff] (!%p263_p2)  ;;  %v2720_v45 = vld [vmem:[%s3998_s1 + $0x68] sm:$0xff] (!%p263_p2)  ;;  %v2721_v47 = vld [vmem:[%s3998_s1 + $0x70] sm:$0xff] (!%p263_p2) }
   0xd   : > { %s4009_s28 = smov (!%p296_p3, %s2690_s28), 1  ;;  %v2722_v49 = vld [vmem:[%s3998_s1 + $0x78] sm:$0xff]  ;;  %v2727_v50 = vld [vmem:[%s3998_s1 + $0x80] sm:$0xff]  ;;  %v2728_v53 = vld [vmem:[%s3998_s1 + $0x88] sm:$0xff] }
   0xe   : > { %s2841_s9 = sshll.u32 %s4009_s28, 4  ;;  %v2729_v55 = vld [vmem:[%s3998_s1 + $0x90] sm:$0xff]  ;;  %v2730_v57 = vld [vmem:[%s3998_s1 + $0x98] sm:$0xff]  ;;  %v2735_v58 = vld [vmem:[%s3998_s1 + $0xa0] sm:$0xff]  ;;  %s2842_s10 = sshll.u32 %s4009_s28, 5 }
   0xf   : > { %s300_s12 = scalar_lea.vmem %s3997_s0, %s2841_s9  ;;  %v2736_v61 = vld [vmem:[%s3998_s1 + $0xa8] sm:$0xff]  ;;  %v2737_v63 = vld [vmem:[%s3998_s1 + $0xb0] sm:$0xff]  ;;  %s305_s21 = scalar_lea.vmem %s4005_s8, %s2842_s10 }
  0x10   : > { %v306_v1 = vld [vmem:[%s300_s12] sm:$0xff]  ;;  %v307_v2 = vld [vmem:[%s300_s12 + $0x8] sm:$0xff]  ;;  %v2745_v7 = vld [vmem:[%s3998_s1 + $0xd0] sm:$0xff] }
  0x11   : > { %v3401_v3 = vpack.i.bf16 %v307_v2, %v306_v1  ;;  %v3208_v4 = vpack.c.bf16 %v307_v2, %v306_v1  ;;  %v2738_v1 = vld [vmem:[%s3998_s1 + $0xb8] sm:$0xff]  ;;  %v2743_v2 = vld [vmem:[%s3998_s1 + $0xc0] sm:$0xff] }
  0x13   : > { %3402 = vrot.lane.b32.xlu0 %v3401_v3, %s3531_s13  ;;  %3412 = vrot.lane.b32.xlu1 %v3401_v3, %s3532_s14 }
  0x17   : > { %3407 = vrot.lane.b32.xlu0 %v3401_v3, %s3533_s15  ;;  %3417 = vrot.lane.b32.xlu1 %v3401_v3, %s3534_s16 }
  0x1b   : > { %3422 = vrot.lane.b32.xlu0 %v3401_v3, %s3535_s17  ;;  %3427 = vrot.lane.b32.xlu1 %v3401_v3, %s3536_s18 }
  0x1f   : > { %3432 = vrot.lane.b32.xlu0 %v3401_v3, %s3537_s19  ;;  %3437 = vrot.lane.b32.xlu1 %v3401_v3, %s3538_s20 }
  0x23   : > { %1315 = vperm.xlu1 %3442, %v1305_v5   ;;  %1310 = vperm.xlu0 %3441, %v1304_v6   ;;  %v2744_v5 = vld [vmem:[%s3998_s1 + $0xc8] sm:$0xff] }
  0x27   : > { %1338 = vperm.xlu1 %3442, %v1332_v8   ;;  %1343 = vperm.xlu0 %3441, %v1333_v9   ;;  %v2746_v8 = vld [vmem:[%s3998_s1 + $0xd8] sm:$0xff]  ;;  %v2751_v9 = vld [vmem:[%s3998_s1 + $0xe0] sm:$0xff] }
  0x2b   : > { %1320 = vperm.xlu1 %3442, %v1306_v10   ;;  %1325 = vperm.xlu0 %3441, %v1307_v11   ;;  %v2752_v10 = vld [vmem:[%s3998_s1 + $0xe8] sm:$0xff]  ;;  %v2753_v11 = vld [vmem:[%s3998_s1 + $0xf0] sm:$0xff] }
  0x2f   : > { %1348 = vperm.xlu1 %3442, %v1334_v12   ;;  %1353 = vperm.xlu0 %3441, %v1335_v13   ;;  %v2754_v12 = vld [vmem:[%s3998_s1 + $0xf8] sm:$0xff]  ;;  %v2759_v13 = vld [vmem:[%s3998_s1 + $0x100] sm:$0xff] }
  0x85   : > { %v3403_v14 = vpop.permute.xlu0 %3402  ;;  %v3413_v24 = vpop.permute.xlu1 %3412 }
  0x86   : > { %v3405_v15 = vunpack.i.h.bf16 %v3403_v14  ;;  %v3404_v16 = vunpack.i.l.bf16 %v3403_v14  ;;  %v3415_v27 = vunpack.i.h.bf16 %v3413_v24  ;;  %v3414_v28 = vunpack.i.l.bf16 %v3413_v24  ;;  %v2760_v14 = vld [vmem:[%s3998_s1 + $0x108] sm:$0xff] }
  0x88   : > { %v3204_v17 = vpack.c.bf16 %v3405_v15, %v3404_v16  ;;  %v3216_v30 = vpack.c.bf16 %v3415_v27, %v3414_v28  ;;  %v2761_v15 = vld [vmem:[%s3998_s1 + $0x110] sm:$0xff]  ;;  %v2762_v16 = vld [vmem:[%s3998_s1 + $0x118] sm:$0xff] }
  0x89   : > { %v3408_v18 = vpop.permute.xlu0 %3407  ;;  %v3418_v32 = vpop.permute.xlu1 %3417 }
  0x8a   : > { %3205 = vmatprep.subr.bf16.mxu0 %v3204_v17  ;;  %v3410_v19 = vunpack.i.h.bf16 %v3408_v18  ;;  %v3409_v20 = vunpack.i.l.bf16 %v3408_v18  ;;  %v3420_v35 = vunpack.i.h.bf16 %v3418_v32  ;;  %v3419_v36 = vunpack.i.l.bf16 %v3418_v32 }
  0x8b   : > { %3207 = vmatpush3.bf16.msra.mxu0 %v3204_v17  ;;  %v3540_v17 = vmov 0.0   ;;  %v1364_v18 = vlaneseq }
  0x8c   : > { %3209 = vmatprep.subr.bf16.mxu0 %v3208_v4  ;;  %v3212_v22 = vpack.c.bf16 %v3410_v19, %v3409_v20  ;;  %v3220_v38 = vpack.c.bf16 %v3420_v35, %v3419_v36  ;;  %1391 = vst.msk [vmem:[#allocation2 + $0x8] sm:$0xff] %vm1389_vm1, %v3540_v17  ;;  %1390 = vst.msk [vmem:[#allocation2] sm:$0xff] %vm1389_vm1, %v3540_v17 }
  0x8d   : > { %v3423_v40 = vpop.permute.xlu0 %3422  ;;  %v3428_v48 = vpop.permute.xlu1 %3427  ;;  %1392 = vst.msk [vmem:[#allocation2 + $0x10] sm:$0xff] %vm1389_vm1, %v3540_v17  ;;  %1393 = vst.msk [vmem:[#allocation2 + $0x18] sm:$0xff] %vm1389_vm1, %v3540_v17  ;;  %v1365_v19 = vand.u32 127, %v1364_v18 }
  0x8e   : > { %2981 = vmatmul.mubr.msk.f32.vlgmr.msra.gmra.mrb[0].mxu0 %vm325_vm0, %v2700_v21  ;;  %v3425_v43 = vunpack.i.h.bf16 %v3423_v40  ;;  %v3424_v44 = vunpack.i.l.bf16 %v3423_v40  ;;  %v3430_v51 = vunpack.i.h.bf16 %v3428_v48  ;;  %v3429_v52 = vunpack.i.l.bf16 %v3428_v48  ;;  %1396 = vst.msk [vmem:[#allocation2 + $0x8] sm:$0xff] %vm1394_vm2, %v3540_v17  ;;  %1395 = vst.msk [vmem:[#allocation2] sm:$0xff] %vm1394_vm2, %v3540_v17  ;;  %v2779_v40 = vld [vmem:[%s4001_s4 + $0x40] sm:$0xff] }
  0x8f   : > { %3211 = vmatpush3.bf16.msra.mxu0 %v3208_v4  ;;  %2983 = vmatprep.mubr.msk.f32.mxu0 %vm325_vm0, %v2701_v23  ;;  %1397 = vst.msk [vmem:[#allocation2 + $0x10] sm:$0xff] %vm1394_vm2, %v3540_v17  ;;  %1398 = vst.msk [vmem:[#allocation2 + $0x18] sm:$0xff] %vm1394_vm2, %v3540_v17  ;;  %v3777_v20 = vmul.u32.u64.low 2863311531, %v1365_v19  ;;  %v3778_v21 = vmul.u32.u64.high 2863311531, %v1365_v19, %v3777_v20 }
  0x90   : > { %3213 = vmatprep.subr.bf16.mxu0 %v3212_v22  ;;  %v3224_v46 = vpack.c.bf16 %v3425_v43, %v3424_v44  ;;  %v3228_v54 = vpack.c.bf16 %v3430_v51, %v3429_v52 }
  0x91   : > { %v3433_v56 = vpop.permute.xlu0 %3432  ;;  %v3438_v0 = vpop.permute.xlu1 %3437 }
  0x92   : > { %2984 = vmatmul.mubr.msk.f32.gmra.mrb[2].mxu0 %vm325_vm0, %v2702_v25  ;;  %v3435_v59 = vunpack.i.h.bf16 %v3433_v56  ;;  %v3434_v60 = vunpack.i.l.bf16 %v3433_v56  ;;  %v3440_v3 = vunpack.i.h.bf16 %v3438_v0  ;;  %v3439_v4 = vunpack.i.l.bf16 %v3438_v0 }
  0x93   : > { %2990 = vmatprep.mubr.msk.f32.mxu0 %vm325_vm0, %v308_v26 }
  0x94   : > { %v3232_v62 = vpack.c.bf16 %v3435_v59, %v3434_v60  ;;  %v3236_v6 = vpack.c.bf16 %v3440_v3, %v3439_v4 }
  0x96   : > { %2991 = vmatmul.mubr.msk.f32.vlgmr.msra.gmra.mrb[0].mxu0 %vm325_vm0, %v309_v29 }
  0x97   : > { %3215 = vmatpush3.bf16.msra.mxu0 %v3212_v22  ;;  %2993 = vmatprep.mubr.msk.f32.mxu0 %vm325_vm0, %v310_v31  ;;  %v1372_v22 = vshrl.u32 %v3778_v21, 2 }
  0x98   : > { %3217 = vmatprep.subr.bf16.mxu0 %v3216_v30 }
  0x99   : > { %v1373_v23 = vmul.u32 6, %v1372_v22  ;;  %v2768_v22 = vld [vmem:[%s4001_s4 + $0x28] sm:$0xff] }
  0x9a   : > { %2994 = vmatmul.mubr.msk.f32.gmra.mrb[2].mxu0 %vm325_vm0, %v311_v33 }
  0x9b   : > { %3000 = vmatprep.mubr.msk.f32.mxu0 %vm325_vm0, %v2711_v34  ;;  %v1374_v26 = vsub.s32 %v1365_v19, %v1373_v23  ;;  %v2769_v23 = vld [vmem:[%s4001_s4 + $0x30] sm:$0xff] }
  0x9d   : > { %vm1377_vm3 = vcmp.ne.s32.totalorder %v1374_v26, 0  ;;  %vm1378_vm4 = vcmp.lt.s32.totalorder %v1374_v26, 0  ;;  %v1380_v29 = vadd.s32 6, %v1374_v26 }
  0x9e   : > { %3001 = vmatmul.mubr.msk.f32.vlgmr.msra.gmra.mrb[0].mxu0 %vm325_vm0, %v2712_v37  ;;  %vm1379_vm5 = vmand %vm1378_vm4, %vm1377_vm3 }
  0x9f   : > { %3219 = vmatpush3.bf16.msra.mxu0 %v3216_v30  ;;  %3003 = vmatprep.mubr.msk.f32.mxu0 %vm325_vm0, %v2713_v39  ;;  %v1381_v35 = vsel %vm1379_vm5, %v1380_v29, %v1374_v26 }
  0xa0   : > { %3221 = vmatprep.subr.bf16.mxu0 %v3220_v38  ;;  %vm3781_vm6 = vcmp.lt.s32.totalorder %v1381_v35, 4 }
  0xa2   : > { %3004 = vmatmul.mubr.msk.f32.gmra.mrb[2].mxu0 %vm325_vm0, %v2714_v41  ;;  %v1311_v24 = vpop.permute.xlu0 %1310  ;;  %v1316_v25 = vpop.permute.xlu1 %1315 }
  0xa3   : > { %3010 = vmatprep.mubr.msk.f32.mxu0 %vm325_vm0, %v2719_v42 }
  0xa6   : > { %3011 = vmatmul.mubr.msk.f32.vlgmr.msra.gmra.mrb[0].mxu0 %vm325_vm0, %v2720_v45  ;;  %v1344_v27 = vpop.permute.xlu0 %1343  ;;  %v1339_v28 = vpop.permute.xlu1 %1338 }
  0xa7   : > { %3223 = vmatpush3.bf16.msra.mxu0 %v3220_v38  ;;  %3013 = vmatprep.mubr.msk.f32.mxu0 %vm325_vm0, %v2721_v47 }
  0xa8   : > { %3225 = vmatprep.subr.bf16.mxu0 %v3224_v46 }
  0xaa   : > { %3014 = vmatmul.mubr.msk.f32.gmra.mrb[2].mxu0 %vm325_vm0, %v2722_v49  ;;  %v1326_v30 = vpop.permute.xlu0 %1325  ;;  %v1321_v32 = vpop.permute.xlu1 %1320 }
  0xab   : > { %3020 = vmatprep.mubr.msk.f32.mxu0 %vm325_vm0, %v2727_v50 }
  0xae   : > { %3021 = vmatmul.mubr.msk.f32.vlgmr.msra.gmra.mrb[0].mxu0 %vm325_vm0, %v2728_v53  ;;  %v1354_v44 = vpop.permute.xlu0 %1353  ;;  %v1349_v47 = vpop.permute.xlu1 %1348 }
  0xaf   : > { %3227 = vmatpush3.bf16.msra.mxu0 %v3224_v46  ;;  %3023 = vmatprep.mubr.msk.f32.mxu0 %vm325_vm0, %v2729_v55 }
  0xb0   : > { %3229 = vmatprep.subr.bf16.mxu0 %v3228_v54 }
  0xb2   : > { %3024 = vmatmul.mubr.msk.f32.gmra.mrb[2].mxu0 %vm325_vm0, %v2730_v57 }
  0xb3   : > { %3030 = vmatprep.mubr.msk.f32.mxu0 %vm325_vm0, %v2735_v58 }
  0xb6   : > { %3031 = vmatmul.mubr.msk.f32.vlgmr.msra.gmra.mrb[0].mxu0 %vm325_vm0, %v2736_v61 }
  0xb7   : > { %3231 = vmatpush3.bf16.msra.mxu0 %v3228_v54  ;;  %3033 = vmatprep.mubr.msk.f32.mxu0 %vm325_vm0, %v2737_v63 }
  0xb8   : > { %3233 = vmatprep.subr.bf16.mxu0 %v3232_v62 }
  0xba   : > { %3034 = vmatmul.mubr.msk.f32.gmra.mrb[2].mxu0 %vm325_vm0, %v2738_v1 }
  0xbb   : > { %3040 = vmatprep.mubr.msk.f32.mxu0 %vm325_vm0, %v2743_v2 }
  0xbe   : > { %3041 = vmatmul.mubr.msk.f32.vlgmr.msra.gmra.mrb[0].mxu0 %vm325_vm0, %v2744_v5  ;;  %v2470_v5 = vld [vmem:[%s4002_s5] sm:$0xff] }
  0xbf   : > { %3235 = vmatpush3.bf16.msra.mxu0 %v3232_v62  ;;  %3043 = vmatprep.mubr.msk.f32.mxu0 %vm325_vm0, %v2745_v7  ;;  %v2767_v62 = vld [vmem:[%s4001_s4 + $0x20] sm:$0xff]  ;;  %v2471_v7 = vld [vmem:[%s4002_s5 + $0x8] sm:$0xff] }
  0xc0   : > { %3237 = vmatprep.subr.bf16.mxu0 %v3236_v6  ;;  %3074 = vmatprep.mubr.msk.f32.mxu1 %vm1449_vm8, %v2767_v62 }
  0xc2   : > { %3044 = vmatmul.mubr.msk.f32.gmra.mrb[2].mxu0 %vm325_vm0, %v2746_v8  ;;  %v2472_v8 = vld [vmem:[%s4002_s5 + $0x10] sm:$0xff] }
  0xc3   : > { %3050 = vmatprep.mubr.msk.f32.mxu0 %vm325_vm0, %v2751_v9  ;;  %v2499_v9 = vld [vmem:[%s4003_s6 + $0x8] sm:$0xff] }
  0xc6   : > { %3051 = vmatmul.mubr.msk.f32.vlgmr.msra.gmra.mrb[0].mxu0 %vm325_vm0, %v2752_v10  ;;  %v2500_v10 = vld [vmem:[%s4003_s6 + $0x10] sm:$0xff] }
  0xc7   : > { %3239 = vmatpush3.bf16.msra.mxu0 %v3236_v6  ;;  %3053 = vmatprep.mubr.msk.f32.mxu0 %vm325_vm0, %v2753_v11  ;;  %v2498_v6 = vld [vmem:[%s4003_s6] sm:$0xff]  ;;  %v2473_v11 = vld [vmem:[%s4002_s5 + $0x18] sm:$0xff] }
  0xca   : > { %3054 = vmatmul.mubr.msk.f32.gmra.mrb[2].mxu0 %vm325_vm0, %v2754_v12  ;;  %v2501_v12 = vld [vmem:[%s4003_s6 + $0x18] sm:$0xff] }
  0xcb   : > { %3060 = vmatprep.mubr.msk.f32.mxu0 %vm325_vm0, %v2759_v13 }
  0xce   : > { %3061 = vmatmul.mubr.msk.f32.vlgmr.msra.gmra.mrb[0].mxu0 %vm325_vm0, %v2760_v14 }
  0xcf   : > { %3063 = vmatprep.mubr.msk.f32.mxu0 %vm325_vm0, %v2761_v15 }
  0xd2   : > { %3064 = vmatmul.mubr.msk.f32.gmra.mrb[2].mxu0 %vm325_vm0, %v2762_v16 }
 0x1a1   : > { %v3062_v31 = vpop.f32.mrb[0].mxu0 }
 0x1a2   : > { %v1329_v33 = vmul.f32 %v3062_v31, %v1316_v25  ;;  %v1281_v34 = vpop.f32.mrb[1].mxu0 }
 0x1a3   : > { %v1328_v36 = vmul.f32 %v1311_v24, %v1281_v34  ;;  %v1426_v34 = vld [vmem:[%s4001_s4 + $0x10] sm:$0xff] }
 0x1a4   : > { %v1357_v37 = vadd.f32 %v1344_v27, %v1329_v33  ;;  %v2770_v27 = vld [vmem:[%s4001_s4 + $0x38] sm:$0xff]  ;;  %v1425_v33 = vld [vmem:[%s4001_s4 + $0x8] sm:$0xff] }
 0x1a5   : > { %v1356_v38 = vadd.f32 %v1339_v28, %v1328_v36  ;;  %v3065_v39 = vpop.f32.mrb[2].mxu0  ;;  %v1424_v28 = vld [vmem:[%s4001_s4] sm:$0xff] }
 0x1a6   : > { %v1361_v41 = vmax.f32 %v1357_v37, 0.0  ;;  %v1331_v42 = vmul.f32 %v3065_v39, %v1326_v30  ;;  %v1291_v43 = vpop.f32.mrb[3].mxu0  ;;  %v1427_v39 = vld [vmem:[%s4001_s4 + $0x18] sm:$0xff] }
 0x1a7   : > { %v1360_v45 = vmax.f32 %v1356_v38, 0.0  ;;  %v1330_v46 = vmul.f32 %v1321_v32, %v1291_v43 }
 0x1a8   : > { %v1359_v48 = vadd.f32 %v1354_v44, %v1331_v42  ;;  %v1386_v49 = vsel %vm3781_vm6, %v1361_v41, 0.0 }
 0x1a9   : > { %v1358_v50 = vadd.f32 %v1349_v47, %v1330_v46  ;;  %1405 = vrot.lane.b32.xlu0 %v1386_v49, %s3541_s23  ;;  %v1385_v51 = vsel %vm3781_vm6, %v1360_v45, 0.0  ;;  %v2780_v45 = vld [vmem:[%s4001_s4 + $0x48] sm:$0xff]  ;;  %v2781_v46 = vld [vmem:[%s4001_s4 + $0x50] sm:$0xff] }
 0x1aa   : > { %v1363_v52 = vmax.f32 %v1359_v48, 0.0  ;;  %1403 = vrot.lane.b32.xlu1 %v1385_v51, %s3541_s23  ;;  %v2782_v51 = vld [vmem:[%s4001_s4 + $0x58] sm:$0xff] }
 0x1ab   : > { %v1362_v53 = vmax.f32 %v1358_v50, 0.0 }
 0x1ac   : > { %v1388_v54 = vsel %vm3781_vm6, %v1363_v52, 0.0  ;;  %v2787_v52 = vld [vmem:[%s4001_s4 + $0x60] sm:$0xff] }
 0x1ad   : > { %1409 = vrot.lane.b32.xlu0 %v1388_v54, %s3541_s23  ;;  %v1387_v55 = vsel %vm3781_vm6, %v1362_v53, 0.0 }
 0x1ae   : > { %1407 = vrot.lane.b32.xlu1 %v1387_v55, %s3541_s23 }
 0x21b   : > { %v1406_v56 = vpop.permute.xlu0 %1405 }
 0x21c   : > { %1417 = vst.msk [vmem:[#allocation2 + $0x8] sm:$0xff] %vm1415_vm7, %v1406_v56  ;;  %v1404_v57 = vpop.permute.xlu1 %1403 }
 0x21d   : > { %1416 = vst.msk [vmem:[#allocation2] sm:$0xff] %vm1415_vm7, %v1404_v57  ;;  %v2788_v57 = vld [vmem:[%s4001_s4 + $0x68] sm:$0xff] }
 0x21f   : > { %v1410_v58 = vpop.permute.xlu0 %1409 }
 0x220   : > { %1419 = vst.msk [vmem:[#allocation2 + $0x18] sm:$0xff] %vm1415_vm7, %v1410_v58  ;;  %v1408_v59 = vpop.permute.xlu1 %1407  ;;  %v2789_v58 = vld [vmem:[%s4001_s4 + $0x70] sm:$0xff] }
 0x221   : > { %1418 = vst.msk [vmem:[#allocation2 + $0x10] sm:$0xff] %vm1415_vm7, %v1408_v59 }
 0x223   : > { %v1421_v60 = vld [vmem:[#allocation2 + $0x8] sm:$0xff] }
 0x224   : > { %v1420_v61 = vld [vmem:[#allocation2] sm:$0xff] }
 0x225   : > { %v3443_v63 = vpack.i.bf16 %v1421_v60, %v1420_v61  ;;  %v3248_v1 = vpack.c.bf16 %v1421_v60, %v1420_v61 }
 0x227   : > { %3444 = vrot.lane.b32.xlu1 %v3443_v63, %s3531_s13  ;;  %v1423_v0 = vld [vmem:[#allocation2 + $0x18] sm:$0xff] }
 0x228   : > { %v1422_v2 = vld [vmem:[#allocation2 + $0x10] sm:$0xff] }
 0x229   : > { %v3448_v3 = vpack.i.bf16 %v1423_v0, %v1422_v2  ;;  %v3252_v4 = vpack.c.bf16 %v1423_v0, %v1422_v2  ;;  %v2795_v0 = vld [vmem:[%s4001_s4 + $0x80] sm:$0xff] }
 0x22b   : > { %3454 = vrot.lane.b32.xlu1 %v3443_v63, %s3533_s15  ;;  %3449 = vrot.lane.b32.xlu0 %v3448_v3, %s3531_s13 }
 0x22f   : > { %3464 = vrot.lane.b32.xlu1 %v3443_v63, %s3532_s14  ;;  %3459 = vrot.lane.b32.xlu0 %v3448_v3, %s3533_s15 }
 0x233   : > { %3474 = vrot.lane.b32.xlu1 %v3443_v63, %s3534_s16  ;;  %3469 = vrot.lane.b32.xlu0 %v3448_v3, %s3532_s14 }
 0x237   : > { %3484 = vrot.lane.b32.xlu1 %v3443_v63, %s3535_s17  ;;  %3479 = vrot.lane.b32.xlu0 %v3448_v3, %s3534_s16 }
 0x23b   : > { %3494 = vrot.lane.b32.xlu1 %v3443_v63, %s3536_s18  ;;  %3489 = vrot.lane.b32.xlu0 %v3448_v3, %s3535_s17 }
 0x23f   : > { %3504 = vrot.lane.b32.xlu1 %v3443_v63, %s3537_s19  ;;  %3499 = vrot.lane.b32.xlu0 %v3448_v3, %s3536_s18 }
 0x243   : > { %3514 = vrot.lane.b32.xlu1 %v3443_v63, %s3538_s20  ;;  %3509 = vrot.lane.b32.xlu0 %v3448_v3, %s3537_s19  ;;  %v2790_v63 = vld [vmem:[%s4001_s4 + $0x78] sm:$0xff] }
 0x247   : > { %2476 = vperm.xlu1 %3442, %v2470_v5   ;;  %3519 = vrot.lane.b32.xlu0 %v3448_v3, %s3538_s20  ;;  %v2796_v5 = vld [vmem:[%s4001_s4 + $0x88] sm:$0xff] }
 0x24b   : > { %2504 = vperm.xlu1 %3442, %v2498_v6   ;;  %2481 = vperm.xlu0 %3441, %v2471_v7   ;;  %v2797_v6 = vld [vmem:[%s4001_s4 + $0x90] sm:$0xff] }
 0x24f   : > { %2486 = vperm.xlu1 %3442, %v2472_v8   ;;  %2509 = vperm.xlu0 %3441, %v2499_v9  }
 0x253   : > { %2514 = vperm.xlu1 %3442, %v2500_v10   ;;  %2491 = vperm.xlu0 %3441, %v2473_v11   ;;  %v2798_v11 = vld [vmem:[%s4001_s4 + $0x98] sm:$0xff] }
 0x257   : > { %2519 = vperm.xlu0 %3441, %v2501_v12   ;;  %v2803_v12 = vld [vmem:[%s4001_s4 + $0xa0] sm:$0xff] }
 0x299   : > { %v3445_v13 = vpop.permute.xlu1 %3444 }
 0x29a   : > { %v3447_v14 = vunpack.i.h.bf16 %v3445_v13  ;;  %v3446_v15 = vunpack.i.l.bf16 %v3445_v13 }
 0x29c   : > { %v3240_v16 = vpack.c.bf16 %v3447_v14, %v3446_v15 }
 0x29d   : > { %v3450_v17 = vpop.permute.xlu0 %3449  ;;  %v3455_v21 = vpop.permute.xlu1 %3454 }
 0x29e   : > { %v3452_v18 = vunpack.i.h.bf16 %v3450_v17  ;;  %v3451_v19 = vunpack.i.l.bf16 %v3450_v17  ;;  %3241 = vmatprep.subr.bf16.mxu1 %v3240_v16  ;;  %v3457_v24 = vunpack.i.h.bf16 %v3455_v21  ;;  %v3456_v25 = vunpack.i.l.bf16 %v3455_v21  ;;  %v2804_v17 = vld [vmem:[%s4001_s4 + $0xa8] sm:$0xff] }
 0x29f   : > { %3243 = vmatpush3.bf16.msra.mxu1 %v3240_v16 }
 0x2a0   : > { %v3244_v20 = vpack.c.bf16 %v3452_v18, %v3451_v19  ;;  %v3256_v29 = vpack.c.bf16 %v3457_v24, %v3456_v25  ;;  %v2805_v18 = vld [vmem:[%s4001_s4 + $0xb0] sm:$0xff]  ;;  %v2811_v24 = vld [vmem:[%s4001_s4 + $0xc0] sm:$0xff] }
 0x2a1   : > { %v3460_v26 = vpop.permute.xlu0 %3459  ;;  %v3465_v32 = vpop.permute.xlu1 %3464 }
 0x2a2   : > { %3245 = vmatprep.subr.bf16.mxu1 %v3244_v20  ;;  %v3462_v30 = vunpack.i.h.bf16 %v3460_v26  ;;  %v3461_v31 = vunpack.i.l.bf16 %v3460_v26  ;;  %v3467_v36 = vunpack.i.h.bf16 %v3465_v32  ;;  %v3466_v37 = vunpack.i.l.bf16 %v3465_v32 }
 0x2a3   : > { %3247 = vmatpush3.bf16.msra.mxu1 %v3244_v20 }
 0x2a4   : > { %3249 = vmatprep.subr.bf16.mxu1 %v3248_v1  ;;  %v3260_v35 = vpack.c.bf16 %v3462_v30, %v3461_v31  ;;  %v3264_v41 = vpack.c.bf16 %v3467_v36, %v3466_v37  ;;  %v2813_v30 = vld [vmem:[%s4001_s4 + $0xd0] sm:$0xff]  ;;  %v2819_v36 = vld [vmem:[%s4001_s4 + $0xe0] sm:$0xff] }
 0x2a5   : > { %v3470_v38 = vpop.permute.xlu0 %3469  ;;  %v3475_v44 = vpop.permute.xlu1 %3474 }
 0x2a6   : > { %3075 = vmatmul.mubr.msk.f32.vlgmr.msra.gmra.mrb[0].mxu1 %vm1449_vm8, %v2768_v22  ;;  %v3472_v42 = vunpack.i.h.bf16 %v3470_v38  ;;  %v3471_v43 = vunpack.i.l.bf16 %v3470_v38  ;;  %v3477_v48 = vunpack.i.h.bf16 %v3475_v44  ;;  %v3476_v49 = vunpack.i.l.bf16 %v3475_v44  ;;  %v2827_v44 = vld [vmem:[%s4001_s4 + $0x100] sm:$0xff] }
 0x2a7   : > { %3251 = vmatpush3.bf16.msra.mxu1 %v3248_v1  ;;  %3077 = vmatprep.mubr.msk.f32.mxu1 %vm1449_vm8, %v2769_v23  ;;  %v2806_v23 = vld [vmem:[%s4001_s4 + $0xb8] sm:$0xff] }
 0x2a8   : > { %3253 = vmatprep.subr.bf16.mxu1 %v3252_v4  ;;  %v3268_v47 = vpack.c.bf16 %v3472_v42, %v3471_v43  ;;  %v3272_v53 = vpack.c.bf16 %v3477_v48, %v3476_v49  ;;  %v2822_v43 = vld [vmem:[%s4001_s4 + $0xf8] sm:$0xff]  ;;  %v2530_v48 = vld [vmem:[%s4004_s7] sm:$0xff]  ;;  %v2531_v49 = vld [vmem:[%s4004_s7 + $0x8] sm:$0xff] }
 0x2a9   : > { %v3480_v50 = vpop.permute.xlu0 %3479  ;;  %v3485_v56 = vpop.permute.xlu1 %3484 }
 0x2aa   : > { %3078 = vmatmul.mubr.msk.f32.gmra.mrb[2].mxu1 %vm1449_vm8, %v2770_v27  ;;  %v3482_v54 = vunpack.i.h.bf16 %v3480_v50  ;;  %v3481_v55 = vunpack.i.l.bf16 %v3480_v50  ;;  %v3487_v60 = vunpack.i.h.bf16 %v3485_v56  ;;  %v3486_v61 = vunpack.i.l.bf16 %v3485_v56 }
 0x2ab   : > { %3255 = vmatpush3.bf16.msra.mxu1 %v3252_v4  ;;  %3088 = vmatprep.mubr.msk.f32.mxu1 %vm1449_vm8, %v1424_v28  ;;  %v3312_v50 = vpack.c.bf16 %v2531_v49, %v2530_v48 }
 0x2ac   : > { %3257 = vmatprep.subr.bf16.mxu1 %v3256_v29  ;;  %v3276_v59 = vpack.c.bf16 %v3482_v54, %v3481_v55  ;;  %v3280_v1 = vpack.c.bf16 %v3487_v60, %v3486_v61 }
 0x2ad   : > { %v3490_v62 = vpop.permute.xlu0 %3489  ;;  %v3495_v4 = vpop.permute.xlu1 %3494  ;;  %3313 = vmatprep.subr.bf16.mxu0 %v3312_v50 }
 0x2ae   : > { %3089 = vmatmul.mubr.msk.f32.vlgmr.msra.gmra.mrb[0].mxu1 %vm1449_vm8, %v1425_v33  ;;  %v3492_v2 = vunpack.i.h.bf16 %v3490_v62  ;;  %v3491_v3 = vunpack.i.l.bf16 %v3490_v62  ;;  %v3497_v8 = vunpack.i.h.bf16 %v3495_v4  ;;  %v3496_v9 = vunpack.i.l.bf16 %v3495_v4  ;;  %3315 = vmatpush3.bf16.msra.mxu0 %v3312_v50 }
 0x2af   : > { %3259 = vmatpush3.bf16.msra.mxu1 %v3256_v29  ;;  %3091 = vmatprep.mubr.msk.f32.mxu1 %vm1449_vm8, %v1426_v34  ;;  %v2812_v29 = vld [vmem:[%s4001_s4 + $0xc8] sm:$0xff] }
 0x2b0   : > { %3261 = vmatprep.subr.bf16.mxu1 %v3260_v35  ;;  %v3284_v7 = vpack.c.bf16 %v3492_v2, %v3491_v3  ;;  %v3288_v13 = vpack.c.bf16 %v3497_v8, %v3496_v9 }
 0x2b1   : > { %v3500_v10 = vpop.permute.xlu0 %3499  ;;  %v3505_v16 = vpop.permute.xlu1 %3504 }
 0x2b2   : > { %3092 = vmatmul.mubr.msk.f32.gmra.mrb[2].mxu1 %vm1449_vm8, %v1427_v39  ;;  %v3502_v14 = vunpack.i.h.bf16 %v3500_v10  ;;  %v3501_v15 = vunpack.i.l.bf16 %v3500_v10  ;;  %v3507_v20 = vunpack.i.h.bf16 %v3505_v16  ;;  %v3506_v21 = vunpack.i.l.bf16 %v3505_v16 }
 0x2b3   : > { %3263 = vmatpush3.bf16.msra.mxu1 %v3260_v35  ;;  %3102 = vmatprep.mubr.msk.f32.mxu1 %vm1449_vm8, %v2779_v40  ;;  %v2814_v35 = vld [vmem:[%s4001_s4 + $0xd8] sm:$0xff]  ;;  %v2820_v40 = vld [vmem:[%s4001_s4 + $0xe8] sm:$0xff] }
 0x2b4   : > { %3265 = vmatprep.subr.bf16.mxu1 %v3264_v41  ;;  %v3292_v19 = vpack.c.bf16 %v3502_v14, %v3501_v15  ;;  %v3296_v25 = vpack.c.bf16 %v3507_v20, %v3506_v21 }
 0x2b5   : > { %v3510_v22 = vpop.permute.xlu0 %3509  ;;  %v3515_v28 = vpop.permute.xlu1 %3514 }
 0x2b6   : > { %3103 = vmatmul.mubr.msk.f32.vlgmr.msra.gmra.mrb[0].mxu1 %vm1449_vm8, %v2780_v45  ;;  %v3512_v26 = vunpack.i.h.bf16 %v3510_v22  ;;  %v3511_v27 = vunpack.i.l.bf16 %v3510_v22  ;;  %v3517_v32 = vunpack.i.h.bf16 %v3515_v28  ;;  %v3516_v33 = vunpack.i.l.bf16 %v3515_v28  ;;  %v2828_v45 = vld [vmem:[%s4001_s4 + $0x108] sm:$0xff] }
 0x2b7   : > { %3267 = vmatpush3.bf16.msra.mxu1 %v3264_v41  ;;  %3105 = vmatprep.mubr.msk.f32.mxu1 %vm1449_vm8, %v2781_v46  ;;  %v2821_v41 = vld [vmem:[%s4001_s4 + $0xf0] sm:$0xff] }
 0x2b8   : > { %3269 = vmatprep.subr.bf16.mxu1 %v3268_v47  ;;  %v3300_v31 = vpack.c.bf16 %v3512_v26, %v3511_v27  ;;  %v3304_v37 = vpack.c.bf16 %v3517_v32, %v3516_v33  ;;  %v2829_v46 = vld [vmem:[%s4001_s4 + $0x110] sm:$0xff] }
 0x2b9   : > { %v3520_v34 = vpop.permute.xlu0 %3519 }
 0x2ba   : > { %3106 = vmatmul.mubr.msk.f32.gmra.mrb[2].mxu1 %vm1449_vm8, %v2782_v51  ;;  %v3522_v38 = vunpack.i.h.bf16 %v3520_v34  ;;  %v3521_v39 = vunpack.i.l.bf16 %v3520_v34  ;;  %v2532_v51 = vld [vmem:[%s4004_s7 + $0x10] sm:$0xff] }
 0x2bb   : > { %3271 = vmatpush3.bf16.msra.mxu1 %v3268_v47  ;;  %3116 = vmatprep.mubr.msk.f32.mxu1 %vm1449_vm8, %v2787_v52  ;;  %v2830_v47 = vld [vmem:[%s4001_s4 + $0x118] sm:$0xff] }
 0x2bc   : > { %3273 = vmatprep.subr.bf16.mxu1 %v3272_v53  ;;  %v3308_v42 = vpack.c.bf16 %v3522_v38, %v3521_v39  ;;  %3196 = vmatprep.subr.mxu0 %v2532_v51 }
 0x2bd   : > { %3197 = vmatpush3.msra.mxu0 %v2532_v51 }
 0x2be   : > { %3117 = vmatmul.mubr.msk.f32.vlgmr.msra.gmra.mrb[0].mxu1 %vm1449_vm8, %v2788_v57 }
 0x2bf   : > { %3275 = vmatpush3.bf16.msra.mxu1 %v3272_v53  ;;  %3119 = vmatprep.mubr.msk.f32.mxu1 %vm1449_vm8, %v2789_v58 }
 0x2c0   : > { %3277 = vmatprep.subr.bf16.mxu1 %v3276_v59 }
 0x2c2   : > { %3120 = vmatmul.mubr.msk.f32.gmra.mrb[2].mxu1 %vm1449_vm8, %v2790_v63 }
 0x2c3   : > { %3279 = vmatpush3.bf16.msra.mxu1 %v3276_v59  ;;  %3130 = vmatprep.mubr.msk.f32.mxu1 %vm1449_vm8, %v2795_v0 }
 0x2c4   : > { %3281 = vmatprep.subr.bf16.mxu1 %v3280_v1 }
 0x2c6   : > { %3131 = vmatmul.mubr.msk.f32.vlgmr.msra.gmra.mrb[0].mxu1 %vm1449_vm8, %v2796_v5  ;;  %v2477_v53 = vpop.permute.xlu1 %2476 }
 0x2c7   : > { %3283 = vmatpush3.bf16.msra.mxu1 %v3280_v1  ;;  %3133 = vmatprep.mubr.msk.f32.mxu1 %vm1449_vm8, %v2797_v6 }
 0x2c8   : > { %3285 = vmatprep.subr.bf16.mxu1 %v3284_v7 }
 0x2ca   : > { %3134 = vmatmul.mubr.msk.f32.gmra.mrb[2].mxu1 %vm1449_vm8, %v2798_v11  ;;  %v2482_v52 = vpop.permute.xlu0 %2481  ;;  %v2505_v55 = vpop.permute.xlu1 %2504 }
 0x2cb   : > { %3287 = vmatpush3.bf16.msra.mxu1 %v3284_v7  ;;  %3144 = vmatprep.mubr.msk.f32.mxu1 %vm1449_vm8, %v2803_v12 }
 0x2cc   : > { %3289 = vmatprep.subr.bf16.mxu1 %v3288_v13 }
 0x2ce   : > { %3145 = vmatmul.mubr.msk.f32.vlgmr.msra.gmra.mrb[0].mxu1 %vm1449_vm8, %v2804_v17  ;;  %v2510_v54 = vpop.permute.xlu0 %2509  ;;  %v2487_v58 = vpop.permute.xlu1 %2486 }
 0x2cf   : > { %3291 = vmatpush3.bf16.msra.mxu1 %v3288_v13  ;;  %3147 = vmatprep.mubr.msk.f32.mxu1 %vm1449_vm8, %v2805_v18 }
 0x2d0   : > { %3293 = vmatprep.subr.bf16.mxu1 %v3292_v19 }
 0x2d2   : > { %3148 = vmatmul.mubr.msk.f32.gmra.mrb[2].mxu1 %vm1449_vm8, %v2806_v23  ;;  %v2492_v56 = vpop.permute.xlu0 %2491  ;;  %v2515_v6 = vpop.permute.xlu1 %2514 }
 0x2d3   : > { %3295 = vmatpush3.bf16.msra.mxu1 %v3292_v19  ;;  %3158 = vmatprep.mubr.msk.f32.mxu1 %vm1449_vm8, %v2811_v24 }
 0x2d4   : > { %3297 = vmatprep.subr.bf16.mxu1 %v3296_v25 }
 0x2d6   : > { %3159 = vmatmul.mubr.msk.f32.vlgmr.msra.gmra.mrb[0].mxu1 %vm1449_vm8, %v2812_v29  ;;  %v2520_v3 = vpop.permute.xlu0 %2519 }
 0x2d7   : > { %3299 = vmatpush3.bf16.msra.mxu1 %v3296_v25  ;;  %3161 = vmatprep.mubr.msk.f32.mxu1 %vm1449_vm8, %v2813_v30 }
 0x2d8   : > { %3301 = vmatprep.subr.bf16.mxu1 %v3300_v31 }
 0x2da   : > { %3162 = vmatmul.mubr.msk.f32.gmra.mrb[2].mxu1 %vm1449_vm8, %v2814_v35 }
 0x2db   : > { %3303 = vmatpush3.bf16.msra.mxu1 %v3300_v31  ;;  %3172 = vmatprep.mubr.msk.f32.mxu1 %vm1449_vm8, %v2819_v36 }
 0x2dc   : > { %3305 = vmatprep.subr.bf16.mxu1 %v3304_v37 }
 0x2de   : > { %3173 = vmatmul.mubr.msk.f32.vlgmr.msra.gmra.mrb[0].mxu1 %vm1449_vm8, %v2820_v40 }
 0x2df   : > { %3307 = vmatpush3.bf16.msra.mxu1 %v3304_v37  ;;  %3175 = vmatprep.mubr.msk.f32.mxu1 %vm1449_vm8, %v2821_v41 }
 0x2e0   : > { %3309 = vmatprep.subr.bf16.mxu1 %v3308_v42 }
 0x2e2   : > { %3176 = vmatmul.mubr.msk.f32.gmra.mrb[2].mxu1 %vm1449_vm8, %v2822_v43 }
 0x2e3   : > { %3311 = vmatpush3.bf16.msra.mxu1 %v3308_v42  ;;  %3186 = vmatprep.mubr.msk.f32.mxu1 %vm1449_vm8, %v2827_v44 }
 0x2e6   : > { %3187 = vmatmul.mubr.msk.f32.vlgmr.msra.gmra.mrb[0].mxu1 %vm1449_vm8, %v2828_v45 }
 0x2e7   : > { %3189 = vmatprep.mubr.msk.f32.mxu1 %vm1449_vm8, %v2829_v46 }
 0x2ea   : > { %3190 = vmatmul.mubr.msk.f32.gmra.mrb[2].mxu1 %vm1449_vm8, %v2830_v47 }
 0x3b9   : > { %v3188_v57 = vpop.f32.mrb[0].mxu1 }
 0x3ba   : > { %v2495_v59 = vmul.f32 %v3188_v57, %v2482_v52  ;;  %v2447_v60 = vpop.f32.mrb[1].mxu1 }
 0x3bb   : > { %v2494_v61 = vmul.f32 %v2477_v53, %v2447_v60 }
 0x3bc   : > { %v2523_v62 = vadd.f32 %v2510_v54, %v2495_v59 }
 0x3bd   : > { %v2522_v63 = vadd.f32 %v2505_v55, %v2494_v61  ;;  %v3191_v0 = vpop.f32.mrb[2].mxu1 }
 0x3be   : > { %v2497_v1 = vmul.f32 %v3191_v0, %v2492_v56  ;;  %v2457_v2 = vpop.f32.mrb[3].mxu1  ;;  %v2527_v7 = vmax.f32 %v2523_v62, 0.0 }
 0x3bf   : > { %v2526_v4 = vmax.f32 %v2522_v63, 0.0  ;;  %v2496_v5 = vmul.f32 %v2487_v58, %v2457_v2 }
 0x3c0   : > { %v2525_v8 = vadd.f32 %v2520_v3, %v2497_v1 }
 0x3c1   : > { %v2524_v9 = vadd.f32 %v2515_v6, %v2496_v5  ;;  %3198 = vmatprep.mubr.msk.f32.mxu0 %vm2533_vm9, %v2526_v4 }
 0x3c2   : > { %3199 = vmatmul.mubr.msk.f32.vlgmr.msra.gmra.mrb[4].mxu0 %vm2533_vm9, %v2527_v7  ;;  %v2529_v11 = vmax.f32 %v2525_v8, 0.0 }
 0x3c3   : > { %v2528_v10 = vmax.f32 %v2524_v9, 0.0 }
 0x3c5   : > { %3201 = vmatprep.mubr.msk.f32.mxu0 %vm2533_vm9, %v2528_v10 }
 0x3c6   : > { %3202 = vmatmul.mubr.msk.f32.gmra.mrb[6].mxu0 %vm2533_vm9, %v2529_v11 }
 0x495   : > { %v3200_v12 = vpop.f32.mrb[4].mxu0 }
 0x496   : > { %2632 = vst.msk [vmem:[%s305_s21 + $0x8] sm:$0xff] %vm325_vm0, %v3200_v12  ;;  %v2612_v13 = vpop.f32.mrb[5].mxu0 }
 0x497   : > { %2631 = vst.msk [vmem:[%s305_s21] sm:$0xff] %vm325_vm0, %v2612_v13 }
 0x499   : > { %v3203_v14 = vpop.f32.mrb[6].mxu0 }
 0x49a   : > { %2634 = vst.msk [vmem:[%s305_s21 + $0x18] sm:$0xff] %vm325_vm0, %v3203_v14  ;;  %v2622_v15 = vpop.f32.mrb[7].mxu0 }
 0x49b   : > { %2633 = vst.msk [vmem:[%s305_s21 + $0x10] sm:$0xff] %vm325_vm0, %v2622_v15 }
 0x49c PF: > { %s18_s27 = sadd.s32 1, %s3529_s27  }
 0x49d   : > { %p15_p4 = scmp.ge.s32.totalorder %s18_s27, 4  }
 0x49f   :  { %17 = sbr.rel (!%p15_p4) target bundleno = 1 (0x1), region = 98 }

// kernel: unet_encoder_forward.3
= control target key start
LH: loop header
LB: loop body
LE: loop exit
PB: predicated region body
PF: predicated region fallthrough
CT: control target
= control target key end

     0   :  { %16 = vsyncpa [#allocation4], 0  ;;  %s3951_s13 = smov 0   ;;  %s4550_s0 = inlined_call_operand.vmem [shape: f32[2,1,342], index: 0, kind: input, shape index: {}]   ;;  %s4551_s1 = inlined_call_operand.vmem [shape: f32[9,8,1], index: 1, kind: input, shape index: {}]   ;;  %s4552_s2 = inlined_call_operand.vmem [shape: f32[8,1], index: 2, kind: input, shape index: {}]   ;;  %s4553_s3 = inlined_call_operand.vmem [shape: f32[8,1], index: 3, kind: input, shape index: {}]   ;;  %s4554_s4 = inlined_call_operand.vmem [shape: f32[9,8,8], index: 4, kind: input, shape index: {}]   ;;  %s4555_s5 = inlined_call_operand.vmem [shape: f32[8,1], index: 5, kind: input, shape index: {}]   ;;  %s4556_s6 = inlined_call_operand.vmem [shape: f32[8,1], index: 6, kind: input, shape index: {}]   ;;  %s4557_s7 = inlined_call_operand.vmem [shape: f32[288,256], index: 7, kind: input, shape index: {}]   ;;  %s4558_s8 = inlined_call_operand.hbm [shape: f32[4,288,110], index: 8, kind: input, shape index: {}]   ;;  %s4559_s9 = inlined_call_operand.vmem [shape: f32[2,8,256], index: 9, kind: output, shape index: {0}]   ;;  %s4560_s10 = inlined_call_operand.vmem [shape: f32[2,8,110], index: 10, kind: output, shape index: {1}]  }
   0x1 LB: > { %s3957_s14 = sadd.s32 4294967295, %s3878_s13   ;;  %p3222_p0 = scmp.ge.s32.totalorder %s3878_s13, 1  ;;  %s3878_s13 = sphi %s3951_s13, %s22_s13  }
   0x2   : > { %p273_p1 = scmp.lt.s32.totalorder %s3878_s13, 3  ;;  %s3880_s15 = smov [#allocation3]  }
   0x3   : > { %s306_s16 = sshll.u32 %s3880_s15, 4  ;;  %p4561_p3 = scmp.eq.s32.totalorder %s3957_s14, 0  ;;  %s307_s16 = int_to_ptr.vmem [resolvable:$true] %s306_s16 }
   0x4   : > { %p3961_p2 = pnand %p3222_p0, %p273_p1  ;;  %s3840_s21 = scalar_lea.hbm %s4558_s8, 18432 }
   0x5   : > { %p3841_p6 = scmp.ne.s32.totalorder %s4558_s8, %s3840_s21  ;;  %p3847_p10 = scmp.lt.u32.totalorder %s3840_s21, %s4558_s8 }
   0x6   : > { %s4564_s17 = scalar_select %p3961_p2, 1, 0 }
   0x7   : > { %p3808_p4 = pneg %p3961_p2 }
   0x9   : > { %p3970_p5 = pnand %p4561_p3, %p3808_p4 }
   0xb   : > { %p3842_p7 = pneg %p3970_p5 }
   0xd   : > { %p3843_p8 = pnand %p3842_p7, %p3841_p6 }
   0xf   : > { %p3844_p9 = pneg %p3843_p8 }
  0x11   : > { %p3849_p11 = pnand %p3847_p10, %p3844_p9 }
  0x13   : > { %3852 = shalt.err (!%p3849_p11)
}
  0x14   : > { %s3853_s26 = scalar_lea.vmem %s307_s16, 18432  ;;  %p3861_p1 = scmp.lt.s32.totalorder %s307_s16, %s307_s16 }
  0x15   : > { %p3854_p12 = scmp.ne.s32.totalorder %s307_s16, %s3853_s26  ;;  %p3862_p4 = scmp.lt.s32.totalorder %s3853_s26, %s3853_s26 }
  0x17   : > { %p3856_p13 = pnand %p3854_p12, %p3842_p7  ;;  %p3863_p3 = por %p3862_p4, %p3861_p1 }
  0x19   : > { %p3857_p0 = pneg %p3856_p13 }
  0x1b   : > { %p3864_p2 = pnand %p3863_p3, %p3857_p0 }
  0x1d   : > { %3867 = shalt.err (!%p3864_p2)
}
  0x1e   : > { %s3881_s27 = smov 128   ;;  %s3882_s28 = smov 8  }
  0x1f   : > { %3811 = dma.hbm_to_vmem [thread:$0]  (!%p3970_p5), %s4558_s8, 18432, %s307_s16, [#allocation4], %s3881_s27, %s3881_s27, %s3882_s28  }
  0x20   : > { %p4566_p6 = scmp.ne.s32.totalorder %s4564_s17, 0 }
  0x21   : > { %p4567_p8 = scmp.eq.s32.totalorder (!%p4566_p6), %s3957_s14, 0 }
  0x22   : > { %329 = sbr.rel (%p4566_p6) target bundleno = 1164 (0x48c), region = 56 }
  0x29   : > { %3873 = dma.done.wait (%p4567_p8), [#allocation4], 18432   ;;  %p4568_p7 = pmov %p4567_p8 }
  0x2a   : > { %v3883_v0 = vmov 0   ;;  %v3232_v1 = vld [vmem:[%s4551_s1 + $0x18] sm:$0xff]  ;;  %v3230_v2 = vld [vmem:[%s4551_s1 + $0x8] sm:$0xff]  ;;  %v3233_v3 = vld [vmem:[%s4551_s1 + $0x20] sm:$0xff]  ;;  %p370_p2 = scmp.lt.s32.totalorder %s3957_s14, 1  ;;  %v391_v12 = vlaneseq  ;;  %s3884_s21 = smov 127  }
  0x2b   : > { %3875 = vsyncadd (%p4568_p7), [#allocation4], 4294948864  ;;  %3839 = vset.pattern.permute.xlu1 %v3883_v0  ;;  %3838 = vset.pattern.permute.xlu0 %v3883_v0  ;;  %v3231_v4 = vld [vmem:[%s4551_s1 + $0x10] sm:$0xff]  ;;  %v3234_v6 = vld [vmem:[%s4551_s1 + $0x28] sm:$0xff]  ;;  %s3885_s22 = smov 126   ;;  %s3886_s23 = smov 110  }
  0x2c   : > { %469 = vperm.xlu1 %3839, %v3232_v1   ;;  %413 = vperm.xlu0 %3838, %v3230_v2   ;;  %v3235_v5 = vld [vmem:[%s4551_s1 + $0x30] sm:$0xff]  ;;  %v3237_v7 = vld [vmem:[%s4551_s1 + $0x40] sm:$0xff]  ;;  %v3236_v8 = vld [vmem:[%s4551_s1 + $0x38] sm:$0xff]  ;;  %s4574_s14 = smov (!%p370_p2, %s3957_s14), 1  ;;  %v392_v13 = vshrl.u32 %v391_v12, 7  ;;  %s3887_s24 = smov 109  }
  0x2d   : > { %v633_v9 = vld [vmem:[%s4552_s2] sm:$0xff]  ;;  %s3797_s16 = smul.u32 3, %s4574_s14  ;;  %s3888_s25 = smov 108   ;;  %vm718_vm0 = vcmask 154624   ;;  %v3892_v53 = vmov 0.0   ;;  %vm428_vm1 = vcmask 1039360  }
  0x2e   : > { %v384_v10 = vld [vmem:[%s4551_s1] sm:$0xff]  ;;  %v393_v14 = vsub.s32 0, %v392_v13  ;;  %v397_v15 = vsub.s32 1, %v392_v13  ;;  %v401_v17 = vsub.s32 2, %v392_v13  ;;  %s3889_s26 = smov 92   ;;  %s3890_s27 = smov 91   ;;  %973 = vmatprep.mubr.f32.mxu0 %v3892_v53  ;;  %829 = vmatprep.mubr.f32.mxu1 %v3892_v53 }
  0x2f   : > { %v642_v11 = vld [vmem:[%s4553_s3] sm:$0xff]  ;;  %s373_s20 = scalar_lea.vmem %s4550_s0, %s3797_s16  ;;  %s3891_s28 = smov 90   ;;  %719 = vst.msk [vmem:[#allocation2] sm:$0xff] %vm718_vm0, %v3892_v53  ;;  %vm456_vm2 = vcmask 1031168   ;;  %vm484_vm3 = vcmask 900096   ;;  %vm512_vm4 = vcmask 891904  }
  0x30   : > { %497 = vperm.xlu1 %3839, %v3233_v3   ;;  %441 = vperm.xlu0 %3838, %v3231_v4   ;;  %v383_v16 = vld [vmem:[%s373_s20] sm:$0x7]  ;;  %v655_v3 = vand.u32 127, %v391_v12  ;;  %vm540_vm5 = vcmask 883712   ;;  %vm4563_vm6 = vcmask 752640   ;;  %vm596_vm7 = vcmask 744448  }
  0x31   : > { %v4038_v18 = vrot.slane %v383_v16, %v393_v14  ;;  %v4040_v19 = vrot.slane %v383_v16, %v397_v15  ;;  %v4042_v21 = vrot.slane %v383_v16, %v401_v17  ;;  %vm624_vm8 = vcmask 736256   ;;  %s3893_s29 = smov 19   ;;  %s3271_s18 = sshll.u32 %s4574_s14, 4 }
  0x32   : > { %vm720_vm14 = vcmask 703896   ;;  %s378_s19 = scalar_lea.vmem %s4559_s9, %s3271_s18  ;;  %s3229_s20 = sshll.u32 %s4574_s14, 3 }
  0x33   : > { %721 = vst.msk [vmem:[#allocation2 + $0x10] sm:$0xff] %vm720_vm14, %v3892_v53 }
  0x34   : > { %553 = vperm.xlu1 %3839, %v3235_v5   ;;  %525 = vperm.xlu0 %3838, %v3234_v6   ;;  %v657_v6 = vadd.s32 256, %v655_v3 }
  0x36   : > { %v4104_v13 = vmul.u32.u64.low 3817748708, %v657_v6  ;;  %v4105_v14 = vmul.u32.u64.high 3817748708, %v657_v6, %v4104_v13 }
  0x38   : > { %609 = vperm.xlu1 %3839, %v3237_v7   ;;  %581 = vperm.xlu0 %3838, %v3236_v8   ;;  %v4101_v7 = vmul.u32.u64.low 3817748708, %v655_v3  ;;  %v4102_v8 = vmul.u32.u64.high 3817748708, %v655_v3, %v4101_v7 }
  0x3c   : > { %636 = vperm.xlu1 %3839, %v633_v9   ;;  %387 = vperm.xlu0 %3838, %v384_v10   ;;  %v656_v9 = vadd.s32 128, %v655_v3 }
  0x3e   : > { %v4107_v15 = vmul.u32.u64.low 3817748708, %v656_v9  ;;  %v4108_v16 = vmul.u32.u64.high 3817748708, %v656_v9, %v4107_v15 }
  0x40   : > { %645 = vperm.xlu1 %3839, %v642_v11  }
  0xab   : > { %v414_v20 = vpop.permute.xlu0 %413  ;;  %v470_v28 = vpop.permute.xlu1 %469 }
  0xac   : > { %v416_v22 = vmul.f32 %v414_v20, %v4038_v18  ;;  %v417_v23 = vmul.f32 %v414_v20, %v4040_v19  ;;  %v418_v25 = vmul.f32 %v414_v20, %v4042_v21  ;;  %v472_v30 = vmul.f32 %v470_v28, %v4038_v18 }
  0xad   : > { %v473_v31 = vmul.f32 %v470_v28, %v4040_v19  ;;  %v474_v32 = vmul.f32 %v470_v28, %v4042_v21  ;;  %v686_v28 = vshrl.u32 %v4105_v14, 4 }
  0xae   : > { %422 = vrot.lane.b32.xlu1 %v416_v22, %s3884_s21  ;;  %424 = vrot.lane.b32.xlu0 %v417_v23, %s3884_s21  ;;  %v664_v22 = vshrl.u32 %v4102_v8, 4 }
  0xaf   : > { %v442_v24 = vpop.permute.xlu0 %441  ;;  %v498_v33 = vpop.permute.xlu1 %497 }
  0xb0   : > { %v444_v26 = vmul.f32 %v442_v24, %v4038_v18  ;;  %v445_v27 = vmul.f32 %v442_v24, %v4040_v19  ;;  %v446_v29 = vmul.f32 %v442_v24, %v4042_v21  ;;  %v500_v34 = vmul.f32 %v498_v33, %v4038_v18 }
  0xb1   : > { %v501_v35 = vmul.f32 %v498_v33, %v4040_v19  ;;  %v502_v36 = vmul.f32 %v498_v33, %v4042_v21 }
  0xb2   : > { %426 = vrot.lane.b32.xlu1 %v418_v25, %s3884_s21  ;;  %450 = vrot.lane.b32.xlu0 %v444_v26, %s3885_s22 }
  0xb3   : > { %v526_v37 = vpop.permute.xlu0 %525  ;;  %v554_v40 = vpop.permute.xlu1 %553 }
  0xb4   : > { %v528_v38 = vmul.f32 %v526_v37, %v4038_v18  ;;  %v529_v39 = vmul.f32 %v526_v37, %v4040_v19  ;;  %v530_v41 = vmul.f32 %v526_v37, %v4042_v21  ;;  %v556_v42 = vmul.f32 %v554_v40, %v4038_v18 }
  0xb5   : > { %v557_v43 = vmul.f32 %v554_v40, %v4040_v19  ;;  %v558_v44 = vmul.f32 %v554_v40, %v4042_v21  ;;  %v687_v40 = vmul.u32 18, %v686_v28 }
  0xb6   : > { %452 = vrot.lane.b32.xlu1 %v445_v27, %s3885_s22  ;;  %454 = vrot.lane.b32.xlu0 %v446_v29, %s3885_s22 }
  0xb7   : > { %v582_v45 = vpop.permute.xlu0 %581  ;;  %v610_v47 = vpop.permute.xlu1 %609 }
  0xb8   : > { %v585_v46 = vmul.f32 %v582_v45, %v4040_v19  ;;  %v584_v48 = vmul.f32 %v582_v45, %v4038_v18  ;;  %v613_v49 = vmul.f32 %v610_v47, %v4040_v19  ;;  %v586_v50 = vmul.f32 %v582_v45, %v4042_v21 }
  0xb9   : > { %v612_v51 = vmul.f32 %v610_v47, %v4038_v18  ;;  %v614_v52 = vmul.f32 %v610_v47, %v4042_v21 }
  0xba   : > { %478 = vrot.lane.b32.xlu1 %v472_v30, %s3886_s23  ;;  %480 = vrot.lane.b32.xlu0 %v473_v31, %s3886_s23 }
  0xbb   : > { %v4096_v54 = vpop.permute.xlu1 %636  ;;  %v388_v56 = vpop.permute.xlu0 %387 }
  0xbc   : > { %v406_v23 = vmul.f32 %v4038_v18, %v388_v56  ;;  %v408_v29 = vmul.f32 %v4042_v21, %v388_v56  ;;  %v407_v33 = vmul.f32 %v4040_v19, %v388_v56  ;;  %v675_v18 = vshrl.u32 %v4108_v16, 4 }
  0xbe   : > { %482 = vrot.lane.b32.xlu1 %v474_v32, %s3886_s23  ;;  %506 = vrot.lane.b32.xlu0 %v500_v34, %s3887_s24  ;;  %v665_v32 = vmul.u32 18, %v664_v22  ;;  %v676_v47 = vmul.u32 18, %v675_v18 }
  0xbf   : > { %v4098_v55 = vpop.permute.xlu1 %645 }
  0xc0   : > { %v666_v19 = vsub.s32 %v655_v3, %v665_v32 }
  0xc2   : > { %508 = vrot.lane.b32.xlu1 %v501_v35, %s3887_s24  ;;  %510 = vrot.lane.b32.xlu0 %v502_v36, %s3887_s24  ;;  %vm691_vm9 = vcmp.ne.s32.totalorder %v666_v19, 0  ;;  %vm694_vm10 = vcmp.lt.s32.totalorder %v666_v19, 0 }
  0xc3   : > { %vm4132_vm13 = vmand %vm694_vm10, %vm691_vm9 }
  0xc6   : > { %534 = vrot.lane.b32.xlu1 %v528_v38, %s3888_s25  ;;  %536 = vrot.lane.b32.xlu0 %v529_v39, %s3888_s25 }
  0xca   : > { %538 = vrot.lane.b32.xlu1 %v530_v41, %s3888_s25  ;;  %562 = vrot.lane.b32.xlu0 %v556_v42, %s3889_s26 }
  0xce   : > { %564 = vrot.lane.b32.xlu1 %v557_v43, %s3889_s26  ;;  %566 = vrot.lane.b32.xlu0 %v558_v44, %s3889_s26 }
  0xd2   : > { %592 = vrot.lane.b32.xlu1 %v585_v46, %s3890_s27  ;;  %590 = vrot.lane.b32.xlu0 %v584_v48, %s3890_s27 }
  0xd6   : > { %620 = vrot.lane.b32.xlu1 %v613_v49, %s3891_s28  ;;  %594 = vrot.lane.b32.xlu0 %v586_v50, %s3890_s27 }
  0xda   : > { %618 = vrot.lane.b32.xlu0 %v612_v51, %s3891_s28 }
  0xde   : > { %622 = vrot.lane.b32.xlu0 %v614_v52, %s3891_s28 }
 0x120   : > { %v423_v57 = vpop.permute.xlu1 %422  ;;  %v425_v58 = vpop.permute.xlu0 %424 }
 0x121   : > { %v429_v12 = vsel %vm428_vm1, %v423_v57, %v425_v58  ;;  %v688_v57 = vsub.s32 %v657_v6, %v687_v40  ;;  %v4154_v40 = vld [vmem:[%s4554_s4] sm:$0xff] }
 0x122   : > { %v434_v25 = vadd.f32 %v429_v12, %v406_v23 }
 0x123   : > { %vm693_vm11 = vcmp.ne.s32.totalorder %v688_v57, 0  ;;  %vm696_vm12 = vcmp.lt.s32.totalorder %v688_v57, 0  ;;  %v702_v15 = vadd.s32 18, %v688_v57 }
 0x124   : > { %v427_v59 = vpop.permute.xlu1 %426  ;;  %v451_v60 = vpop.permute.xlu0 %450  ;;  %vm699_vm9 = vmand %vm696_vm12, %vm693_vm11  ;;  %vm736_vm12 = vcmask 1047704  }
 0x125   : > { %v430_v30 = vsel %vm428_vm1, %v425_v58, %v427_v59  ;;  %v436_v35 = vadd.f32 %v427_v59, %v408_v29  ;;  %v705_v28 = vsel %vm699_vm9, %v702_v15, %v688_v57 }
 0x126   : > { %v435_v38 = vadd.f32 %v430_v30, %v407_v33  ;;  %vm708_vm11 = vcmp.lt.s32.totalorder %v705_v28, 16 }
 0x128   : > { %v453_v61 = vpop.permute.xlu1 %452  ;;  %v455_v62 = vpop.permute.xlu0 %454 }
 0x129   : > { %v457_v24 = vsel %vm456_vm2, %v451_v60, %v453_v61  ;;  %v458_v36 = vsel %vm456_vm2, %v453_v61, %v455_v62  ;;  %v464_v41 = vadd.f32 %v455_v62, %v436_v35 }
 0x12a   : > { %v462_v34 = vadd.f32 %v457_v24, %v434_v25  ;;  %v463_v44 = vadd.f32 %v458_v36, %v435_v38 }
 0x12c   : > { %v479_v63 = vpop.permute.xlu1 %478  ;;  %v481_v0 = vpop.permute.xlu0 %480 }
 0x12d   : > { %v485_v31 = vsel %vm484_vm3, %v479_v63, %v481_v0  ;;  %v677_v63 = vsub.s32 %v656_v9, %v676_v47 }
 0x12e   : > { %v490_v39 = vadd.f32 %v485_v31, %v462_v34 }
 0x12f   : > { %vm692_vm15 = vcmp.ne.s32.totalorder %v677_v63, 0  ;;  %v701_v22 = vadd.s32 18, %v677_v63 }
 0x130   : > { %v483_v1 = vpop.permute.xlu1 %482  ;;  %v507_v2 = vpop.permute.xlu0 %506 }
 0x131   : > { %v486_v42 = vsel %vm484_vm3, %v481_v0, %v483_v1  ;;  %v492_v48 = vadd.f32 %v483_v1, %v464_v41 }
 0x132   : > { %v491_v51 = vadd.f32 %v486_v42, %v463_v44 }
 0x134   : > { %v509_v4 = vpop.permute.xlu1 %508  ;;  %v511_v5 = vpop.permute.xlu0 %510 }
 0x135   : > { %v513_v37 = vsel %vm512_vm4, %v507_v2, %v509_v4  ;;  %v514_v49 = vsel %vm512_vm4, %v509_v4, %v511_v5  ;;  %v520_v58 = vadd.f32 %v511_v5, %v492_v48  ;;  %v700_v2 = vadd.s32 18, %v666_v19 }
 0x136   : > { %v518_v45 = vadd.f32 %v513_v37, %v490_v39  ;;  %v519_v61 = vadd.f32 %v514_v49, %v491_v51  ;;  %v3238_v49 = vld [vmem:[%s4554_s4 + $0x8] sm:$0xff] }
 0x137   : > { %v703_v12 = vsel %vm4132_vm13, %v700_v2, %v666_v19  ;;  %vm739_vm13 = vcmask 416768   ;;  %v2179_v19 = vld [vmem:[%s4556_s6] sm:$0xff]  ;;  %v3246_v2 = vld [vmem:[%s4554_s4 + $0x18] sm:$0xff] }
 0x138   : > { %v535_v10 = vpop.permute.xlu1 %534  ;;  %v537_v11 = vpop.permute.xlu0 %536  ;;  %vm706_vm14 = vcmp.lt.s32.totalorder %v703_v12, 16 }
 0x139   : > { %v541_v43 = vsel %vm540_vm5, %v535_v10, %v537_v11 }
 0x13a   : > { %v546_v52 = vadd.f32 %v541_v43, %v518_v45  ;;  %v2170_v43 = vld [vmem:[%s4555_s5] sm:$0xff] }
 0x13c   : > { %v539_v17 = vpop.permute.xlu1 %538  ;;  %v563_v20 = vpop.permute.xlu0 %562 }
 0x13d   : > { %v542_v59 = vsel %vm540_vm5, %v537_v11, %v539_v17  ;;  %v548_v0 = vadd.f32 %v539_v17, %v520_v58  ;;  %v3243_v58 = vld [vmem:[%s4554_s4 + $0x10] sm:$0xff] }
 0x13e   : > { %v547_v3 = vadd.f32 %v542_v59, %v519_v61 }
 0x140   : > { %v567_v26 = vpop.permute.xlu0 %566  ;;  %v565_v27 = vpop.permute.xlu1 %564 }
 0x141   : > { %v569_v50 = vsel %vm4563_vm6, %v563_v20, %v565_v27  ;;  %v570_v1 = vsel %vm4563_vm6, %v565_v27, %v567_v26  ;;  %v576_v5 = vadd.f32 %v567_v26, %v548_v0  ;;  %vm695_vm6 = vcmp.lt.s32.totalorder %v677_v63, 0 }
 0x142   : > { %v574_v62 = vadd.f32 %v569_v50, %v546_v52  ;;  %v575_v9 = vadd.f32 %v570_v1, %v547_v3  ;;  %vm698_vm10 = vmand %vm695_vm6, %vm692_vm15  ;;  %vm761_vm15 = vcmask 64512  }
 0x143   : > { %v704_v31 = vsel %vm698_vm10, %v701_v22, %v677_v63 }
 0x144   : > { %v591_v21 = vpop.permute.xlu0 %590  ;;  %v593_v46 = vpop.permute.xlu1 %592  ;;  %vm707_vm6 = vcmp.lt.s32.totalorder %v704_v31, 16  ;;  %v2194_v31 = vld [vmem:[%s4557_s7 + $0x18] sm:$0xff] }
 0x145   : > { %v597_v60 = vsel %vm596_vm7, %v591_v21, %v593_v46 }
 0x146   : > { %v602_v4 = vadd.f32 %v597_v60, %v574_v62 }
 0x148   : > { %v595_v56 = vpop.permute.xlu0 %594  ;;  %v621_v7 = vpop.permute.xlu1 %620 }
 0x149   : > { %v598_v6 = vsel %vm596_vm7, %v593_v46, %v595_v56  ;;  %v604_v14 = vadd.f32 %v595_v56, %v576_v5 }
 0x14a   : > { %v603_v16 = vadd.f32 %v598_v6, %v575_v9 }
 0x14c   : > { %v619_v8 = vpop.permute.xlu0 %618 }
 0x14d   : > { %v625_v10 = vsel %vm624_vm8, %v619_v8, %v621_v7 }
 0x14e   : > { %v630_v13 = vadd.f32 %v625_v10, %v602_v4  ;;  %v3249_v10 = vld [vmem:[%s4554_s4 + $0x20] sm:$0xff] }
 0x150   : > { %v639_v17 = vmul.f32 %v4096_v54, %v630_v13  ;;  %v623_v20 = vpop.permute.xlu0 %622 }
 0x151   : > { %v626_v23 = vsel %vm624_vm8, %v621_v7, %v623_v20  ;;  %v632_v24 = vadd.f32 %v623_v20, %v604_v14  ;;  %v3252_v20 = vld [vmem:[%s4554_s4 + $0x28] sm:$0xff] }
 0x152   : > { %v631_v25 = vadd.f32 %v626_v23, %v603_v16  ;;  %v648_v26 = vadd.f32 %v4098_v55, %v639_v17 }
 0x153   : > { %v641_v27 = vmul.f32 %v4096_v54, %v632_v24 }
 0x154   : > { %v640_v29 = vmul.f32 %v4096_v54, %v631_v25  ;;  %v651_v30 = vmax.f32 %v648_v26, 0.0  ;;  %v3255_v25 = vld [vmem:[%s4554_s4 + $0x30] sm:$0xff] }
 0x155   : > { %v650_v32 = vadd.f32 %v4098_v55, %v641_v27 }
 0x156   : > { %v715_v33 = vsel %vm706_vm14, %v651_v30, 0.0  ;;  %v649_v34 = vadd.f32 %v4098_v55, %v640_v29  ;;  %v2192_v30 = vld [vmem:[%s4557_s7 + $0x8] sm:$0xff] }
 0x157   : > { %725 = vrot.lane.b32.xlu1 %v715_v33, %s3893_s29  ;;  %v653_v18 = vmax.f32 %v650_v32, 0.0  ;;  %v3258_v33 = vld [vmem:[%s4554_s4 + $0x38] sm:$0xff] }
 0x158   : > { %v652_v35 = vmax.f32 %v649_v34, 0.0  ;;  %v3539_v34 = vpack.c.bf16 %v2194_v31, %v2192_v30  ;;  %v2222_v30 = vld [vmem:[%s4557_s7 + $0xf8] sm:$0xff] }
 0x159   : > { %v717_v36 = vsel %vm708_vm11, %v653_v18, 0.0 }
 0x15a   : > { %v716_v37 = vsel %vm707_vm6, %v652_v35, 0.0  ;;  %v2191_v35 = vld [vmem:[%s4557_s7] sm:$0xff] }
 0x15b   : > { %727 = vrot.lane.b32.xlu0 %v716_v37, %s3893_s29  ;;  %729 = vrot.lane.b32.xlu1 %v717_v36, %s3893_s29  ;;  %v2193_v36 = vld [vmem:[%s4557_s7 + $0x10] sm:$0xff]  ;;  %v3261_v37 = vld [vmem:[%s4554_s4 + $0x40] sm:$0xff] }
 0x1c9   : > { %v726_v38 = vpop.permute.xlu1 %725 }
 0x1ca   : > { %737 = vst.msk [vmem:[#allocation2] sm:$0xff] %vm736_vm12, %v726_v38 }
 0x1cd   : > { %v728_v54 = vpop.permute.xlu0 %727  ;;  %v730_v39 = vpop.permute.xlu1 %729 }
 0x1ce   : > { %v731_v21 = vsel %vm718_vm0, %v726_v38, %v728_v54  ;;  %v732_v55 = vsel %vm718_vm0, %v728_v54, %v730_v39  ;;  %vm3894_vm0 = vmmov 0   ;;  %v3541_v38 = vpack.c.bf16 %v2193_v36, %v2191_v35  ;;  %v2196_v54 = vld [vmem:[%s4557_s7 + $0x28] sm:$0xff]  ;;  %v2198_v39 = vld [vmem:[%s4557_s7 + $0x38] sm:$0xff]  ;;  %v2418_v35 = vld [vmem:[#allocation3 + $0x38] sm:$0xff] }
 0x1cf   : > { %740 = vst.msk [vmem:[#allocation2 + $0x10] sm:$0xff] %vm739_vm13, %v732_v55  ;;  %752 = vrot.lane.b32.xlu0 %v731_v21, %s3884_s21  ;;  %909 = vmatprep.subr.mxu0 %v731_v21  ;;  %v3543_v55 = vpack.c.bf16 %v2198_v39, %v2196_v54  ;;  %v2219_v54 = vld [vmem:[%s4557_s7 + $0xe0] sm:$0xff]  ;;  %v2221_v39 = vld [vmem:[%s4557_s7 + $0xf0] sm:$0xff] }
 0x1d1   : > { %v741_v41 = vld [vmem:[#allocation2] sm:$0xff] }
 0x1d2   : > { %910 = vmatpush1.msra.mxu0 %v741_v41 }
 0x1d3   : > { %750 = vrot.lane.b32.xlu0 %v741_v41, %s3884_s21  ;;  %3241 = vmatmul.mubr.msk.f32.vlgmr.msra.gmra.mrb[0].mxu0 %vm761_vm15, %v4154_v40 }
 0x1d4   : > { %1130 = vmatprep.mubr.f32.mxu0 %v3892_v53 }
 0x1d6   : > { %v743_v42 = vld [vmem:[#allocation2 + $0x10] sm:$0xff] }
 0x1d7   : > { %754 = vrot.lane.b32.xlu1 %v743_v42, %s3884_s21  ;;  %1056 = vrot.lane.b32.xlu0 %v743_v42, %s3885_s22 }
 0x1db   : > { %1054 = vrot.lane.b32.xlu1 %v731_v21, %s3885_s22  ;;  %1214 = vrot.lane.b32.xlu0 %v731_v21, %s3886_s23 }
 0x1df   : > { %1052 = vrot.lane.b32.xlu1 %v741_v41, %s3885_s22  ;;  %1212 = vrot.lane.b32.xlu0 %v741_v41, %s3886_s23 }
 0x1e3   : > { %1216 = vrot.lane.b32.xlu1 %v743_v42, %s3886_s23  ;;  %1376 = vrot.lane.b32.xlu0 %v743_v42, %s3887_s24  ;;  %s382_s23 = scalar_lea.vmem %s4560_s10, %s3229_s20 }
 0x1e7   : > { %1374 = vrot.lane.b32.xlu1 %v731_v21, %s3887_s24  ;;  %1534 = vrot.lane.b32.xlu0 %v731_v21, %s3888_s25 }
 0x1eb   : > { %1372 = vrot.lane.b32.xlu1 %v741_v41, %s3887_s24  ;;  %1532 = vrot.lane.b32.xlu0 %v741_v41, %s3888_s25 }
 0x1ef   : > { %1536 = vrot.lane.b32.xlu1 %v743_v42, %s3888_s25  ;;  %1696 = vrot.lane.b32.xlu0 %v743_v42, %s3889_s26 }
 0x1f3   : > { %1694 = vrot.lane.b32.xlu1 %v731_v21, %s3889_s26  ;;  %1854 = vrot.lane.b32.xlu0 %v731_v21, %s3890_s27 }
 0x1f7   : > { %1692 = vrot.lane.b32.xlu1 %v741_v41, %s3889_s26  ;;  %1852 = vrot.lane.b32.xlu0 %v741_v41, %s3890_s27 }
 0x1fb   : > { %1856 = vrot.lane.b32.xlu1 %v743_v42, %s3890_s27  ;;  %2016 = vrot.lane.b32.xlu0 %v743_v42, %s3891_s28 }
 0x1ff   : > { %2014 = vrot.lane.b32.xlu1 %v731_v21, %s3891_s28  ;;  %2173 = vperm.xlu0 %3838, %v2170_v43   ;;  %v2195_v21 = vld [vmem:[%s4557_s7 + $0x20] sm:$0xff] }
 0x203   : > { %2012 = vrot.lane.b32.xlu1 %v741_v41, %s3891_s28  ;;  %v2200_v41 = vld [vmem:[%s4557_s7 + $0x48] sm:$0xff] }
 0x207   : > { %2182 = vperm.xlu1 %3839, %v2179_v19  }
 0x241   : > { %v753_v44 = vpop.permute.xlu0 %752 }
 0x245   : > { %v751_v45 = vpop.permute.xlu0 %750 }
 0x246   : > { %v756_v50 = vsel %vm428_vm1, %v751_v45, %v753_v44  ;;  %v2201_v45 = vld [vmem:[%s4557_s7 + $0x50] sm:$0xff] }
 0x249   : > { %v755_v46 = vpop.permute.xlu1 %754  ;;  %v1057_v47 = vpop.permute.xlu0 %1056 }
 0x24a   : > { %v757_v48 = vsel %vm428_vm1, %v753_v44, %v755_v46  ;;  %vm4571_vm1 = vcmask 752640   ;;  %v2199_v44 = vld [vmem:[%s4557_s7 + $0x40] sm:$0xff] }
 0x24b   : > { %765 = vmatprep.subr.mxu1 %v757_v48  ;;  %v3549_v48 = vpack.c.bf16 %v2201_v45, %v2199_v44  ;;  %v3569_v44 = vpack.c.bf16 %v2221_v39, %v2219_v54  ;;  %v2437_v45 = vld [vmem:[#allocation3 + $0xd0] sm:$0xff]  ;;  %v2254_v39 = vld [vmem:[%s4557_s7 + $0x1f8] sm:$0xff] }
 0x24c   : > { %766 = vmatpush1.msra.mxu1 %v756_v50  ;;  %v2203_v50 = vld [vmem:[%s4557_s7 + $0x60] sm:$0xff]  ;;  %v2252_v54 = vld [vmem:[%s4557_s7 + $0x1e8] sm:$0xff] }
 0x24d   : > { %v1055_v51 = vpop.permute.xlu1 %1054  ;;  %3239 = vmatmul.mubr.msk.f32.vlgmr.msra.gmra.mrb[0].mxu1 %vm761_vm15, %v3238_v49  ;;  %3450 = vmatprep.subr.mxu1 %v3892_v53  ;;  %v1215_v52 = vpop.permute.xlu0 %1214 }
 0x24e   : > { %3451 = vmatpush3.msra.mxu1 %v755_v46  ;;  %3452 = vmatprep.mubr.msk.f32.mxu1 %vm3894_vm0, %v3892_v53  ;;  %v1059_v56 = vsel %vm456_vm2, %v1055_v51, %v1057_v47  ;;  %v2204_v46 = vld [vmem:[%s4557_s7 + $0x68] sm:$0xff] }
 0x24f   : > { %3455 = vmatprep.subr.mxu1 %v3892_v53  ;;  %1066 = vmatprep.subr.mxu0 %v1059_v56  ;;  %v2210_v56 = vld [vmem:[%s4557_s7 + $0x98] sm:$0xff] }
 0x251   : > { %v1053_v57 = vpop.permute.xlu1 %1052  ;;  %3453 = vmatmul.mubr.msk.f32.vlgmr.msra.gmra.mrb[2].mxu1 %vm761_vm15, %v3238_v49  ;;  %v1213_v59 = vpop.permute.xlu0 %1212 }
 0x252   : > { %v1058_v60 = vsel %vm456_vm2, %v1053_v57, %v1055_v51  ;;  %3456 = vmatpush3.msra.mxu1 %v743_v42  ;;  %3457 = vmatprep.mubr.msk.f32.mxu1 %vm3894_vm0, %v3892_v53  ;;  %v1218_v0 = vsel %vm484_vm3, %v1213_v59, %v1215_v52  ;;  %vm4572_vm2 = vmmov %vm4571_vm1  ;;  %v2202_v42 = vld [vmem:[%s4557_s7 + $0x58] sm:$0xff]  ;;  %v2205_v51 = vld [vmem:[%s4557_s7 + $0x70] sm:$0xff] }
 0x253   : > { %1067 = vmatpush1.msra.mxu0 %v1058_v60  ;;  %3460 = vmatprep.subr.mxu1 %v3892_v53  ;;  %v3547_v19 = vpack.c.bf16 %v2202_v42, %v2200_v41  ;;  %v3553_v57 = vpack.c.bf16 %v2205_v51, %v2203_v50  ;;  %v2207_v59 = vld [vmem:[%s4557_s7 + $0x80] sm:$0xff]  ;;  %v2209_v60 = vld [vmem:[%s4557_s7 + $0x90] sm:$0xff]  ;;  %v2228_v50 = vld [vmem:[%s4557_s7 + $0x128] sm:$0xff] }
 0x254   : > { %3244 = vmatmul.mubr.msk.f32.vlgmr.msra.gmra.mrb[0].mxu0 %vm761_vm15, %v3243_v58  ;;  %v2230_v51 = vld [vmem:[%s4557_s7 + $0x138] sm:$0xff] }
 0x255   : > { %v1217_v61 = vpop.permute.xlu1 %1216  ;;  %1290 = vmatprep.mubr.f32.mxu0 %v3892_v53  ;;  %v1377_v62 = vpop.permute.xlu0 %1376 }
 0x256   : > { %v1219_v63 = vsel %vm484_vm3, %v1215_v52, %v1217_v61  ;;  %v2208_v52 = vld [vmem:[%s4557_s7 + $0x88] sm:$0xff] }
 0x257   : > { %1226 = vmatprep.subr.mxu0 %v1219_v63  ;;  %v2427_v63 = vld [vmem:[#allocation3 + $0x80] sm:$0xff] }
 0x258   : > { %1227 = vmatpush1.msra.mxu0 %v1218_v0  ;;  %v2428_v0 = vld [vmem:[#allocation3 + $0x88] sm:$0xff] }
 0x259   : > { %v1375_v1 = vpop.permute.xlu1 %1374  ;;  %3458 = vmatmul.mubr.msk.f32.vlgmr.msra.gmra.mrb[2].mxu1 %vm761_vm15, %v4154_v40  ;;  %v1535_v3 = vpop.permute.xlu0 %1534  ;;  %v2197_v40 = vld [vmem:[%s4557_s7 + $0x30] sm:$0xff] }
 0x25a   : > { %3461 = vmatpush3.msra.mxu1 %v1057_v47  ;;  %v1379_v4 = vsel %vm512_vm4, %v1375_v1, %v1377_v62  ;;  %3462 = vmatprep.mubr.msk.f32.mxu1 %vm3894_vm0, %v3892_v53  ;;  %v3545_v43 = vpack.c.bf16 %v2197_v40, %v2195_v21  ;;  %v2206_v47 = vld [vmem:[%s4557_s7 + $0x78] sm:$0xff]  ;;  %v2436_v21 = vld [vmem:[#allocation3 + $0xc8] sm:$0xff] }
 0x25b   : > { %1386 = vmatprep.subr.mxu0 %v1379_v4  ;;  %3465 = vmatprep.subr.mxu1 %v3892_v53  ;;  %v3551_v49 = vpack.c.bf16 %v2206_v47, %v2204_v46  ;;  %v3557_v4 = vpack.c.bf16 %v2209_v60, %v2207_v59  ;;  %v2226_v40 = vld [vmem:[%s4557_s7 + $0x118] sm:$0xff]  ;;  %v2438_v46 = vld [vmem:[#allocation3 + $0xd8] sm:$0xff]  ;;  %v2227_v59 = vld [vmem:[%s4557_s7 + $0x120] sm:$0xff] }
 0x25c   : > { %3247 = vmatmul.mubr.msk.f32.vlgmr.msra.gmra.mrb[0].mxu0 %vm761_vm15, %v3246_v2  ;;  %v2229_v60 = vld [vmem:[%s4557_s7 + $0x130] sm:$0xff] }
 0x25d   : > { %v1373_v7 = vpop.permute.xlu1 %1372  ;;  %1450 = vmatprep.mubr.f32.mxu0 %v3892_v53  ;;  %v1533_v8 = vpop.permute.xlu0 %1532 }
 0x25e   : > { %v1378_v5 = vsel %vm512_vm4, %v1373_v7, %v1375_v1  ;;  %v1538_v13 = vsel %vm540_vm5, %v1533_v8, %v1535_v3  ;;  %v3611_v1 = vpack.c.bf16 %v2428_v0, %v2427_v63  ;;  %v2211_v7 = vld [vmem:[%s4557_s7 + $0xa0] sm:$0xff]  ;;  %v3577_v63 = vpack.c.bf16 %v2229_v60, %v2227_v59 }
 0x25f   : > { %1387 = vmatpush1.msra.mxu0 %v1378_v5  ;;  %v2429_v5 = vld [vmem:[#allocation3 + $0x90] sm:$0xff]  ;;  %vm2263_vm4 = vcmask 261120  }
 0x261   : > { %v1537_v6 = vpop.permute.xlu1 %1536  ;;  %3463 = vmatmul.mubr.msk.f32.vlgmr.msra.gmra.mrb[2].mxu1 %vm761_vm15, %v3243_v58  ;;  %v1697_v9 = vpop.permute.xlu0 %1696  ;;  %v3555_v58 = vpack.c.bf16 %v2210_v56, %v2208_v52  ;;  %v3631_v56 = vpack.c.bf16 %v2438_v46, %v2437_v45  ;;  %v2426_v45 = vld [vmem:[#allocation3 + $0x78] sm:$0xff] }
 0x262   : > { %v1539_v11 = vsel %vm540_vm5, %v1535_v3, %v1537_v6  ;;  %3466 = vmatpush3.msra.mxu1 %v1217_v61  ;;  %3467 = vmatprep.mubr.msk.f32.mxu1 %vm3894_vm0, %v3892_v53  ;;  %v2212_v61 = vld [vmem:[%s4557_s7 + $0xa8] sm:$0xff]  ;;  %v2412_v3 = vld [vmem:[#allocation3 + $0x8] sm:$0xff] }
 0x263   : > { %1546 = vmatprep.subr.mxu0 %v1539_v11  ;;  %3470 = vmatprep.subr.mxu1 %v3892_v53  ;;  %v2216_v11 = vld [vmem:[%s4557_s7 + $0xc8] sm:$0xff] }
 0x264   : > { %3250 = vmatmul.mubr.msk.f32.vlgmr.msra.gmra.mrb[0].mxu0 %vm761_vm15, %v3249_v10 }
 0x265   : > { %v1695_v14 = vpop.permute.xlu1 %1694  ;;  %1547 = vmatpush1.msra.mxu0 %v1538_v13  ;;  %1610 = vmatprep.mubr.f32.mxu0 %v3892_v53  ;;  %v1855_v16 = vpop.permute.xlu0 %1854  ;;  %v2218_v13 = vld [vmem:[%s4557_s7 + $0xd8] sm:$0xff] }
 0x266   : > { %v1699_v15 = vsel %vm4571_vm1, %v1695_v14, %v1697_v9 }
 0x267   : > { %1706 = vmatprep.subr.mxu0 %v1699_v15  ;;  %v2413_v15 = vld [vmem:[#allocation3 + $0x10] sm:$0xff] }
 0x269   : > { %v1693_v17 = vpop.permute.xlu1 %1692  ;;  %3468 = vmatmul.mubr.msk.f32.vlgmr.msra.gmra.mrb[2].mxu1 %vm761_vm15, %v3246_v2  ;;  %v1853_v24 = vpop.permute.xlu0 %1852  ;;  %v2411_v2 = vld [vmem:[#allocation3] sm:$0xff] }
 0x26a   : > { %v1698_v12 = vsel %vm4572_vm2, %v1693_v17, %v1695_v14  ;;  %3471 = vmatpush3.msra.mxu1 %v1377_v62  ;;  %3472 = vmatprep.mubr.msk.f32.mxu1 %vm3894_vm0, %v3892_v53  ;;  %v1858_v27 = vsel %vm596_vm7, %v1853_v24, %v1855_v16  ;;  %v2214_v62 = vld [vmem:[%s4557_s7 + $0xb8] sm:$0xff]  ;;  %v3613_v8 = vpack.c.bf16 %v2412_v3, %v2411_v2  ;;  %v2233_v2 = vld [vmem:[%s4557_s7 + $0x150] sm:$0xff]  ;;  %v2236_v3 = vld [vmem:[%s4557_s7 + $0x168] sm:$0xff] }
 0x26b   : > { %3475 = vmatprep.subr.mxu1 %v3892_v53 }
 0x26c   : > { %3253 = vmatmul.mubr.msk.f32.vlgmr.msra.gmra.mrb[0].mxu0 %vm761_vm15, %v3252_v20 }
 0x26d   : > { %1707 = vmatpush1.msra.mxu0 %v1698_v12  ;;  %v1857_v22 = vpop.permute.xlu1 %1856  ;;  %1770 = vmatprep.mubr.f32.mxu0 %v3892_v53  ;;  %v2017_v28 = vpop.permute.xlu0 %2016  ;;  %v2432_v12 = vld [vmem:[#allocation3 + $0xa8] sm:$0xff] }
 0x26e   : > { %v1859_v23 = vsel %vm596_vm7, %v1855_v16, %v1857_v22  ;;  %v2414_v16 = vld [vmem:[#allocation3 + $0x18] sm:$0xff] }
 0x26f   : > { %1866 = vmatprep.subr.mxu0 %v1859_v23  ;;  %v3617_v17 = vpack.c.bf16 %v2414_v16, %v2413_v15  ;;  %v2215_v23 = vld [vmem:[%s4557_s7 + $0xc0] sm:$0xff]  ;;  %v2241_v15 = vld [vmem:[%s4557_s7 + $0x190] sm:$0xff]  ;;  %v2244_v16 = vld [vmem:[%s4557_s7 + $0x1a8] sm:$0xff] }
 0x271   : > { %3473 = vmatmul.mubr.msk.f32.vlgmr.msra.gmra.mrb[2].mxu1 %vm761_vm15, %v3249_v10  ;;  %v2015_v26 = vpop.permute.xlu1 %2014  ;;  %v2213_v10 = vld [vmem:[%s4557_s7 + $0xb0] sm:$0xff] }
 0x272   : > { %3476 = vmatpush3.msra.mxu1 %v1537_v6  ;;  %3477 = vmatprep.mubr.msk.f32.mxu1 %vm3894_vm0, %v3892_v53  ;;  %v2019_v29 = vsel %vm624_vm8, %v2015_v26, %v2017_v28  ;;  %v3559_v6 = vpack.c.bf16 %v2214_v62, %v2212_v61  ;;  %v2232_v61 = vld [vmem:[%s4557_s7 + $0x148] sm:$0xff]  ;;  %v2234_v62 = vld [vmem:[%s4557_s7 + $0x158] sm:$0xff] }
 0x273   : > { %3480 = vmatprep.subr.mxu1 %v3892_v53  ;;  %v3579_v0 = vpack.c.bf16 %v2234_v62, %v2232_v61 }
 0x274   : > { %3256 = vmatmul.mubr.msk.f32.vlgmr.msra.gmra.mrb[0].mxu0 %vm761_vm15, %v3255_v25 }
 0x275   : > { %1867 = vmatpush1.msra.mxu0 %v1858_v27  ;;  %1930 = vmatprep.mubr.f32.mxu0 %v3892_v53  ;;  %v2013_v32 = vpop.permute.xlu1 %2012  ;;  %v2217_v27 = vld [vmem:[%s4557_s7 + $0xd0] sm:$0xff] }
 0x276   : > { %2026 = vmatprep.subr.mxu0 %v2019_v29  ;;  %v2018_v18 = vsel %vm624_vm8, %v2013_v32, %v2015_v26  ;;  %v3563_v26 = vpack.c.bf16 %v2218_v13, %v2216_v11  ;;  %v2416_v29 = vld [vmem:[#allocation3 + $0x28] sm:$0xff]  ;;  %v2433_v32 = vld [vmem:[#allocation3 + $0xb0] sm:$0xff]  ;;  %v3565_v36 = vpack.c.bf16 %v2217_v27, %v2215_v23  ;;  %v2242_v11 = vld [vmem:[%s4557_s7 + $0x198] sm:$0xff] }
 0x277   : > { %v2245_v23 = vld [vmem:[%s4557_s7 + $0x1b0] sm:$0xff] }
 0x279   : > { %3478 = vmatmul.mubr.msk.f32.vlgmr.msra.gmra.mrb[2].mxu1 %vm761_vm15, %v3252_v20  ;;  %v2431_v20 = vld [vmem:[#allocation3 + $0xa0] sm:$0xff] }
 0x27a   : > { %3481 = vmatpush3.msra.mxu1 %v1697_v9  ;;  %3482 = vmatprep.mubr.msk.f32.mxu1 %vm3894_vm0, %v3892_v53  ;;  %v2430_v9 = vld [vmem:[#allocation3 + $0x98] sm:$0xff]  ;;  %v3619_v24 = vpack.c.bf16 %v2432_v12, %v2431_v20 }
 0x27b   : > { %3485 = vmatprep.subr.mxu1 %v3892_v53  ;;  %v3615_v14 = vpack.c.bf16 %v2430_v9, %v2429_v5  ;;  %v2235_v5 = vld [vmem:[%s4557_s7 + $0x160] sm:$0xff] }
 0x27c   : > { %3259 = vmatmul.mubr.msk.f32.vlgmr.msra.gmra.mrb[0].mxu0 %vm761_vm15, %v3258_v33 }
 0x27d   : > { %2027 = vmatpush1.msra.mxu0 %v2018_v18  ;;  %2090 = vmatprep.mubr.f32.mxu0 %v3892_v53  ;;  %v2417_v18 = vld [vmem:[#allocation3 + $0x30] sm:$0xff] }
 0x27e   : > { %3540 = vmatprep.subr.bf16.mxu0 %v3539_v34  ;;  %v3625_v41 = vpack.c.bf16 %v2418_v35, %v2417_v18  ;;  %v2174_v59 = vpop.permute.xlu0 %2173 }
 0x281   : > { %3483 = vmatmul.mubr.msk.f32.vlgmr.msra.gmra.mrb[2].mxu1 %vm761_vm15, %v3255_v25  ;;  %v2415_v25 = vld [vmem:[#allocation3 + $0x20] sm:$0xff] }
 0x282   : > { %3486 = vmatpush3.msra.mxu1 %v1857_v22  ;;  %3487 = vmatprep.mubr.msk.f32.mxu1 %vm3894_vm0, %v3892_v53  ;;  %v3561_v22 = vpack.c.bf16 %v2213_v10, %v2211_v7  ;;  %v3621_v31 = vpack.c.bf16 %v2416_v29, %v2415_v25  ;;  %v2240_v10 = vld [vmem:[%s4557_s7 + $0x188] sm:$0xff]  ;;  %v2250_v29 = vld [vmem:[%s4557_s7 + $0x1d8] sm:$0xff] }
 0x283   : > { %3490 = vmatprep.subr.mxu1 %v3892_v53  ;;  %v3587_v13 = vpack.c.bf16 %v2242_v11, %v2240_v10 }
 0x284   : > { %3262 = vmatmul.mubr.msk.f32.vlgmr.msra.gmra.mrb[0].mxu0 %vm761_vm15, %v3261_v37 }
 0x285   : > { %3542 = vmatpush1.bf16.msra.mxu0 %v3541_v38 }
 0x286   : > { %3544 = vmatprep.subr.bf16.mxu0 %v3543_v55  ;;  %v2224_v55 = vld [vmem:[%s4557_s7 + $0x108] sm:$0xff]  ;;  %v2183_v62 = vpop.permute.xlu1 %2182 }
 0x287   : > { %v3571_v47 = vpack.c.bf16 %v2226_v40, %v2224_v55  ;;  %v3599_v55 = vpack.c.bf16 %v2254_v39, %v2252_v54  ;;  %v2442_v40 = vld [vmem:[#allocation3 + $0xf8] sm:$0xff]  ;;  %v2622_v39 = vld [vmem:[#allocation3 + $0x230] sm:$0xff] }
 0x288   : > { %v2591_v54 = vld [vmem:[#allocation3 + $0x138] sm:$0xff] }
 0x289   : > { %3488 = vmatmul.mubr.msk.f32.vlgmr.msra.gmra.mrb[2].mxu1 %vm761_vm15, %v3258_v33  ;;  %3546 = vmatpush1.bf16.msra.mxu0 %v3545_v43  ;;  %v2434_v33 = vld [vmem:[#allocation3 + $0xb8] sm:$0xff]  ;;  %v2419_v43 = vld [vmem:[#allocation3 + $0x40] sm:$0xff] }
 0x28a   : > { %3491 = vmatpush3.msra.mxu1 %v2017_v28  ;;  %3492 = vmatprep.mubr.msk.f32.mxu1 %vm3894_vm0, %v3892_v53  ;;  %v2220_v28 = vld [vmem:[%s4557_s7 + $0xe8] sm:$0xff]  ;;  %v3623_v34 = vpack.c.bf16 %v2434_v33, %v2433_v32  ;;  %v2440_v32 = vld [vmem:[#allocation3 + $0xe8] sm:$0xff] }
 0x28b   : > { %3548 = vmatprep.subr.bf16.mxu0 %v3547_v19  ;;  %3612 = vmatprep.subr.bf16.mxu1 %v3611_v1  ;;  %v3567_v38 = vpack.c.bf16 %v2222_v30, %v2220_v28  ;;  %v2420_v19 = vld [vmem:[#allocation3 + $0x48] sm:$0xff]  ;;  %v2248_v28 = vld [vmem:[%s4557_s7 + $0x1c8] sm:$0xff]  ;;  %v2439_v30 = vld [vmem:[#allocation3 + $0xe0] sm:$0xff] }
 0x28c   : > { %v3629_v52 = vpack.c.bf16 %v2420_v19, %v2419_v43  ;;  %v2231_v1 = vld [vmem:[%s4557_s7 + $0x140] sm:$0xff]  ;;  %v3635_v18 = vpack.c.bf16 %v2440_v32, %v2439_v30  ;;  %v2620_v30 = vld [vmem:[#allocation3 + $0x220] sm:$0xff]  ;;  %v2606_v32 = vld [vmem:[#allocation3 + $0x1b0] sm:$0xff] }
 0x28d   : > { %3550 = vmatpush1.bf16.msra.mxu0 %v3549_v48  ;;  %v2223_v48 = vld [vmem:[%s4557_s7 + $0x100] sm:$0xff]  ;;  %v3581_v7 = vpack.c.bf16 %v2233_v2, %v2231_v1  ;;  %v2257_v2 = vld [vmem:[%s4557_s7 + $0x210] sm:$0xff] }
 0x28e   : > { %3552 = vmatprep.subr.bf16.mxu0 %v3551_v49  ;;  %v2225_v49 = vld [vmem:[%s4557_s7 + $0x110] sm:$0xff]  ;;  %v2247_v33 = vld [vmem:[%s4557_s7 + $0x1c0] sm:$0xff] }
 0x291   : > { %3493 = vmatmul.mubr.msk.f32.vlgmr.msra.gmra.mrb[2].mxu1 %vm761_vm15, %v3261_v37  ;;  %3554 = vmatpush1.bf16.msra.mxu0 %v3553_v57  ;;  %v2435_v37 = vld [vmem:[#allocation3 + $0xc0] sm:$0xff]  ;;  %v3573_v57 = vpack.c.bf16 %v2225_v49, %v2223_v48 }
 0x292   : > { %3556 = vmatprep.subr.bf16.mxu0 %v3555_v58  ;;  %3614 = vmatpush3.bf16.msra.mxu1 %v3613_v8  ;;  %v3627_v42 = vpack.c.bf16 %v2436_v21, %v2435_v37  ;;  %v3575_v58 = vpack.c.bf16 %v2230_v51, %v2228_v50  ;;  %v2424_v37 = vld [vmem:[#allocation3 + $0x68] sm:$0xff]  ;;  %v2441_v21 = vld [vmem:[#allocation3 + $0xf0] sm:$0xff]  ;;  %v2258_v48 = vld [vmem:[%s4557_s7 + $0x218] sm:$0xff]  ;;  %v3895_v50 = vmov 0.0|0.0  }
 0x293   : > { %3616 = vmatprep.subr.bf16.mxu1 %v3615_v14  ;;  %v2239_v14 = vld [vmem:[%s4557_s7 + $0x180] sm:$0xff]  ;;  %v3639_v43 = vpack.c.bf16 %v2442_v40, %v2441_v21  ;;  %v2623_v21 = vld [vmem:[#allocation3 + $0x238] sm:$0xff] }
 0x294   : > { %v3589_v20 = vpack.c.bf16 %v2241_v15, %v2239_v14  ;;  %v2261_v15 = vld [vmem:[%s4557_s7 + $0x230] sm:$0xff]  ;;  %v2609_v40 = vld [vmem:[#allocation3 + $0x1c8] sm:$0xff] }
 0x295   : > { %3558 = vmatpush1.bf16.msra.mxu0 %v3557_v4  ;;  %v2238_v4 = vld [vmem:[%s4557_s7 + $0x178] sm:$0xff] }
 0x296   : > { %3560 = vmatprep.subr.bf16.mxu0 %v3559_v6  ;;  %3618 = vmatpush3.bf16.msra.mxu1 %v3617_v17  ;;  %v3583_v8 = vpack.c.bf16 %v2238_v4, %v2236_v3  ;;  %v2237_v6 = vld [vmem:[%s4557_s7 + $0x170] sm:$0xff]  ;;  %v2246_v17 = vld [vmem:[%s4557_s7 + $0x1b8] sm:$0xff]  ;;  %v2444_v4 = vld [vmem:[#allocation3 + $0x108] sm:$0xff] }
 0x297   : > { %3620 = vmatprep.subr.bf16.mxu1 %v3619_v24  ;;  %v3585_v9 = vpack.c.bf16 %v2237_v6, %v2235_v5  ;;  %v3591_v12 = vpack.c.bf16 %v2246_v17, %v2244_v16  ;;  %v2421_v24 = vld [vmem:[#allocation3 + $0x50] sm:$0xff]  ;;  %v2443_v3 = vld [vmem:[#allocation3 + $0x100] sm:$0xff]  ;;  %v2446_v17 = vld [vmem:[#allocation3 + $0x118] sm:$0xff] }
 0x298   : > { %v2262_v5 = vld [vmem:[%s4557_s7 + $0x238] sm:$0xff]  ;;  %v3644_v11 = vpack.c.bf16 %v2444_v4, %v2443_v3  ;;  %v2445_v16 = vld [vmem:[#allocation3 + $0x110] sm:$0xff] }
 0x299   : > { %3562 = vmatpush1.bf16.msra.mxu0 %v3561_v22  ;;  %v2243_v22 = vld [vmem:[%s4557_s7 + $0x1a0] sm:$0xff] }
 0x29a   : > { %3564 = vmatprep.subr.bf16.mxu0 %v3563_v26  ;;  %3622 = vmatpush3.bf16.msra.mxu1 %v3621_v31  ;;  %v3593_v25 = vpack.c.bf16 %v2245_v23, %v2243_v22  ;;  %v2422_v26 = vld [vmem:[#allocation3 + $0x58] sm:$0xff]  ;;  %v3595_v31 = vpack.c.bf16 %v2250_v29, %v2248_v28  ;;  %v3647_v23 = vpack.c.bf16 %v2446_v17, %v2445_v16  ;;  %v2589_v29 = vld [vmem:[#allocation3 + $0x128] sm:$0xff]  ;;  %v2598_v17 = vld [vmem:[#allocation3 + $0x170] sm:$0xff] }
 0x29b   : > { %3624 = vmatprep.subr.bf16.mxu1 %v3623_v34  ;;  %v3633_v27 = vpack.c.bf16 %v2422_v26, %v2421_v24  ;;  %v2249_v34 = vld [vmem:[%s4557_s7 + $0x1d0] sm:$0xff]  ;;  %v2588_v26 = vld [vmem:[#allocation3 + $0x120] sm:$0xff] }
 0x29c   : > { %v3597_v35 = vpack.c.bf16 %v2249_v34, %v2247_v33  ;;  %v2607_v33 = vld [vmem:[#allocation3 + $0x1b8] sm:$0xff] }
 0x29d   : > { %3566 = vmatpush1.bf16.msra.mxu0 %v3565_v36  ;;  %v2423_v36 = vld [vmem:[#allocation3 + $0x60] sm:$0xff] }
 0x29e   : > { %3568 = vmatprep.subr.bf16.mxu0 %v3567_v38  ;;  %3626 = vmatpush3.bf16.msra.mxu1 %v3625_v41  ;;  %v3637_v38 = vpack.c.bf16 %v2424_v37, %v2423_v36  ;;  %v2251_v41 = vld [vmem:[%s4557_s7 + $0x1e0] sm:$0xff]  ;;  %v2590_v36 = vld [vmem:[#allocation3 + $0x130] sm:$0xff] }
 0x29f   : > { %3628 = vmatprep.subr.bf16.mxu1 %v3627_v42  ;;  %v2253_v42 = vld [vmem:[%s4557_s7 + $0x1f0] sm:$0xff] }
 0x2a0   : > { %v3601_v19 = vpack.c.bf16 %v2253_v42, %v2251_v41  ;;  %v3655_v41 = vpack.c.bf16 %v2591_v54, %v2590_v36  ;;  %v3685_v42 = vpack.c.bf16 %v2623_v21, %v2622_v39  ;;  %v2618_v36 = vld [vmem:[#allocation3 + $0x210] sm:$0xff]  ;;  %v2967_v39 = vld [vmem:[#allocation3 + $0x418] sm:$0xff] }
 0x2a1   : > { %3570 = vmatpush1.bf16.msra.mxu0 %v3569_v44  ;;  %v2425_v44 = vld [vmem:[#allocation3 + $0x70] sm:$0xff] }
 0x2a2   : > { %3572 = vmatprep.subr.bf16.mxu0 %v3571_v47  ;;  %3630 = vmatpush3.bf16.msra.mxu1 %v3629_v52  ;;  %v3641_v46 = vpack.c.bf16 %v2426_v45, %v2425_v44  ;;  %v2256_v47 = vld [vmem:[%s4557_s7 + $0x208] sm:$0xff]  ;;  %v2593_v44 = vld [vmem:[#allocation3 + $0x148] sm:$0xff]  ;;  %v2798_v45 = vld [vmem:[#allocation3 + $0x340] sm:$0xff] }
 0x2a3   : > { %3632 = vmatprep.subr.bf16.mxu1 %v3631_v56  ;;  %v3603_v49 = vpack.c.bf16 %v2258_v48, %v2256_v47  ;;  %v2610_v47 = vld [vmem:[#allocation3 + $0x1d0] sm:$0xff]  ;;  %v2611_v48 = vld [vmem:[#allocation3 + $0x1d8] sm:$0xff] }
 0x2a4   : > { %v2966_v54 = vld [vmem:[#allocation3 + $0x410] sm:$0xff] }
 0x2a5   : > { %3574 = vmatpush1.bf16.msra.mxu0 %v3573_v57 }
 0x2a6   : > { %3576 = vmatprep.subr.bf16.mxu0 %v3575_v58  ;;  %3634 = vmatpush3.bf16.msra.mxu1 %v3633_v27 }
 0x2a7   : > { %3636 = vmatprep.subr.bf16.mxu1 %v3635_v18  ;;  %v3651_v18 = vpack.c.bf16 %v2589_v29, %v2588_v26  ;;  %v2617_v26 = vld [vmem:[#allocation3 + $0x208] sm:$0xff] }
 0x2a9   : > { %3578 = vmatpush1.bf16.msra.mxu0 %v3577_v63 }
 0x2aa   : > { %3580 = vmatprep.subr.bf16.mxu0 %v3579_v0  ;;  %3638 = vmatpush3.bf16.msra.mxu1 %v3637_v38  ;;  %v2255_v0 = vld [vmem:[%s4557_s7 + $0x200] sm:$0xff]  ;;  %v3653_v38 = vpack.c.bf16 %v2607_v33, %v2606_v32 }
 0x2ab   : > { %3640 = vmatprep.subr.bf16.mxu1 %v3639_v43  ;;  %v3605_v10 = vpack.c.bf16 %v2257_v2, %v2255_v0  ;;  %v2592_v43 = vld [vmem:[#allocation3 + $0x140] sm:$0xff]  ;;  %v2601_v32 = vld [vmem:[#allocation3 + $0x188] sm:$0xff] }
 0x2ac   : > { %v2596_v2 = vld [vmem:[#allocation3 + $0x160] sm:$0xff] }
 0x2ad   : > { %3582 = vmatpush1.bf16.msra.mxu0 %v3581_v7 }
 0x2ae   : > { %3584 = vmatprep.subr.bf16.mxu0 %v3583_v8  ;;  %3642 = vmatpush3.bf16.msra.mxu1 %v3641_v46  ;;  %v2260_v8 = vld [vmem:[%s4557_s7 + $0x228] sm:$0xff]  ;;  %v2799_v46 = vld [vmem:[#allocation3 + $0x348] sm:$0xff] }
 0x2af   : > { %3643 = vmatprep.subr.bf16.mxu1 %v3895_v50  ;;  %v3607_v14 = vpack.c.bf16 %v2262_v5, %v2260_v8  ;;  %v2944_v8 = vld [vmem:[#allocation3 + $0x360] sm:$0xff]  ;;  %v2945_v5 = vld [vmem:[#allocation3 + $0x368] sm:$0xff] }
 0x2b0   : > { %v3727_v16 = vpack.c.bf16 %v2945_v5, %v2944_v8  ;;  %v2954_v8 = vld [vmem:[#allocation3 + $0x3b0] sm:$0xff] }
 0x2b1   : > { %3586 = vmatpush1.bf16.msra.mxu0 %v3585_v9  ;;  %v2259_v9 = vld [vmem:[%s4557_s7 + $0x220] sm:$0xff] }
 0x2b2   : > { %3588 = vmatprep.subr.bf16.mxu0 %v3587_v13  ;;  %v3609_v22 = vpack.c.bf16 %v2261_v15, %v2259_v9  ;;  %v2962_v9 = vld [vmem:[#allocation3 + $0x3f0] sm:$0xff] }
 0x2b5   : > { %3590 = vmatpush1.bf16.msra.mxu0 %v3589_v20  ;;  %v2604_v20 = vld [vmem:[#allocation3 + $0x1a0] sm:$0xff] }
 0x2b6   : > { %3592 = vmatprep.subr.bf16.mxu0 %v3591_v12  ;;  %v2605_v12 = vld [vmem:[#allocation3 + $0x1a8] sm:$0xff] }
 0x2b9   : > { %3594 = vmatpush1.bf16.msra.mxu0 %v3593_v25  ;;  %v3649_v25 = vpack.c.bf16 %v2605_v12, %v2604_v20  ;;  %v2599_v20 = vld [vmem:[#allocation3 + $0x178] sm:$0xff] }
 0x2ba   : > { %3596 = vmatprep.subr.bf16.mxu0 %v3595_v31  ;;  %v2621_v31 = vld [vmem:[#allocation3 + $0x228] sm:$0xff]  ;;  %v3671_v29 = vpack.c.bf16 %v2599_v20, %v2598_v17 }
 0x2bd   : > { %3598 = vmatpush1.bf16.msra.mxu0 %v3597_v35  ;;  %v3682_v35 = vpack.c.bf16 %v2621_v31, %v2620_v30  ;;  %v2600_v31 = vld [vmem:[#allocation3 + $0x180] sm:$0xff] }
 0x2be   : > { %3600 = vmatprep.subr.bf16.mxu0 %v3599_v55  ;;  %v2608_v55 = vld [vmem:[#allocation3 + $0x1c0] sm:$0xff]  ;;  %v3675_v21 = vpack.c.bf16 %v2601_v32, %v2600_v31  ;;  %v2772_v32 = vld [vmem:[#allocation3 + $0x270] sm:$0xff] }
 0x2c1   : > { %3602 = vmatpush1.bf16.msra.mxu0 %v3601_v19  ;;  %v3657_v19 = vpack.c.bf16 %v2609_v40, %v2608_v55  ;;  %v2602_v40 = vld [vmem:[#allocation3 + $0x190] sm:$0xff] }
 0x2c2   : > { %3604 = vmatprep.subr.bf16.mxu0 %v3603_v49  ;;  %v3659_v49 = vpack.c.bf16 %v2593_v44, %v2592_v43  ;;  %v3737_v43 = vpack.c.bf16 %v2967_v39, %v2966_v54  ;;  %v2951_v44 = vld [vmem:[#allocation3 + $0x398] sm:$0xff] }
 0x320   : > { %v831_v51 = vpop.f32.mrb[0].mxu1 }
 0x321   : > { %v833_v52 = vpop.f32.mrb[1].mxu1 }
 0x357   : > { %v2092_v56 = vpop.f32.mrb[0].mxu0 }
 0x358   : > { %v3763_v57 = vadd.f32 %v2092_v56, %v831_v51  ;;  %v2094_v58 = vpop.f32.mrb[1].mxu0  ;;  %v3720_v51 = vpack.c.bf16 %v2799_v46, %v2798_v45  ;;  %v2595_v56 = vld [vmem:[#allocation3 + $0x158] sm:$0xff]  ;;  %v2782_v45 = vld [vmem:[#allocation3 + $0x2c0] sm:$0xff]  ;;  %v2783_v46 = vld [vmem:[#allocation3 + $0x2c8] sm:$0xff] }
 0x359   : > { %v3764_v60 = vadd.f32 %v2094_v58, %v833_v52  ;;  %v2594_v52 = vld [vmem:[#allocation3 + $0x150] sm:$0xff] }
 0x35a   : > { %v2176_v61 = vmul.f32 %v3763_v57, %v2174_v59  ;;  %v3661_v57 = vpack.c.bf16 %v2611_v48, %v2610_v47  ;;  %v2800_v58 = vld [vmem:[#allocation3 + $0x350] sm:$0xff]  ;;  %v3663_v0 = vpack.c.bf16 %v2595_v56, %v2594_v52  ;;  %v2968_v47 = vld [vmem:[#allocation3 + $0x420] sm:$0xff]  ;;  %v2969_v48 = vld [vmem:[#allocation3 + $0x428] sm:$0xff]  ;;  %v3687_v52 = vpack.c.bf16 %v2783_v46, %v2782_v45 }
 0x35b   : > { %v2177_v63 = vmul.f32 %v3764_v60, %v2174_v59  ;;  %v2612_v60 = vld [vmem:[#allocation3 + $0x1e0] sm:$0xff]  ;;  %v3741_v56 = vpack.c.bf16 %v2969_v48, %v2968_v47  ;;  %v2777_v45 = vld [vmem:[#allocation3 + $0x298] sm:$0xff]  ;;  %v2795_v47 = vld [vmem:[#allocation3 + $0x328] sm:$0xff] }
 0x35c   : > { %v2185_v1 = vadd.f32 %v2183_v62, %v2176_v61  ;;  %v2613_v61 = vld [vmem:[#allocation3 + $0x1e8] sm:$0xff]  ;;  %v2794_v46 = vld [vmem:[#allocation3 + $0x320] sm:$0xff] }
 0x35d   : > { %v2186_v7 = vadd.f32 %v2183_v62, %v2177_v63  ;;  %v2961_v63 = vld [vmem:[#allocation3 + $0x3e8] sm:$0xff]  ;;  %v3665_v3 = vpack.c.bf16 %v2613_v61, %v2612_v60  ;;  %v2784_v61 = vld [vmem:[#allocation3 + $0x2d0] sm:$0xff] }
 0x35e   : > { %v4495_v13 = vmax.f32 %v2185_v1, 0.0  ;;  %v2953_v60 = vld [vmem:[#allocation3 + $0x3a8] sm:$0xff] }
 0x35f   : > { %v4490_v6 = vmax.f32 %v2186_v7, 0.0  ;;  %v2597_v7 = vld [vmem:[#allocation3 + $0x168] sm:$0xff] }
 0x360   : > { %v3667_v15 = vpack.c.bf16 %v2597_v7, %v2596_v2  ;;  %v2769_v7 = vld [vmem:[#allocation3 + $0x258] sm:$0xff] }
 0x361   : > { %2331 = vmatprep.mubr.f32.mxu0 %v4490_v6  ;;  %2511 = vmatprep.mubr.f32.mxu1 %v4490_v6 }
 0x362   : > { %2332 = vmatmul.mubr.f32.vlgmr.msra.gmra.mrb[2].mxu0 %v4495_v13  ;;  %2512 = vmatmul.mubr.f32.vlgmr.msra.gmra.mrb[4].mxu1 %v4495_v13 }
 0x363   : > { %3606 = vmatpush1.bf16.msra.mxu0 %v3605_v10  ;;  %3645 = vmatpush3.bf16.msra.mxu1 %v3644_v11  ;;  %v2614_v10 = vld [vmem:[#allocation3 + $0x1f0] sm:$0xff]  ;;  %v2615_v11 = vld [vmem:[#allocation3 + $0x1f8] sm:$0xff] }
 0x364   : > { %v2163_v24 = vpop.f32.mrb[2].mxu1  ;;  %3608 = vmatprep.subr.bf16.mxu0 %v3607_v14  ;;  %3646 = vmatprep.subr.bf16.mxu1 %v3895_v50  ;;  %v2963_v14 = vld [vmem:[#allocation3 + $0x3f8] sm:$0xff]  ;;  %v3669_v12 = vpack.c.bf16 %v2615_v11, %v2614_v10  ;;  %v2786_v11 = vld [vmem:[#allocation3 + $0x2e0] sm:$0xff] }
 0x365   : > { %v2178_v27 = vmul.f32 %v2174_v59, %v2163_v24  ;;  %v3494_v28 = vpop.f32.mrb[3].mxu1  ;;  %2402 = vmatprep.mubr.f32.mxu0 %v3892_v53  ;;  %3503 = vmatprep.mubr.msk.f32.mxu1 %vm3894_vm0, %v3892_v53  ;;  %v2801_v59 = vld [vmem:[#allocation3 + $0x358] sm:$0xff]  ;;  %v2616_v24 = vld [vmem:[#allocation3 + $0x200] sm:$0xff] }
 0x366   : > { %v3723_v1 = vpack.c.bf16 %v2801_v59, %v2800_v58  ;;  %v2965_v28 = vld [vmem:[#allocation3 + $0x408] sm:$0xff]  ;;  %v3673_v33 = vpack.c.bf16 %v2617_v26, %v2616_v24  ;;  %v2952_v59 = vld [vmem:[#allocation3 + $0x3a0] sm:$0xff]  ;;  %v2955_v10 = vld [vmem:[#allocation3 + $0x3b8] sm:$0xff] }
 0x367   : > { %v2187_v34 = vadd.f32 %v2183_v62, %v2178_v27  ;;  %3610 = vmatpush1.bf16.msra.mxu0 %v3609_v22  ;;  %3648 = vmatpush3.bf16.msra.mxu1 %v3647_v23  ;;  %v2960_v62 = vld [vmem:[#allocation3 + $0x3e0] sm:$0xff]  ;;  %v2946_v22 = vld [vmem:[#allocation3 + $0x370] sm:$0xff]  ;;  %v2947_v23 = vld [vmem:[#allocation3 + $0x378] sm:$0xff]  ;;  %v3743_v2 = vpack.c.bf16 %v2953_v60, %v2952_v59  ;;  %v3747_v17 = vpack.c.bf16 %v2955_v10, %v2954_v8 }
 0x368   : > { %3650 = vmatprep.subr.bf16.mxu1 %v3649_v25  ;;  %3681 = vmatprep.subr.bf16.mxu0 %v3895_v50  ;;  %v3725_v4 = vpack.c.bf16 %v2961_v63, %v2960_v62  ;;  %v3729_v25 = vpack.c.bf16 %v2963_v14, %v2962_v9  ;;  %v2964_v27 = vld [vmem:[#allocation3 + $0x400] sm:$0xff]  ;;  %v3731_v30 = vpack.c.bf16 %v2947_v23, %v2946_v22  ;;  %v2767_v58 = vld [vmem:[#allocation3 + $0x248] sm:$0xff]  ;;  %v2785_v62 = vld [vmem:[#allocation3 + $0x2d8] sm:$0xff] }
 0x369   : > { %v4509_v37 = vmax.f32 %v2187_v34, 0.0  ;;  %v3733_v34 = vpack.c.bf16 %v2965_v28, %v2964_v27  ;;  %v2970_v63 = vld [vmem:[#allocation3 + $0x430] sm:$0xff]  ;;  %v2787_v9 = vld [vmem:[#allocation3 + $0x2e8] sm:$0xff]  ;;  %v2972_v14 = vld [vmem:[#allocation3 + $0x440] sm:$0xff] }
 0x36a   : > { %v3695_v20 = vpack.c.bf16 %v2787_v9, %v2786_v11  ;;  %v2771_v22 = vld [vmem:[#allocation3 + $0x268] sm:$0xff]  ;;  %v2956_v23 = vld [vmem:[#allocation3 + $0x3c0] sm:$0xff]  ;;  %v2788_v26 = vld [vmem:[#allocation3 + $0x2f0] sm:$0xff] }
 0x36b   : > { %3264 = vmatmul.mubr.msk.f32.vlgmr.msra.gmra.mrb[2].mxu0 %vm2263_vm4, %v4509_v37  ;;  %3504 = vmatmul.mubr.msk.f32.vlgmr.msra.gmra.mrb[6].mxu1 %vm2263_vm4, %v4509_v37  ;;  %v2789_v27 = vld [vmem:[#allocation3 + $0x2f8] sm:$0xff]  ;;  %v2974_v28 = vld [vmem:[#allocation3 + $0x450] sm:$0xff] }
 0x36c   : > { %3652 = vmatpush3.bf16.msra.mxu1 %v3651_v18  ;;  %3683 = vmatpush3.bf16.msra.mxu0 %v3682_v35  ;;  %v2948_v18 = vld [vmem:[#allocation3 + $0x380] sm:$0xff]  ;;  %v2949_v35 = vld [vmem:[#allocation3 + $0x388] sm:$0xff]  ;;  %v3699_v31 = vpack.c.bf16 %v2789_v27, %v2788_v26  ;;  %v2780_v60 = vld [vmem:[#allocation3 + $0x2b0] sm:$0xff] }
 0x36d   : > { %2688 = vmatprep.mubr.f32.mxu1 %v4490_v6  ;;  %3654 = vmatprep.subr.bf16.mxu1 %v3653_v38  ;;  %v2619_v38 = vld [vmem:[#allocation3 + $0x218] sm:$0xff]  ;;  %v3735_v55 = vpack.c.bf16 %v2949_v35, %v2948_v18 }
 0x36e   : > { %3684 = vmatprep.subr.bf16.mxu0 %v3895_v50  ;;  %3514 = vmatprep.mubr.msk.f32.mxu0 %vm3894_vm0, %v3892_v53  ;;  %v2959_v35 = vld [vmem:[#allocation3 + $0x3d8] sm:$0xff] }
 0x370   : > { %3656 = vmatpush3.bf16.msra.mxu1 %v3655_v41  ;;  %3686 = vmatpush3.bf16.msra.mxu0 %v3685_v42  ;;  %v2603_v41 = vld [vmem:[#allocation3 + $0x198] sm:$0xff]  ;;  %v3677_v42 = vpack.c.bf16 %v2619_v38, %v2618_v36  ;;  %v2790_v36 = vld [vmem:[#allocation3 + $0x300] sm:$0xff]  ;;  %v2791_v38 = vld [vmem:[#allocation3 + $0x308] sm:$0xff] }
 0x371   : > { %3658 = vmatprep.subr.bf16.mxu1 %v3657_v19  ;;  %3719 = vmatprep.subr.bf16.mxu0 %v3895_v50  ;;  %v2950_v19 = vld [vmem:[#allocation3 + $0x390] sm:$0xff] }
 0x373   : > { %3515 = vmatmul.mubr.msk.f32.vlgmr.msra.gmra.mrb[4].mxu0 %vm2263_vm4, %v4509_v37 }
 0x374   : > { %3660 = vmatpush3.bf16.msra.mxu1 %v3659_v49  ;;  %3721 = vmatpush3.bf16.msra.mxu0 %v3720_v51  ;;  %v3679_v49 = vpack.c.bf16 %v2603_v41, %v2602_v40  ;;  %v3739_v51 = vpack.c.bf16 %v2951_v44, %v2950_v19  ;;  %v2775_v40 = vld [vmem:[#allocation3 + $0x288] sm:$0xff]  ;;  %v2792_v41 = vld [vmem:[#allocation3 + $0x310] sm:$0xff] }
 0x375   : > { %3662 = vmatprep.subr.bf16.mxu1 %v3661_v57  ;;  %3722 = vmatprep.subr.bf16.mxu0 %v3895_v50  ;;  %v2766_v57 = vld [vmem:[#allocation3 + $0x240] sm:$0xff]  ;;  %v2776_v44 = vld [vmem:[#allocation3 + $0x290] sm:$0xff] }
 0x376   : > { %3525 = vmatprep.mubr.msk.f32.mxu0 %vm3894_vm0, %v3892_v53  ;;  %v3709_v48 = vpack.c.bf16 %v2777_v45, %v2776_v44 }
 0x378   : > { %3664 = vmatpush3.bf16.msra.mxu1 %v3663_v0  ;;  %3724 = vmatpush3.bf16.msra.mxu0 %v3723_v1  ;;  %v2971_v0 = vld [vmem:[#allocation3 + $0x438] sm:$0xff]  ;;  %v3689_v1 = vpack.c.bf16 %v2767_v58, %v2766_v57 }
 0x379   : > { %3666 = vmatprep.subr.bf16.mxu1 %v3665_v3  ;;  %3726 = vmatprep.subr.bf16.mxu0 %v3725_v4  ;;  %v3691_v3 = vpack.c.bf16 %v2785_v62, %v2784_v61  ;;  %v2768_v4 = vld [vmem:[#allocation3 + $0x250] sm:$0xff]  ;;  %v3745_v5 = vpack.c.bf16 %v2971_v0, %v2970_v63  ;;  %v2797_v57 = vld [vmem:[#allocation3 + $0x338] sm:$0xff]  ;;  %v2976_v63 = vld [vmem:[#allocation3 + $0x460] sm:$0xff] }
 0x37a   : > { %v2781_v61 = vld [vmem:[#allocation3 + $0x2b8] sm:$0xff]  ;;  %v2977_v0 = vld [vmem:[#allocation3 + $0x468] sm:$0xff] }
 0x37b   : > { %3526 = vmatmul.mubr.msk.f32.vlgmr.msra.gmra.mrb[6].mxu0 %vm2263_vm4, %v4509_v37  ;;  %v3717_v62 = vpack.c.bf16 %v2781_v61, %v2780_v60 }
 0x37c   : > { %3668 = vmatpush3.bf16.msra.mxu1 %v3667_v15  ;;  %3728 = vmatpush3.bf16.msra.mxu0 %v3727_v16  ;;  %v2973_v15 = vld [vmem:[#allocation3 + $0x448] sm:$0xff]  ;;  %v3693_v16 = vpack.c.bf16 %v2769_v7, %v2768_v4 }
 0x37d   : > { %3044 = vmatprep.mubr.f32.mxu0 %v4490_v6  ;;  %3670 = vmatprep.subr.bf16.mxu1 %v3669_v12  ;;  %v2770_v12 = vld [vmem:[#allocation3 + $0x260] sm:$0xff]  ;;  %v3749_v24 = vpack.c.bf16 %v2973_v15, %v2972_v14 }
 0x37e   : > { %3730 = vmatprep.subr.bf16.mxu0 %v3729_v25  ;;  %v2957_v25 = vld [vmem:[#allocation3 + $0x3c8] sm:$0xff] }
 0x380   : > { %3672 = vmatpush3.bf16.msra.mxu1 %v3671_v29  ;;  %3732 = vmatpush3.bf16.msra.mxu0 %v3731_v30  ;;  %v2975_v29 = vld [vmem:[#allocation3 + $0x458] sm:$0xff]  ;;  %v3697_v30 = vpack.c.bf16 %v2771_v22, %v2770_v12 }
 0x381   : > { %3674 = vmatprep.subr.bf16.mxu1 %v3673_v33  ;;  %3734 = vmatprep.subr.bf16.mxu0 %v3733_v34  ;;  %v2773_v33 = vld [vmem:[#allocation3 + $0x278] sm:$0xff]  ;;  %v2958_v34 = vld [vmem:[#allocation3 + $0x3d0] sm:$0xff]  ;;  %v3753_v18 = vpack.c.bf16 %v2975_v29, %v2974_v28 }
 0x382   : > { %v3701_v54 = vpack.c.bf16 %v2773_v33, %v2772_v32  ;;  %v3755_v39 = vpack.c.bf16 %v2959_v35, %v2958_v34 }
 0x384   : > { %3676 = vmatpush3.bf16.msra.mxu1 %v3675_v21  ;;  %3736 = vmatpush3.bf16.msra.mxu0 %v3735_v55  ;;  %v3703_v21 = vpack.c.bf16 %v2791_v38, %v2790_v36  ;;  %v2774_v55 = vld [vmem:[#allocation3 + $0x280] sm:$0xff] }
 0x385   : > { %3678 = vmatprep.subr.bf16.mxu1 %v3677_v42  ;;  %3738 = vmatprep.subr.bf16.mxu0 %v3737_v43  ;;  %v2793_v42 = vld [vmem:[#allocation3 + $0x318] sm:$0xff]  ;;  %v3705_v43 = vpack.c.bf16 %v2775_v40, %v2774_v55 }
 0x386   : > { %v3707_v19 = vpack.c.bf16 %v2793_v42, %v2792_v41 }
 0x388   : > { %3680 = vmatpush3.bf16.msra.mxu1 %v3679_v49  ;;  %3740 = vmatpush3.bf16.msra.mxu0 %v3739_v51  ;;  %v3711_v49 = vpack.c.bf16 %v2795_v47, %v2794_v46  ;;  %v2778_v51 = vld [vmem:[#allocation3 + $0x2a0] sm:$0xff] }
 0x389   : > { %3688 = vmatprep.subr.bf16.mxu1 %v3687_v52  ;;  %3742 = vmatprep.subr.bf16.mxu0 %v3741_v56  ;;  %v2779_v52 = vld [vmem:[#allocation3 + $0x2a8] sm:$0xff]  ;;  %v2796_v56 = vld [vmem:[#allocation3 + $0x330] sm:$0xff] }
 0x38a   : > { %v3713_v58 = vpack.c.bf16 %v2779_v52, %v2778_v51  ;;  %v3715_v59 = vpack.c.bf16 %v2797_v57, %v2796_v56 }
 0x38b   : > { %2689 = vmatmul.mubr.f32.vlgmr.msra.gmra.mrb[8].mxu1 %v4495_v13 }
 0x38c   : > { %3690 = vmatpush3.bf16.msra.mxu1 %v3689_v1  ;;  %2866 = vmatprep.mubr.f32.mxu1 %v4490_v6  ;;  %v3751_v6 = vpack.c.bf16 %v2957_v25, %v2956_v23  ;;  %v3758_v1 = vpack.c.bf16 %v2977_v0, %v2976_v63 }
 0x38d   : > { %3744 = vmatpush3.bf16.msra.mxu0 %v3743_v2  ;;  %3692 = vmatprep.subr.bf16.mxu1 %v3691_v3  ;;  %v2978_v2 = vld [vmem:[#allocation3 + $0x470] sm:$0xff]  ;;  %v2979_v3 = vld [vmem:[#allocation3 + $0x478] sm:$0xff] }
 0x38e   : > { %3746 = vmatprep.subr.bf16.mxu0 %v3745_v5  ;;  %v3761_v4 = vpack.c.bf16 %v2979_v3, %v2978_v2 }
 0x390   : > { %3694 = vmatpush3.bf16.msra.mxu1 %v3693_v16 }
 0x391   : > { %3748 = vmatpush3.bf16.msra.mxu0 %v3747_v17  ;;  %3696 = vmatprep.subr.bf16.mxu1 %v3695_v20 }
 0x392   : > { %3750 = vmatprep.subr.bf16.mxu0 %v3749_v24 }
 0x394   : > { %3698 = vmatpush3.bf16.msra.mxu1 %v3697_v30 }
 0x395   : > { %3752 = vmatpush3.bf16.msra.mxu0 %v3751_v6  ;;  %3700 = vmatprep.subr.bf16.mxu1 %v3699_v31 }
 0x396   : > { %3754 = vmatprep.subr.bf16.mxu0 %v3753_v18 }
 0x398   : > { %3702 = vmatpush3.bf16.msra.mxu1 %v3701_v54 }
 0x399   : > { %3756 = vmatpush3.bf16.msra.mxu0 %v3755_v39  ;;  %3704 = vmatprep.subr.bf16.mxu1 %v3703_v21 }
 0x39c   : > { %3045 = vmatmul.mubr.f32.vlgmr.msra.gmra.mrb[8].mxu0 %v4495_v13  ;;  %3706 = vmatpush3.bf16.msra.mxu1 %v3705_v43 }
 0x39d   : > { %3708 = vmatprep.subr.bf16.mxu1 %v3707_v19 }
 0x3a0   : > { %3710 = vmatpush3.bf16.msra.mxu1 %v3709_v48 }
 0x3a1   : > { %3712 = vmatprep.subr.bf16.mxu1 %v3711_v49 }
 0x3a4   : > { %3714 = vmatpush3.bf16.msra.mxu1 %v3713_v58 }
 0x3a5   : > { %3716 = vmatprep.subr.bf16.mxu1 %v3715_v59 }
 0x3a8   : > { %3718 = vmatpush3.bf16.msra.mxu1 %v3717_v62 }
 0x3a9   : > { %3757 = vmatprep.subr.bf16.mxu1 %v3895_v50 }
 0x3ab   : > { %2867 = vmatmul.mubr.f32.vlgmr.msra.gmra.mrb[10].mxu1 %v4495_v13 }
 0x3ac   : > { %3759 = vmatpush3.bf16.msra.mxu1 %v3758_v1  ;;  %3536 = vmatprep.mubr.msk.f32.mxu1 %vm3894_vm0, %v3892_v53 }
 0x3ad   : > { %3760 = vmatprep.subr.bf16.mxu1 %v3895_v50 }
 0x3b0   : > { %3762 = vmatpush3.bf16.msra.mxu1 %v3761_v4 }
 0x3b3   : > { %3537 = vmatmul.mubr.msk.f32.vlgmr.msra.gmra.mrb[12].mxu1 %vm2263_vm4, %v4509_v37 }
 0x435   : > { %v3322_v7 = vpop.f32.mrb[4].mxu1 }
 0x436   : > { %v3323_v8 = vpop.f32.mrb[5].mxu1 }
 0x437   : > { %v3324_v5 = vadd.f32 %v3323_v8, %v3322_v7 }
 0x43e   : > { %v2404_v13 = vpop.f32.mrb[2].mxu0  ;;  %v2583_v10 = vpop.f32.mrb[6].mxu1 }
 0x43f   : > { %2409 = vst [vmem:[%s378_s19] sm:$0xff] %v2404_v13  ;;  %v2584_v11 = vadd.f32 %v3324_v5, %v2583_v10  ;;  %v2406_v9 = vpop.f32.mrb[3].mxu0  ;;  %v3505_v53 = vpop.f32.mrb[7].mxu1 }
 0x440   : > { %2410 = vst [vmem:[%s378_s19 + $0x8] sm:$0xff] %v2406_v9 }
 0x446   : > { %v2760_v50 = vpop.f32.mrb[4].mxu0 }
 0x447   : > { %v3516_v14 = vpop.f32.mrb[5].mxu0 }
 0x44e   : > { %v2938_v15 = vpop.f32.mrb[6].mxu0 }
 0x44f   : > { %v3527_v37 = vpop.f32.mrb[7].mxu0 }
 0x45e   : > { %v3362_v16 = vpop.f32.mrb[8].mxu1 }
 0x45f   : > { %v3363_v17 = vpop.f32.mrb[9].mxu1 }
 0x460   : > { %v3364_v20 = vadd.f32 %v3363_v17, %v3362_v16 }
 0x462   : > { %v2761_v12 = vadd.f32 %v3364_v20, %v2760_v50 }
 0x464   : > { %v2764_v22 = vmax.f32 %v2584_v11, %v2761_v12 }
 0x46f   : > { %v3442_v23 = vpop.f32.mrb[8].mxu0 }
 0x470   : > { %v3443_v24 = vpop.f32.mrb[9].mxu0 }
 0x471   : > { %v3444_v25 = vadd.f32 %v3443_v24, %v3442_v23 }
 0x47e   : > { %v3402_v26 = vpop.f32.mrb[10].mxu1 }
 0x47f   : > { %v3403_v27 = vpop.f32.mrb[11].mxu1 }
 0x480   : > { %v3404_v28 = vadd.f32 %v3403_v27, %v3402_v26 }
 0x482   : > { %v2939_v29 = vadd.f32 %v3404_v28, %v2938_v15 }
 0x484   : > { %v2942_v30 = vmax.f32 %v2764_v22, %v2939_v29 }
 0x486   : > { %v3116_v6 = vpop.f32.mrb[12].mxu1 }
 0x487   : > { %v3117_v31 = vadd.f32 %v3444_v25, %v3116_v6  ;;  %v3538_v32 = vpop.f32.mrb[13].mxu1 }
 0x489   : > { %v3120_v33 = vmax.f32 %v2942_v30, %v3117_v31 }
 0x48b   : > { %3121 = vst.msk [vmem:[%s382_s23] sm:$0xff] %vm484_vm3, %v3120_v33 }
 0x48c PF: > { %s22_s13 = sadd.s32 1, %s3878_s13  }
 0x48d   : > { %p19_p3 = scmp.ge.s32.totalorder %s22_s13, 4  }
 0x48f   :  { %21 = sbr.rel (!%p19_p3) target bundleno = 1 (0x1), region = 122 }
 0x496   :  { %3157 = vsyncpa [#allocation4], 1 }
 0x497   :  { %3159 = vsyncpa [#allocation4 + $0x1], 1 }

</bundles_post_ra>
